<compile_context>
chip_gen: v7x
topology: tpu7x:2x2x1
jax: 0.10.0
libtpu: 0.0.40
codegen_flags: <defaults>
</compile_context>

<pallas_src>
import functools

import jax
import jax.numpy as jnp
from jax.experimental import pallas as pl
from jax.experimental.pallas import tpu as pltpu

K = 5  # conv kernel size


# ---------------------------------------------------------------------------
# Host-side parameter prep (tiny, constant-folded under jit)
# ---------------------------------------------------------------------------

def _build_bands(w_oihw, W, Wo2):
    """Per-kernel-row banded weights for fused valid conv + 2x2 max-pool.

    Returns (K+1, W*Cin, 4*Wo2*Cout).  Block t maps input row (2p+t) of pooled
    output row p (lanes ordered (w, cin)) to output lanes (dr, dc, s2, cout):
    the four conv outputs feeding pooled position (p, s2).
    """
    w_oihw = w_oihw.astype(jnp.float32)
    Cout, Cin, k, _ = w_oihw.shape
    t = jnp.arange(k + 1)
    dr = jnp.arange(2)
    dc = jnp.arange(2)
    s2 = jnp.arange(Wo2)
    w = jnp.arange(W)
    i = jnp.arange(k)
    j = jnp.arange(k)
    # rowsel[t, dr, i] = 1 iff i == t - dr   (kernel row used by this block)
    rowsel = (i[None, None, :] == t[:, None, None] - dr[None, :, None]
              ).astype(jnp.float32)
    # colsel[w, dc, s2, j] = 1 iff j == w - 2*s2 - dc
    colsel = (j[None, None, None, :] ==
              w[:, None, None, None] - 2 * s2[None, None, :, None]
              - dc[None, :, None, None]).astype(jnp.float32)
    band = jnp.einsum("tdi,wcsj,ofij->twfdcso", rowsel, colsel, w_oihw)
    # (t, w, cin, dr, dc, s2, cout) -> (t, w*cin, (dr, dc, s2, cout))
    return band.reshape(k + 1, W * Cin, 4 * Wo2 * Cout)


def _round_up(a, m):
    return -(-a // m) * m


# ---------------------------------------------------------------------------
# Fused kernel: conv1 -> pool -> relu -> conv2 -> pool -> relu -> fc head
# ---------------------------------------------------------------------------

def cnn_fused_kernel(xp_ref, band1_ref, bias1_ref, band2_ref, bias2_ref,
                     w1_ref, b1_ref, w2_ref, b2_ref, o_ref, *, tb):
    xp = xp_ref[...]                                   # (14, tb, 56)

    # ---- conv1 (5x5, 1->10) + bias + 2x2 max-pool + ReLU -----------------
    # Matmul rows = (pooled_row p, batch b), batch-minor.  Accumulate over the
    # 6 input rows feeding each pooled row; K = 28 per pass.
    acc1 = jnp.zeros((12 * tb, 480), jnp.float32)
    for t in range(K + 1):
        u = t // 2
        lo = 28 * (t % 2)                              # even/odd row lane half
        xt = xp[u:u + 12, :, lo:lo + 28].reshape(12 * tb, 28)
        acc1 = acc1 + jnp.dot(xt, band1_ref[t],
                              preferred_element_type=jnp.float32)
    y1 = acc1 + bias1_ref[...]                         # lanes (dr, dc, s2, c)
    y1 = jnp.maximum(y1[:, :240], y1[:, 240:])         # vertical pool  (dr)
    y1 = jnp.maximum(y1[:, :120], y1[:, 120:])         # horizontal pool (dc)
    a1 = jnp.maximum(y1, 0.0).reshape(12, tb, 120)     # (h, b, (w, c))

    # ---- conv2 (5x5, 10->20) + bias + 2x2 max-pool + ReLU ----------------
    # TODO(synk): nn.Dropout2d before this pool is stochastic; identity (eval).
    acc2 = jnp.zeros((4 * tb, 320), jnp.float32)
    for t in range(K + 1):
        xt = jnp.concatenate([a1[t], a1[t + 2], a1[t + 4], a1[t + 6]], axis=0)
        acc2 = acc2 + jnp.dot(xt, band2_ref[t],
                              preferred_element_type=jnp.float32)
    y2 = acc2 + bias2_ref[...]
    y2 = jnp.maximum(y2[:, :160], y2[:, 160:])
    y2 = jnp.maximum(y2[:, :80], y2[:, 80:])
    a2 = jnp.maximum(y2, 0.0).reshape(4, tb, 80)       # (h, b, (w, c))

    # ---- fc1 + ReLU (+ dropout as identity) + fc2 + log_softmax ----------
    # fc1 is accumulated over the 4 conv2 rows -> no 320-lane concat needed.
    h1 = jnp.zeros((tb, 50), jnp.float32)
    for q in range(4):
        h1 = h1 + jnp.dot(a2[q], w1_ref[q], preferred_element_type=jnp.float32)
    h1 = jnp.maximum(h1 + b1_ref[...], 0.0)
    # TODO(synk): F.dropout after fc1 is stochastic; identity (eval mode).
    logits = jnp.dot(h1, w2_ref[...], preferred_element_type=jnp.float32)
    logits = logits + b2_ref[...]
    m = jnp.max(logits, axis=-1, keepdims=True)
    z = logits - m
    lse = jnp.log(jnp.sum(jnp.exp(z), axis=-1, keepdims=True))
    o_ref[...] = z - lse


# ---------------------------------------------------------------------------
# Forward pass wrapper
# ---------------------------------------------------------------------------

def cnn_forward(params, x_nchw):
    N = x_nchw.shape[0]
    x = x_nchw.astype(jnp.float32).reshape(N, 28, 28)   # Cin == 1

    # Kernel-ready parameters (tiny; fused/constant-folded by XLA).
    band1 = _build_bands(params["conv1_w"], W=28, Wo2=12)        # (6, 28, 480)
    bias1 = jnp.tile(params["conv1_b"], 48).reshape(1, 480)
    band2 = _build_bands(params["conv2_w"], W=12, Wo2=4)         # (6, 120, 320)
    bias2 = jnp.tile(params["conv2_b"], 16).reshape(1, 320)
    # fc1 columns: torch flatten order (c, h, w) -> kernel order (h, (w, c)),
    # stacked per conv2 pooled row h so fc1 accumulates over 4 row slabs.
    w1 = jnp.transpose(params["fc1_w"].reshape(50, 20, 4, 4),
                       (2, 3, 1, 0)).reshape(4, 80, 50)
    b1 = params["fc1_b"].reshape(1, 50)
    w2 = jnp.transpose(params["fc2_w"])                          # (50, 10)
    b2 = params["fc2_b"].reshape(1, 10)

    # Batch tile: multiple of 8, up to 128, and chosen so large batches use
    # >= 2 grid steps (keeps both v7x TensorCores busy via "parallel").
    tb = max(8, min(128, _round_up(-(-N // 2), 8)))
    Np = _round_up(N, tb)
    if Np != N:
        x = jnp.concatenate([x, jnp.zeros((Np - N, 28, 28), jnp.float32)], 0)
    # Row-pair-major, batch-minor input layout: (14 row-pairs, Np, even|odd).
    xp = jnp.transpose(x.reshape(Np, 14, 56), (1, 0, 2))

    kern = functools.partial(cnn_fused_kernel, tb=tb)
    out = pl.pallas_call(
        kern,
        out_shape=jax.ShapeDtypeStruct((Np, 10), jnp.float32),
        grid=(Np // tb,),
        in_specs=[
            pl.BlockSpec((14, tb, 56), lambda b: (0, b, 0)),
            pl.BlockSpec(band1.shape, lambda b: (0, 0, 0)),
            pl.BlockSpec(bias1.shape, lambda b: (0, 0)),
            pl.BlockSpec(band2.shape, lambda b: (0, 0, 0)),
            pl.BlockSpec(bias2.shape, lambda b: (0, 0)),
            pl.BlockSpec(w1.shape, lambda b: (0, 0, 0)),
            pl.BlockSpec(b1.shape, lambda b: (0, 0)),
            pl.BlockSpec(w2.shape, lambda b: (0, 0)),
            pl.BlockSpec(b2.shape, lambda b: (0, 0)),
        ],
        out_specs=pl.BlockSpec((tb, 10), lambda b: (b, 0)),
        compiler_params=pltpu.CompilerParams(
            dimension_semantics=("parallel",),
            vmem_limit_bytes=48 * 1024 * 1024),
    )(xp, band1, bias1, band2, bias2, w1, b1, w2, b2)
    return out[:N]


# ---------------------------------------------------------------------------
# Pure-JAX reference (torch module in eval mode) and demo
# ---------------------------------------------------------------------------

def init_params(key):
    """Parameters in torch layouts (conv OIHW, linear (out, in))."""
    ks = jax.random.split(key, 8)

    def uni(k, shape, fan_in):
        bound = 1.0 / jnp.sqrt(jnp.float32(fan_in))
        return jax.random.uniform(k, shape, jnp.float32, -bound, bound)

    return {
        "conv1_w": uni(ks[0], (10, 1, 5, 5), 25),
        "conv1_b": uni(ks[1], (10,), 25),
        "conv2_w": uni(ks[2], (20, 10, 5, 5), 250),
        "conv2_b": uni(ks[3], (20,), 250),
        "fc1_w": uni(ks[4], (50, 320), 320),
        "fc1_b": uni(ks[5], (50,), 320),
        "fc2_w": uni(ks[6], (10, 50), 50),
        "fc2_b": uni(ks[7], (10,), 50),
    }


def cnn_reference(params, x_nchw):
    hp = jax.lax.Precision.HIGHEST
    x = x_nchw.astype(jnp.float32)

    def conv(v, w, b):
        y = jax.lax.conv_general_dilated(
            v, w, window_strides=(1, 1), padding="VALID",
            dimension_numbers=("NCHW", "OIHW", "NCHW"), precision=hp)
        return y + b[None, :, None, None]

    def pool(v):
        return jax.lax.reduce_window(v, -jnp.inf, jax.lax.max,
                                     (1, 1, 2, 2), (1, 1, 2, 2), "VALID")

    x = jax.nn.relu(pool(conv(x, params["conv1_w"], params["conv1_b"])))
    x = jax.nn.relu(pool(conv(x, params["conv2_w"], params["conv2_b"])))
    x = x.reshape(x.shape[0], -1)
    x = jax.nn.relu(jnp.dot(x, params["fc1_w"].T, precision=hp)
                    + params["fc1_b"])
    logits = jnp.dot(x, params["fc2_w"].T, precision=hp) + params["fc2_b"]
    return jax.nn.log_softmax(logits, axis=-1)


if __name__ == "__main__":
    key = jax.random.PRNGKey(0)
    k_params, k_x = jax.random.split(key)
    params = init_params(k_params)
    # fc1 expects 320 = 20*4*4 features, which pins the input to 1x28x28.
    x = jax.random.normal(k_x, (2, 1, 28, 28), dtype=jnp.float32)

    out = jax.block_until_ready(jax.jit(cnn_forward)(params, x))
    ref = jax.block_until_ready(jax.jit(cnn_reference)(params, x))

    assert out.shape == (2, 10)
    # log_softmax sanity: rows of exp(out) sum to ~1.
    row_sums = jnp.exp(out).sum(axis=1)
    assert bool(jnp.all(jnp.abs(row_sums - 1.0) < 1e-4))
    # Numerical agreement with the pure-JAX reference of the torch module.
    max_err = float(jnp.max(jnp.abs(out - ref)))
    assert max_err < 2e-3, f"mismatch vs reference: {max_err}"
    print("KERNEL_OK")
</pallas_src>

<mosaic_0001>
module attributes {stable_mosaic.version = 11 : i64} {
  func.func @cnn_fused_kernel(%arg0: i32, %arg1: memref<14x8x56xf32, #tpu.memory_space<vmem>>, %arg2: memref<6x28x480xf32, #tpu.memory_space<vmem>>, %arg3: memref<1x480xf32, #tpu.memory_space<vmem>>, %arg4: memref<6x120x320xf32, #tpu.memory_space<vmem>>, %arg5: memref<1x320xf32, #tpu.memory_space<vmem>>, %arg6: memref<4x80x50xf32, #tpu.memory_space<vmem>>, %arg7: memref<1x50xf32, #tpu.memory_space<vmem>>, %arg8: memref<50x10xf32, #tpu.memory_space<vmem>>, %arg9: memref<1x10xf32, #tpu.memory_space<vmem>>, %arg10: memref<8x10xf32, #tpu.memory_space<vmem>>) attributes {dimension_semantics = [#tpu.dimension_semantics<parallel>], iteration_bounds = array<i64: 1>, scalar_prefetch = 0 : i64, scratch_operands = 0 : i64, tpu.core_type = #tpu.core_type<tc>, window_params = [{transform_indices = @transform_0, window_bounds = array<i64: 14, 8, 56>}, {pipeline_mode = #tpu.pipeline_mode<synchronous>, transform_indices = @transform_1, window_bounds = array<i64: 6, 28, 480>}, {pipeline_mode = #tpu.pipeline_mode<synchronous>, transform_indices = @transform_2, window_bounds = array<i64: 1, 480>}, {pipeline_mode = #tpu.pipeline_mode<synchronous>, transform_indices = @transform_3, window_bounds = array<i64: 6, 120, 320>}, {pipeline_mode = #tpu.pipeline_mode<synchronous>, transform_indices = @transform_4, window_bounds = array<i64: 1, 320>}, {pipeline_mode = #tpu.pipeline_mode<synchronous>, transform_indices = @transform_5, window_bounds = array<i64: 4, 80, 50>}, {pipeline_mode = #tpu.pipeline_mode<synchronous>, transform_indices = @transform_6, window_bounds = array<i64: 1, 50>}, {pipeline_mode = #tpu.pipeline_mode<synchronous>, transform_indices = @transform_7, window_bounds = array<i64: 50, 10>}, {pipeline_mode = #tpu.pipeline_mode<synchronous>, transform_indices = @transform_8, window_bounds = array<i64: 1, 10>}, {transform_indices = @transform_9, window_bounds = array<i64: 8, 10>}]} {
    %c0 = arith.constant 0 : index
    %c0_0 = arith.constant 0 : index
    %c0_1 = arith.constant 0 : index
    %0 = vector.load %arg1[%c0, %c0_0, %c0_1] : memref<14x8x56xf32, #tpu.memory_space<vmem>>, vector<14x8x56xf32>
    %cst = arith.constant 0.000000e+00 : f32
    %1 = vector.broadcast %cst : f32 to vector<96x480xf32>
    %2 = vector.extract_strided_slice %0 {offsets = [0, 0, 0], sizes = [12, 8, 28], strides = [1, 1, 1]} : vector<14x8x56xf32> to vector<12x8x28xf32>
    %3 = vector.shape_cast %2 : vector<12x8x28xf32> to vector<96x28xf32>
    %c0_2 = arith.constant 0 : index
    %c0_3 = arith.constant 0 : index
    %c0_4 = arith.constant 0 : index
    %4 = vector.load %arg2[%c0_2, %c0_3, %c0_4] : memref<6x28x480xf32, #tpu.memory_space<vmem>>, vector<1x28x480xf32>
    %5 = vector.shape_cast %4 : vector<1x28x480xf32> to vector<28x480xf32>
    %cst_5 = arith.constant dense<0.000000e+00> : vector<96x480xf32>
    %6 = tpu.matmul %3, %5, %cst_5 {dimension_numbers = #tpu.dot_dimension_numbers<[1], [0], [0], [1], [0, 0, 1, 1], [], []>} : vector<96x28xf32>, vector<28x480xf32>, vector<96x480xf32> -> vector<96x480xf32>
    %7 = arith.addf %1, %6 : vector<96x480xf32>
    %8 = vector.extract_strided_slice %0 {offsets = [0, 0, 28], sizes = [12, 8, 28], strides = [1, 1, 1]} : vector<14x8x56xf32> to vector<12x8x28xf32>
    %9 = vector.shape_cast %8 : vector<12x8x28xf32> to vector<96x28xf32>
    %c1 = arith.constant 1 : index
    %c0_6 = arith.constant 0 : index
    %c0_7 = arith.constant 0 : index
    %10 = vector.load %arg2[%c1, %c0_6, %c0_7] : memref<6x28x480xf32, #tpu.memory_space<vmem>>, vector<1x28x480xf32>
    %11 = vector.shape_cast %10 : vector<1x28x480xf32> to vector<28x480xf32>
    %cst_8 = arith.constant dense<0.000000e+00> : vector<96x480xf32>
    %12 = tpu.matmul %9, %11, %cst_8 {dimension_numbers = #tpu.dot_dimension_numbers<[1], [0], [0], [1], [0, 0, 1, 1], [], []>} : vector<96x28xf32>, vector<28x480xf32>, vector<96x480xf32> -> vector<96x480xf32>
    %13 = arith.addf %7, %12 : vector<96x480xf32>
    %14 = vector.extract_strided_slice %0 {offsets = [1, 0, 0], sizes = [12, 8, 28], strides = [1, 1, 1]} : vector<14x8x56xf32> to vector<12x8x28xf32>
    %15 = vector.shape_cast %14 : vector<12x8x28xf32> to vector<96x28xf32>
    %c2 = arith.constant 2 : index
    %c0_9 = arith.constant 0 : index
    %c0_10 = arith.constant 0 : index
    %16 = vector.load %arg2[%c2, %c0_9, %c0_10] : memref<6x28x480xf32, #tpu.memory_space<vmem>>, vector<1x28x480xf32>
    %17 = vector.shape_cast %16 : vector<1x28x480xf32> to vector<28x480xf32>
    %cst_11 = arith.constant dense<0.000000e+00> : vector<96x480xf32>
    %18 = tpu.matmul %15, %17, %cst_11 {dimension_numbers = #tpu.dot_dimension_numbers<[1], [0], [0], [1], [0, 0, 1, 1], [], []>} : vector<96x28xf32>, vector<28x480xf32>, vector<96x480xf32> -> vector<96x480xf32>
    %19 = arith.addf %13, %18 : vector<96x480xf32>
    %20 = vector.extract_strided_slice %0 {offsets = [1, 0, 28], sizes = [12, 8, 28], strides = [1, 1, 1]} : vector<14x8x56xf32> to vector<12x8x28xf32>
    %21 = vector.shape_cast %20 : vector<12x8x28xf32> to vector<96x28xf32>
    %c3 = arith.constant 3 : index
    %c0_12 = arith.constant 0 : index
    %c0_13 = arith.constant 0 : index
    %22 = vector.load %arg2[%c3, %c0_12, %c0_13] : memref<6x28x480xf32, #tpu.memory_space<vmem>>, vector<1x28x480xf32>
    %23 = vector.shape_cast %22 : vector<1x28x480xf32> to vector<28x480xf32>
    %cst_14 = arith.constant dense<0.000000e+00> : vector<96x480xf32>
    %24 = tpu.matmul %21, %23, %cst_14 {dimension_numbers = #tpu.dot_dimension_numbers<[1], [0], [0], [1], [0, 0, 1, 1], [], []>} : vector<96x28xf32>, vector<28x480xf32>, vector<96x480xf32> -> vector<96x480xf32>
    %25 = arith.addf %19, %24 : vector<96x480xf32>
    %26 = vector.extract_strided_slice %0 {offsets = [2, 0, 0], sizes = [12, 8, 28], strides = [1, 1, 1]} : vector<14x8x56xf32> to vector<12x8x28xf32>
    %27 = vector.shape_cast %26 : vector<12x8x28xf32> to vector<96x28xf32>
    %c4 = arith.constant 4 : index
    %c0_15 = arith.constant 0 : index
    %c0_16 = arith.constant 0 : index
    %28 = vector.load %arg2[%c4, %c0_15, %c0_16] : memref<6x28x480xf32, #tpu.memory_space<vmem>>, vector<1x28x480xf32>
    %29 = vector.shape_cast %28 : vector<1x28x480xf32> to vector<28x480xf32>
    %cst_17 = arith.constant dense<0.000000e+00> : vector<96x480xf32>
    %30 = tpu.matmul %27, %29, %cst_17 {dimension_numbers = #tpu.dot_dimension_numbers<[1], [0], [0], [1], [0, 0, 1, 1], [], []>} : vector<96x28xf32>, vector<28x480xf32>, vector<96x480xf32> -> vector<96x480xf32>
    %31 = arith.addf %25, %30 : vector<96x480xf32>
    %32 = vector.extract_strided_slice %0 {offsets = [2, 0, 28], sizes = [12, 8, 28], strides = [1, 1, 1]} : vector<14x8x56xf32> to vector<12x8x28xf32>
    %33 = vector.shape_cast %32 : vector<12x8x28xf32> to vector<96x28xf32>
    %c5 = arith.constant 5 : index
    %c0_18 = arith.constant 0 : index
    %c0_19 = arith.constant 0 : index
    %34 = vector.load %arg2[%c5, %c0_18, %c0_19] : memref<6x28x480xf32, #tpu.memory_space<vmem>>, vector<1x28x480xf32>
    %35 = vector.shape_cast %34 : vector<1x28x480xf32> to vector<28x480xf32>
    %cst_20 = arith.constant dense<0.000000e+00> : vector<96x480xf32>
    %36 = tpu.matmul %33, %35, %cst_20 {dimension_numbers = #tpu.dot_dimension_numbers<[1], [0], [0], [1], [0, 0, 1, 1], [], []>} : vector<96x28xf32>, vector<28x480xf32>, vector<96x480xf32> -> vector<96x480xf32>
    %37 = arith.addf %31, %36 : vector<96x480xf32>
    %c0_21 = arith.constant 0 : index
    %c0_22 = arith.constant 0 : index
    %38 = vector.load %arg3[%c0_21, %c0_22] : memref<1x480xf32, #tpu.memory_space<vmem>>, vector<1x480xf32>
    %39 = vector.broadcast %38 : vector<1x480xf32> to vector<96x480xf32>
    %40 = arith.addf %37, %39 : vector<96x480xf32>
    %41 = vector.extract_strided_slice %40 {offsets = [0, 0], sizes = [96, 240], strides = [1, 1]} : vector<96x480xf32> to vector<96x240xf32>
    %42 = vector.extract_strided_slice %40 {offsets = [0, 240], sizes = [96, 240], strides = [1, 1]} : vector<96x480xf32> to vector<96x240xf32>
    %43 = arith.maximumf %41, %42 : vector<96x240xf32>
    %44 = vector.extract_strided_slice %43 {offsets = [0, 0], sizes = [96, 120], strides = [1, 1]} : vector<96x240xf32> to vector<96x120xf32>
    %45 = vector.extract_strided_slice %43 {offsets = [0, 120], sizes = [96, 120], strides = [1, 1]} : vector<96x240xf32> to vector<96x120xf32>
    %46 = arith.maximumf %44, %45 : vector<96x120xf32>
    %cst_23 = arith.constant 0.000000e+00 : f32
    %47 = vector.broadcast %cst_23 : f32 to vector<96x120xf32>
    %48 = arith.maximumf %46, %47 : vector<96x120xf32>
    %49 = vector.shape_cast %48 : vector<96x120xf32> to vector<12x8x120xf32>
    %cst_24 = arith.constant 0.000000e+00 : f32
    %50 = vector.broadcast %cst_24 : f32 to vector<32x320xf32>
    %51 = vector.extract_strided_slice %49 {offsets = [0, 0, 0], sizes = [1, 8, 120], strides = [1, 1, 1]} : vector<12x8x120xf32> to vector<1x8x120xf32>
    %52 = vector.shape_cast %51 : vector<1x8x120xf32> to vector<8x120xf32>
    %53 = vector.extract_strided_slice %49 {offsets = [2, 0, 0], sizes = [1, 8, 120], strides = [1, 1, 1]} : vector<12x8x120xf32> to vector<1x8x120xf32>
    %54 = vector.shape_cast %53 : vector<1x8x120xf32> to vector<8x120xf32>
    %55 = vector.extract_strided_slice %49 {offsets = [4, 0, 0], sizes = [1, 8, 120], strides = [1, 1, 1]} : vector<12x8x120xf32> to vector<1x8x120xf32>
    %56 = vector.shape_cast %55 : vector<1x8x120xf32> to vector<8x120xf32>
    %57 = vector.extract_strided_slice %49 {offsets = [6, 0, 0], sizes = [1, 8, 120], strides = [1, 1, 1]} : vector<12x8x120xf32> to vector<1x8x120xf32>
    %58 = vector.shape_cast %57 : vector<1x8x120xf32> to vector<8x120xf32>
    %59 = tpu.concatenate %52, %54, %56, %58 in 0 : vector<8x120xf32>, vector<8x120xf32>, vector<8x120xf32>, vector<8x120xf32> -> vector<32x120xf32>
    %c0_25 = arith.constant 0 : index
    %c0_26 = arith.constant 0 : index
    %c0_27 = arith.constant 0 : index
    %60 = vector.load %arg4[%c0_25, %c0_26, %c0_27] : memref<6x120x320xf32, #tpu.memory_space<vmem>>, vector<1x120x320xf32>
    %61 = vector.shape_cast %60 : vector<1x120x320xf32> to vector<120x320xf32>
    %cst_28 = arith.constant dense<0.000000e+00> : vector<32x320xf32>
    %62 = tpu.matmul %59, %61, %cst_28 {dimension_numbers = #tpu.dot_dimension_numbers<[1], [0], [0], [1], [0, 0, 1, 1], [], []>} : vector<32x120xf32>, vector<120x320xf32>, vector<32x320xf32> -> vector<32x320xf32>
    %63 = arith.addf %50, %62 : vector<32x320xf32>
    %64 = vector.extract_strided_slice %49 {offsets = [1, 0, 0], sizes = [1, 8, 120], strides = [1, 1, 1]} : vector<12x8x120xf32> to vector<1x8x120xf32>
    %65 = vector.shape_cast %64 : vector<1x8x120xf32> to vector<8x120xf32>
    %66 = vector.extract_strided_slice %49 {offsets = [3, 0, 0], sizes = [1, 8, 120], strides = [1, 1, 1]} : vector<12x8x120xf32> to vector<1x8x120xf32>
    %67 = vector.shape_cast %66 : vector<1x8x120xf32> to vector<8x120xf32>
    %68 = vector.extract_strided_slice %49 {offsets = [5, 0, 0], sizes = [1, 8, 120], strides = [1, 1, 1]} : vector<12x8x120xf32> to vector<1x8x120xf32>
    %69 = vector.shape_cast %68 : vector<1x8x120xf32> to vector<8x120xf32>
    %70 = vector.extract_strided_slice %49 {offsets = [7, 0, 0], sizes = [1, 8, 120], strides = [1, 1, 1]} : vector<12x8x120xf32> to vector<1x8x120xf32>
    %71 = vector.shape_cast %70 : vector<1x8x120xf32> to vector<8x120xf32>
    %72 = tpu.concatenate %65, %67, %69, %71 in 0 : vector<8x120xf32>, vector<8x120xf32>, vector<8x120xf32>, vector<8x120xf32> -> vector<32x120xf32>
    %c1_29 = arith.constant 1 : index
    %c0_30 = arith.constant 0 : index
    %c0_31 = arith.constant 0 : index
    %73 = vector.load %arg4[%c1_29, %c0_30, %c0_31] : memref<6x120x320xf32, #tpu.memory_space<vmem>>, vector<1x120x320xf32>
    %74 = vector.shape_cast %73 : vector<1x120x320xf32> to vector<120x320xf32>
    %cst_32 = arith.constant dense<0.000000e+00> : vector<32x320xf32>
    %75 = tpu.matmul %72, %74, %cst_32 {dimension_numbers = #tpu.dot_dimension_numbers<[1], [0], [0], [1], [0, 0, 1, 1], [], []>} : vector<32x120xf32>, vector<120x320xf32>, vector<32x320xf32> -> vector<32x320xf32>
    %76 = arith.addf %63, %75 : vector<32x320xf32>
    %77 = vector.extract_strided_slice %49 {offsets = [2, 0, 0], sizes = [1, 8, 120], strides = [1, 1, 1]} : vector<12x8x120xf32> to vector<1x8x120xf32>
    %78 = vector.shape_cast %77 : vector<1x8x120xf32> to vector<8x120xf32>
    %79 = vector.extract_strided_slice %49 {offsets = [4, 0, 0], sizes = [1, 8, 120], strides = [1, 1, 1]} : vector<12x8x120xf32> to vector<1x8x120xf32>
    %80 = vector.shape_cast %79 : vector<1x8x120xf32> to vector<8x120xf32>
    %81 = vector.extract_strided_slice %49 {offsets = [6, 0, 0], sizes = [1, 8, 120], strides = [1, 1, 1]} : vector<12x8x120xf32> to vector<1x8x120xf32>
    %82 = vector.shape_cast %81 : vector<1x8x120xf32> to vector<8x120xf32>
    %83 = vector.extract_strided_slice %49 {offsets = [8, 0, 0], sizes = [1, 8, 120], strides = [1, 1, 1]} : vector<12x8x120xf32> to vector<1x8x120xf32>
    %84 = vector.shape_cast %83 : vector<1x8x120xf32> to vector<8x120xf32>
    %85 = tpu.concatenate %78, %80, %82, %84 in 0 : vector<8x120xf32>, vector<8x120xf32>, vector<8x120xf32>, vector<8x120xf32> -> vector<32x120xf32>
    %c2_33 = arith.constant 2 : index
    %c0_34 = arith.constant 0 : index
    %c0_35 = arith.constant 0 : index
    %86 = vector.load %arg4[%c2_33, %c0_34, %c0_35] : memref<6x120x320xf32, #tpu.memory_space<vmem>>, vector<1x120x320xf32>
    %87 = vector.shape_cast %86 : vector<1x120x320xf32> to vector<120x320xf32>
    %cst_36 = arith.constant dense<0.000000e+00> : vector<32x320xf32>
    %88 = tpu.matmul %85, %87, %cst_36 {dimension_numbers = #tpu.dot_dimension_numbers<[1], [0], [0], [1], [0, 0, 1, 1], [], []>} : vector<32x120xf32>, vector<120x320xf32>, vector<32x320xf32> -> vector<32x320xf32>
    %89 = arith.addf %76, %88 : vector<32x320xf32>
    %90 = vector.extract_strided_slice %49 {offsets = [3, 0, 0], sizes = [1, 8, 120], strides = [1, 1, 1]} : vector<12x8x120xf32> to vector<1x8x120xf32>
    %91 = vector.shape_cast %90 : vector<1x8x120xf32> to vector<8x120xf32>
    %92 = vector.extract_strided_slice %49 {offsets = [5, 0, 0], sizes = [1, 8, 120], strides = [1, 1, 1]} : vector<12x8x120xf32> to vector<1x8x120xf32>
    %93 = vector.shape_cast %92 : vector<1x8x120xf32> to vector<8x120xf32>
    %94 = vector.extract_strided_slice %49 {offsets = [7, 0, 0], sizes = [1, 8, 120], strides = [1, 1, 1]} : vector<12x8x120xf32> to vector<1x8x120xf32>
    %95 = vector.shape_cast %94 : vector<1x8x120xf32> to vector<8x120xf32>
    %96 = vector.extract_strided_slice %49 {offsets = [9, 0, 0], sizes = [1, 8, 120], strides = [1, 1, 1]} : vector<12x8x120xf32> to vector<1x8x120xf32>
    %97 = vector.shape_cast %96 : vector<1x8x120xf32> to vector<8x120xf32>
    %98 = tpu.concatenate %91, %93, %95, %97 in 0 : vector<8x120xf32>, vector<8x120xf32>, vector<8x120xf32>, vector<8x120xf32> -> vector<32x120xf32>
    %c3_37 = arith.constant 3 : index
    %c0_38 = arith.constant 0 : index
    %c0_39 = arith.constant 0 : index
    %99 = vector.load %arg4[%c3_37, %c0_38, %c0_39] : memref<6x120x320xf32, #tpu.memory_space<vmem>>, vector<1x120x320xf32>
    %100 = vector.shape_cast %99 : vector<1x120x320xf32> to vector<120x320xf32>
    %cst_40 = arith.constant dense<0.000000e+00> : vector<32x320xf32>
    %101 = tpu.matmul %98, %100, %cst_40 {dimension_numbers = #tpu.dot_dimension_numbers<[1], [0], [0], [1], [0, 0, 1, 1], [], []>} : vector<32x120xf32>, vector<120x320xf32>, vector<32x320xf32> -> vector<32x320xf32>
    %102 = arith.addf %89, %101 : vector<32x320xf32>
    %103 = vector.extract_strided_slice %49 {offsets = [4, 0, 0], sizes = [1, 8, 120], strides = [1, 1, 1]} : vector<12x8x120xf32> to vector<1x8x120xf32>
    %104 = vector.shape_cast %103 : vector<1x8x120xf32> to vector<8x120xf32>
    %105 = vector.extract_strided_slice %49 {offsets = [6, 0, 0], sizes = [1, 8, 120], strides = [1, 1, 1]} : vector<12x8x120xf32> to vector<1x8x120xf32>
    %106 = vector.shape_cast %105 : vector<1x8x120xf32> to vector<8x120xf32>
    %107 = vector.extract_strided_slice %49 {offsets = [8, 0, 0], sizes = [1, 8, 120], strides = [1, 1, 1]} : vector<12x8x120xf32> to vector<1x8x120xf32>
    %108 = vector.shape_cast %107 : vector<1x8x120xf32> to vector<8x120xf32>
    %109 = vector.extract_strided_slice %49 {offsets = [10, 0, 0], sizes = [1, 8, 120], strides = [1, 1, 1]} : vector<12x8x120xf32> to vector<1x8x120xf32>
    %110 = vector.shape_cast %109 : vector<1x8x120xf32> to vector<8x120xf32>
    %111 = tpu.concatenate %104, %106, %108, %110 in 0 : vector<8x120xf32>, vector<8x120xf32>, vector<8x120xf32>, vector<8x120xf32> -> vector<32x120xf32>
    %c4_41 = arith.constant 4 : index
    %c0_42 = arith.constant 0 : index
    %c0_43 = arith.constant 0 : index
    %112 = vector.load %arg4[%c4_41, %c0_42, %c0_43] : memref<6x120x320xf32, #tpu.memory_space<vmem>>, vector<1x120x320xf32>
    %113 = vector.shape_cast %112 : vector<1x120x320xf32> to vector<120x320xf32>
    %cst_44 = arith.constant dense<0.000000e+00> : vector<32x320xf32>
    %114 = tpu.matmul %111, %113, %cst_44 {dimension_numbers = #tpu.dot_dimension_numbers<[1], [0], [0], [1], [0, 0, 1, 1], [], []>} : vector<32x120xf32>, vector<120x320xf32>, vector<32x320xf32> -> vector<32x320xf32>
    %115 = arith.addf %102, %114 : vector<32x320xf32>
    %116 = vector.extract_strided_slice %49 {offsets = [5, 0, 0], sizes = [1, 8, 120], strides = [1, 1, 1]} : vector<12x8x120xf32> to vector<1x8x120xf32>
    %117 = vector.shape_cast %116 : vector<1x8x120xf32> to vector<8x120xf32>
    %118 = vector.extract_strided_slice %49 {offsets = [7, 0, 0], sizes = [1, 8, 120], strides = [1, 1, 1]} : vector<12x8x120xf32> to vector<1x8x120xf32>
    %119 = vector.shape_cast %118 : vector<1x8x120xf32> to vector<8x120xf32>
    %120 = vector.extract_strided_slice %49 {offsets = [9, 0, 0], sizes = [1, 8, 120], strides = [1, 1, 1]} : vector<12x8x120xf32> to vector<1x8x120xf32>
    %121 = vector.shape_cast %120 : vector<1x8x120xf32> to vector<8x120xf32>
    %122 = vector.extract_strided_slice %49 {offsets = [11, 0, 0], sizes = [1, 8, 120], strides = [1, 1, 1]} : vector<12x8x120xf32> to vector<1x8x120xf32>
    %123 = vector.shape_cast %122 : vector<1x8x120xf32> to vector<8x120xf32>
    %124 = tpu.concatenate %117, %119, %121, %123 in 0 : vector<8x120xf32>, vector<8x120xf32>, vector<8x120xf32>, vector<8x120xf32> -> vector<32x120xf32>
    %c5_45 = arith.constant 5 : index
    %c0_46 = arith.constant 0 : index
    %c0_47 = arith.constant 0 : index
    %125 = vector.load %arg4[%c5_45, %c0_46, %c0_47] : memref<6x120x320xf32, #tpu.memory_space<vmem>>, vector<1x120x320xf32>
    %126 = vector.shape_cast %125 : vector<1x120x320xf32> to vector<120x320xf32>
    %cst_48 = arith.constant dense<0.000000e+00> : vector<32x320xf32>
    %127 = tpu.matmul %124, %126, %cst_48 {dimension_numbers = #tpu.dot_dimension_numbers<[1], [0], [0], [1], [0, 0, 1, 1], [], []>} : vector<32x120xf32>, vector<120x320xf32>, vector<32x320xf32> -> vector<32x320xf32>
    %128 = arith.addf %115, %127 : vector<32x320xf32>
    %c0_49 = arith.constant 0 : index
    %c0_50 = arith.constant 0 : index
    %129 = vector.load %arg5[%c0_49, %c0_50] : memref<1x320xf32, #tpu.memory_space<vmem>>, vector<1x320xf32>
    %130 = vector.broadcast %129 : vector<1x320xf32> to vector<32x320xf32>
    %131 = arith.addf %128, %130 : vector<32x320xf32>
    %132 = vector.extract_strided_slice %131 {offsets = [0, 0], sizes = [32, 160], strides = [1, 1]} : vector<32x320xf32> to vector<32x160xf32>
    %133 = vector.extract_strided_slice %131 {offsets = [0, 160], sizes = [32, 160], strides = [1, 1]} : vector<32x320xf32> to vector<32x160xf32>
    %134 = arith.maximumf %132, %133 : vector<32x160xf32>
    %135 = vector.extract_strided_slice %134 {offsets = [0, 0], sizes = [32, 80], strides = [1, 1]} : vector<32x160xf32> to vector<32x80xf32>
    %136 = vector.extract_strided_slice %134 {offsets = [0, 80], sizes = [32, 80], strides = [1, 1]} : vector<32x160xf32> to vector<32x80xf32>
    %137 = arith.maximumf %135, %136 : vector<32x80xf32>
    %cst_51 = arith.constant 0.000000e+00 : f32
    %138 = vector.broadcast %cst_51 : f32 to vector<32x80xf32>
    %139 = arith.maximumf %137, %138 : vector<32x80xf32>
    %140 = vector.shape_cast %139 : vector<32x80xf32> to vector<4x8x80xf32>
    %cst_52 = arith.constant 0.000000e+00 : f32
    %141 = vector.broadcast %cst_52 : f32 to vector<8x50xf32>
    %142 = vector.extract_strided_slice %140 {offsets = [0, 0, 0], sizes = [1, 8, 80], strides = [1, 1, 1]} : vector<4x8x80xf32> to vector<1x8x80xf32>
    %143 = vector.shape_cast %142 : vector<1x8x80xf32> to vector<8x80xf32>
    %c0_53 = arith.constant 0 : index
    %c0_54 = arith.constant 0 : index
    %c0_55 = arith.constant 0 : index
    %144 = vector.load %arg6[%c0_53, %c0_54, %c0_55] : memref<4x80x50xf32, #tpu.memory_space<vmem>>, vector<1x80x50xf32>
    %145 = vector.shape_cast %144 : vector<1x80x50xf32> to vector<80x50xf32>
    %cst_56 = arith.constant dense<0.000000e+00> : vector<8x50xf32>
    %146 = tpu.matmul %143, %145, %cst_56 {dimension_numbers = #tpu.dot_dimension_numbers<[1], [0], [0], [1], [0, 0, 1, 1], [], []>} : vector<8x80xf32>, vector<80x50xf32>, vector<8x50xf32> -> vector<8x50xf32>
    %147 = arith.addf %141, %146 : vector<8x50xf32>
    %148 = vector.extract_strided_slice %140 {offsets = [1, 0, 0], sizes = [1, 8, 80], strides = [1, 1, 1]} : vector<4x8x80xf32> to vector<1x8x80xf32>
    %149 = vector.shape_cast %148 : vector<1x8x80xf32> to vector<8x80xf32>
    %c1_57 = arith.constant 1 : index
    %c0_58 = arith.constant 0 : index
    %c0_59 = arith.constant 0 : index
    %150 = vector.load %arg6[%c1_57, %c0_58, %c0_59] : memref<4x80x50xf32, #tpu.memory_space<vmem>>, vector<1x80x50xf32>
    %151 = vector.shape_cast %150 : vector<1x80x50xf32> to vector<80x50xf32>
    %cst_60 = arith.constant dense<0.000000e+00> : vector<8x50xf32>
    %152 = tpu.matmul %149, %151, %cst_60 {dimension_numbers = #tpu.dot_dimension_numbers<[1], [0], [0], [1], [0, 0, 1, 1], [], []>} : vector<8x80xf32>, vector<80x50xf32>, vector<8x50xf32> -> vector<8x50xf32>
    %153 = arith.addf %147, %152 : vector<8x50xf32>
    %154 = vector.extract_strided_slice %140 {offsets = [2, 0, 0], sizes = [1, 8, 80], strides = [1, 1, 1]} : vector<4x8x80xf32> to vector<1x8x80xf32>
    %155 = vector.shape_cast %154 : vector<1x8x80xf32> to vector<8x80xf32>
    %c2_61 = arith.constant 2 : index
    %c0_62 = arith.constant 0 : index
    %c0_63 = arith.constant 0 : index
    %156 = vector.load %arg6[%c2_61, %c0_62, %c0_63] : memref<4x80x50xf32, #tpu.memory_space<vmem>>, vector<1x80x50xf32>
    %157 = vector.shape_cast %156 : vector<1x80x50xf32> to vector<80x50xf32>
    %cst_64 = arith.constant dense<0.000000e+00> : vector<8x50xf32>
    %158 = tpu.matmul %155, %157, %cst_64 {dimension_numbers = #tpu.dot_dimension_numbers<[1], [0], [0], [1], [0, 0, 1, 1], [], []>} : vector<8x80xf32>, vector<80x50xf32>, vector<8x50xf32> -> vector<8x50xf32>
    %159 = arith.addf %153, %158 : vector<8x50xf32>
    %160 = vector.extract_strided_slice %140 {offsets = [3, 0, 0], sizes = [1, 8, 80], strides = [1, 1, 1]} : vector<4x8x80xf32> to vector<1x8x80xf32>
    %161 = vector.shape_cast %160 : vector<1x8x80xf32> to vector<8x80xf32>
    %c3_65 = arith.constant 3 : index
    %c0_66 = arith.constant 0 : index
    %c0_67 = arith.constant 0 : index
    %162 = vector.load %arg6[%c3_65, %c0_66, %c0_67] : memref<4x80x50xf32, #tpu.memory_space<vmem>>, vector<1x80x50xf32>
    %163 = vector.shape_cast %162 : vector<1x80x50xf32> to vector<80x50xf32>
    %cst_68 = arith.constant dense<0.000000e+00> : vector<8x50xf32>
    %164 = tpu.matmul %161, %163, %cst_68 {dimension_numbers = #tpu.dot_dimension_numbers<[1], [0], [0], [1], [0, 0, 1, 1], [], []>} : vector<8x80xf32>, vector<80x50xf32>, vector<8x50xf32> -> vector<8x50xf32>
    %165 = arith.addf %159, %164 : vector<8x50xf32>
    %c0_69 = arith.constant 0 : index
    %c0_70 = arith.constant 0 : index
    %166 = vector.load %arg7[%c0_69, %c0_70] : memref<1x50xf32, #tpu.memory_space<vmem>>, vector<1x50xf32>
    %167 = vector.broadcast %166 : vector<1x50xf32> to vector<8x50xf32>
    %168 = arith.addf %165, %167 : vector<8x50xf32>
    %cst_71 = arith.constant 0.000000e+00 : f32
    %169 = vector.broadcast %cst_71 : f32 to vector<8x50xf32>
    %170 = arith.maximumf %168, %169 : vector<8x50xf32>
    %c0_72 = arith.constant 0 : index
    %c0_73 = arith.constant 0 : index
    %171 = vector.load %arg8[%c0_72, %c0_73] : memref<50x10xf32, #tpu.memory_space<vmem>>, vector<50x10xf32>
    %cst_74 = arith.constant dense<0.000000e+00> : vector<8x10xf32>
    %172 = tpu.matmul %170, %171, %cst_74 {dimension_numbers = #tpu.dot_dimension_numbers<[1], [0], [0], [1], [0, 0, 1, 1], [], []>} : vector<8x50xf32>, vector<50x10xf32>, vector<8x10xf32> -> vector<8x10xf32>
    %c0_75 = arith.constant 0 : index
    %c0_76 = arith.constant 0 : index
    %173 = vector.load %arg9[%c0_75, %c0_76] : memref<1x10xf32, #tpu.memory_space<vmem>>, vector<1x10xf32>
    %174 = vector.broadcast %173 : vector<1x10xf32> to vector<8x10xf32>
    %175 = arith.addf %172, %174 : vector<8x10xf32>
    %cst_77 = arith.constant dense<0xFF800000> : vector<8xf32>
    %176 = vector.multi_reduction <maximumf>, %175, %cst_77 [1] : vector<8x10xf32> to vector<8xf32>
    %177 = vector.shape_cast %176 : vector<8xf32> to vector<8x1xf32>
    %178 = vector.broadcast %177 : vector<8x1xf32> to vector<8x10xf32>
    %179 = arith.subf %175, %178 : vector<8x10xf32>
    %180 = math.exp %179 : vector<8x10xf32>
    %cst_78 = arith.constant dense<0.000000e+00> : vector<8xf32>
    %181 = vector.multi_reduction <add>, %180, %cst_78 [1] : vector<8x10xf32> to vector<8xf32>
    %182 = vector.shape_cast %181 : vector<8xf32> to vector<8x1xf32>
    %183 = math.log %182 : vector<8x1xf32>
    %184 = vector.broadcast %183 : vector<8x1xf32> to vector<8x10xf32>
    %185 = arith.subf %179, %184 : vector<8x10xf32>
    %c0_79 = arith.constant 0 : index
    %c0_80 = arith.constant 0 : index
    %186 = vector.load %arg10[%c0_79, %c0_80] : memref<8x10xf32, #tpu.memory_space<vmem>>, vector<8x10xf32>
    tpu.vector_store %arg10[%c0_79, %c0_80], %185 {strides = array<i32>} : memref<8x10xf32, #tpu.memory_space<vmem>>, vector<8x10xf32>,
    return
  }
  func.func @transform_0(%arg0: i32) -> (i32, i32, i32) {
    %c0_i32 = arith.constant 0 : i32
    %c0_i32_0 = arith.constant 0 : i32
    %c0_i32_1 = arith.constant 0 : i32
    return %c0_i32, %arg0, %c0_i32_0 : i32, i32, i32
  }
  func.func @transform_1(%arg0: i32) -> (i32, i32, i32) {
    %c0_i32 = arith.constant 0 : i32
    %c0_i32_0 = arith.constant 0 : i32
    %c0_i32_1 = arith.constant 0 : i32
    %c0_i32_2 = arith.constant 0 : i32
    return %c0_i32, %c0_i32_0, %c0_i32_1 : i32, i32, i32
  }
  func.func @transform_2(%arg0: i32) -> (i32, i32) {
    %c0_i32 = arith.constant 0 : i32
    %c0_i32_0 = arith.constant 0 : i32
    %c0_i32_1 = arith.constant 0 : i32
    return %c0_i32, %c0_i32_0 : i32, i32
  }
  func.func @transform_3(%arg0: i32) -> (i32, i32, i32) {
    %c0_i32 = arith.constant 0 : i32
    %c0_i32_0 = arith.constant 0 : i32
    %c0_i32_1 = arith.constant 0 : i32
    %c0_i32_2 = arith.constant 0 : i32
    return %c0_i32, %c0_i32_0, %c0_i32_1 : i32, i32, i32
  }
  func.func @transform_4(%arg0: i32) -> (i32, i32) {
    %c0_i32 = arith.constant 0 : i32
    %c0_i32_0 = arith.constant 0 : i32
    %c0_i32_1 = arith.constant 0 : i32
    return %c0_i32, %c0_i32_0 : i32, i32
  }
  func.func @transform_5(%arg0: i32) -> (i32, i32, i32) {
    %c0_i32 = arith.constant 0 : i32
    %c0_i32_0 = arith.constant 0 : i32
    %c0_i32_1 = arith.constant 0 : i32
    %c0_i32_2 = arith.constant 0 : i32
    return %c0_i32, %c0_i32_0, %c0_i32_1 : i32, i32, i32
  }
  func.func @transform_6(%arg0: i32) -> (i32, i32) {
    %c0_i32 = arith.constant 0 : i32
    %c0_i32_0 = arith.constant 0 : i32
    %c0_i32_1 = arith.constant 0 : i32
    return %c0_i32, %c0_i32_0 : i32, i32
  }
  func.func @transform_7(%arg0: i32) -> (i32, i32) {
    %c0_i32 = arith.constant 0 : i32
    %c0_i32_0 = arith.constant 0 : i32
    %c0_i32_1 = arith.constant 0 : i32
    return %c0_i32, %c0_i32_0 : i32, i32
  }
  func.func @transform_8(%arg0: i32) -> (i32, i32) {
    %c0_i32 = arith.constant 0 : i32
    %c0_i32_0 = arith.constant 0 : i32
    %c0_i32_1 = arith.constant 0 : i32
    return %c0_i32, %c0_i32_0 : i32, i32
  }
  func.func @transform_9(%arg0: i32) -> (i32, i32) {
    %c0_i32 = arith.constant 0 : i32
    %c0_i32_0 = arith.constant 0 : i32
    return %arg0, %c0_i32 : i32, i32
  }
}

</mosaic_0001>

<bundles_post_ra>
// kernel: tile.13
= control target key start
LH: loop header
LB: loop body
LE: loop exit
PB: predicated region body
PF: predicated region fallthrough
CT: control target
= control target key end

     0   :  { %s52_s0 = inlined_call_operand.vmem [shape: f32[10], index: 0, kind: input, shape index: {}]   ;;  %s53_s1 = inlined_call_operand.vmem [shape: f32[48,10], index: 1, kind: output, shape index: {}]  }
   0x1   :  { %v4_v0 = vld [vmem:[%s52_s0] ss:$0 sm:$0xff] }
   0x2   :  { %5 = vst [vmem:[%s53_s1] sm:$0xff] %v4_v0  ;;  %16 = vst [vmem:[%s53_s1 + $0x8] sm:$0xff] %v4_v0 }
   0x3   :  { %17 = vst [vmem:[%s53_s1 + $0x10] sm:$0xff] %v4_v0  ;;  %18 = vst [vmem:[%s53_s1 + $0x18] sm:$0xff] %v4_v0 }
   0x4   :  { %19 = vst [vmem:[%s53_s1 + $0x20] sm:$0xff] %v4_v0  ;;  %20 = vst [vmem:[%s53_s1 + $0x28] sm:$0xff] %v4_v0 }

// kernel: tile.14
= control target key start
LH: loop header
LB: loop body
LE: loop exit
PB: predicated region body
PF: predicated region fallthrough
CT: control target
= control target key end

     0   :  { %vm9_vm0 = vcmask 31744   ;;  %vm37_vm1 = vcmask 64512   ;;  %s468_s14 = smov 124   ;;  %vm13_vm2 = vcmask 48128   ;;  %s469_s19 = smov 120   ;;  %vm3_vm3 = vcmask 80896   ;;  %s694_s0 = inlined_call_operand.vmem [shape: f32[48,10], index: 0, kind: input, shape index: {}]   ;;  %s695_s1 = inlined_call_operand.vmem [shape: f32[1,480], index: 1, kind: output, shape index: {}]  }
   0x1   :  { %v368_v0 = vld [vmem:[%s694_s0 + $0x26] sm:$0x1]   ;;  %v372_v3 = vld [vmem:[%s694_s0 + $0xc] sm:$0x1]   ;;  %v370_v6 = vld [vmem:[%s694_s0 + $0x19] sm:$0x1]  }
   0x2   :  { %v369_v1 = vld [vmem:[%s694_s0 + $0x26] sm:$0x1]   ;;  %v373_v4 = vld [vmem:[%s694_s0 + $0xc] sm:$0x1]   ;;  %v371_v7 = vld [vmem:[%s694_s0 + $0x19] sm:$0x1]  }
   0x3   :  { %v10_v2 = vsel %vm9_vm0, %v369_v1, %v368_v0  ;;  %v38_v5 = vsel %vm37_vm1, %v373_v4, %v372_v3  ;;  %v24_v8 = vsel %vm13_vm2, %v371_v7, %v370_v6  ;;  %v374_v9 = vld [vmem:[%s694_s0 + $0x25] sm:$0x1]   ;;  %s470_s22 = smov 122   ;;  %s471_s23 = smov 114   ;;  %v375_v10 = vld [vmem:[%s694_s0 + $0x18] sm:$0x1]  }
   0x4   :  { %11 = vrot.lane.b32.xlu0 %v10_v2, %s468_s14  ;;  %39 = vrot.lane.b32.xlu1 %v38_v5, %s469_s19  ;;  %v376_v11 = vld [vmem:[%s694_s0 + $0xb] sm:$0x1]   ;;  %s472_s28 = smov 112   ;;  %s473_s29 = smov 110   ;;  %v377_v12 = vld [vmem:[%s694_s0 + $0x24] sm:$0x1]  }
   0x5   :  { %v378_v13 = vld [vmem:[%s694_s0 + $0x17] sm:$0x1]   ;;  %s474_s5 = smov 104   ;;  %s475_s6 = smov 102   ;;  %v379_v14 = vld [vmem:[%s694_s0 + $0xa] sm:$0x1]  }
   0x6   :  { %v380_v15 = vld [vmem:[%s694_s0 + $0x23] sm:$0x1]   ;;  %s476_s11 = smov 100   ;;  %s477_s12 = smov 94   ;;  %v381_v16 = vld [vmem:[%s694_s0 + $0x16] sm:$0x1]  }
   0x7   :  { %v382_v17 = vld [vmem:[%s694_s0 + $0x9] sm:$0x1]   ;;  %s478_s17 = smov 92   ;;  %s479_s18 = smov 90   ;;  %v383_v18 = vld [vmem:[%s694_s0 + $0x2f] sm:$0x1]  }
   0x8   :  { %25 = vrot.lane.b32.xlu0 %v24_v8, %s470_s22  ;;  %48 = vrot.lane.b32.xlu1 %v374_v9, %s471_s23  ;;  %v384_v19 = vld [vmem:[%s694_s0 + $0x22] sm:$0x1]   ;;  %v2_v20 = vld [vmem:[%s694_s0] sm:$0x1]   ;;  %s480_s25 = smov 86   ;;  %s481_s26 = smov 84  }
   0x9   :  { %4 = vst.msk [vmem:[#allocation0] sm:$0x1] %vm3_vm3, %v2_v20   ;;  %v385_v21 = vld [vmem:[%s694_s0 + $0x15] sm:$0x1]   ;;  %v386_v22 = vld [vmem:[%s694_s0 + $0x8] sm:$0x1]  }
   0xa   :  { %s482_s2 = smov 82   ;;  %s483_s3 = smov 80   ;;  %v387_v23 = vld [vmem:[%s694_s0 + $0x2e] sm:$0x1]   ;;  %v388_v24 = vld [vmem:[%s694_s0 + $0x21] sm:$0x1]  }
   0xb   :  { %s484_s8 = smov 76   ;;  %s485_s9 = smov 74   ;;  %v389_v25 = vld [vmem:[%s694_s0 + $0x14] sm:$0x1]   ;;  %v390_v26 = vld [vmem:[%s694_s0 + $0x7] sm:$0x1]  }
   0xc   :  { %55 = vrot.lane.b32.xlu0 %v375_v10, %s472_s28  ;;  %62 = vrot.lane.b32.xlu1 %v376_v11, %s473_s29  ;;  %s486_s14 = smov 72   ;;  %s487_s15 = smov 70   ;;  %v391_v27 = vld [vmem:[%s694_s0 + $0x2d] sm:$0x1]   ;;  %v392_v28 = vld [vmem:[%s694_s0 + $0x20] sm:$0x1]  }
   0xd   :  { %s488_s20 = smov 66   ;;  %s489_s21 = smov 64   ;;  %v393_v29 = vld [vmem:[%s694_s0 + $0x13] sm:$0x1]   ;;  %v394_v30 = vld [vmem:[%s694_s0 + $0x6] sm:$0x1]  }
   0xe   :  { %s491_s27 = smov 60   ;;  %v395_v31 = vld [vmem:[%s694_s0 + $0x2c] sm:$0x1]   ;;  %v396_v32 = vld [vmem:[%s694_s0 + $0x1f] sm:$0x1]   ;;  %s493_s4 = smov 54  }
   0xf   :  { %v397_v33 = vld [vmem:[%s694_s0 + $0x12] sm:$0x1]   ;;  %v398_v34 = vld [vmem:[%s694_s0 + $0x5] sm:$0x1]   ;;  %s495_s10 = smov 50   ;;  %s497_s16 = smov 44  }
  0x10   :  { %68 = vrot.lane.b32.xlu0 %v377_v12, %s474_s5  ;;  %75 = vrot.lane.b32.xlu1 %v378_v13, %s475_s6  ;;  %v399_v35 = vld [vmem:[%s694_s0 + $0x2b] sm:$0x1]   ;;  %v400_v36 = vld [vmem:[%s694_s0 + $0x1e] sm:$0x1]   ;;  %s499_s22 = smov 40   ;;  %s501_s28 = smov 34  }
  0x11   :  { %v401_v37 = vld [vmem:[%s694_s0 + $0x11] sm:$0x1]   ;;  %v402_v38 = vld [vmem:[%s694_s0 + $0x4] sm:$0x1]   ;;  %v403_v39 = vld [vmem:[%s694_s0 + $0x2a] sm:$0x1]  }
  0x12   :  { %v404_v40 = vld [vmem:[%s694_s0 + $0x1d] sm:$0x1]   ;;  %v405_v41 = vld [vmem:[%s694_s0 + $0x10] sm:$0x1]   ;;  %v406_v42 = vld [vmem:[%s694_s0 + $0x3] sm:$0x1]  }
  0x13   :  { %s503_s5 = smov 30   ;;  %v407_v43 = vld [vmem:[%s694_s0 + $0x29] sm:$0x1]   ;;  %v408_v44 = vld [vmem:[%s694_s0 + $0x1c] sm:$0x1]   ;;  %s509_s23 = smov 14  }
  0x14   :  { %82 = vrot.lane.b32.xlu0 %v379_v14, %s476_s11  ;;  %88 = vrot.lane.b32.xlu1 %v380_v15, %s477_s12  ;;  %s505_s11 = smov 24   ;;  %v409_v45 = vld [vmem:[%s694_s0 + $0xf] sm:$0x1]   ;;  %v410_v46 = vld [vmem:[%s694_s0 + $0x2] sm:$0x1]   ;;  %s511_s29 = smov 10  }
  0x15   :  { %v411_v47 = vld [vmem:[%s694_s0 + $0x28] sm:$0x1]   ;;  %v412_v48 = vld [vmem:[%s694_s0 + $0x1b] sm:$0x1]   ;;  %v413_v49 = vld [vmem:[%s694_s0 + $0xe] sm:$0x1]  }
  0x16   :  { %v414_v50 = vld [vmem:[%s694_s0 + $0x1] sm:$0x1]   ;;  %v415_v51 = vld [vmem:[%s694_s0 + $0x27] sm:$0x1]   ;;  %v416_v52 = vld [vmem:[%s694_s0 + $0x1a] sm:$0x1]  }
  0x17   :  { %s513_s6 = smov 4   ;;  %v417_v53 = vld [vmem:[%s694_s0 + $0xd] sm:$0x1]   ;;  %s514_s0 = smov 2   ;;  %vm16_vm4 = vcmask 1048544   ;;  %vm44_vm5 = vcmask 1048512  }
  0x18   :  { %95 = vrot.lane.b32.xlu0 %v381_v16, %s478_s17  ;;  %102 = vrot.lane.b32.xlu1 %v382_v17, %s479_s18  ;;  %s507_s17 = smov 20   ;;  %vm30_vm6 = vcmask 1048528   ;;  %vm41_vm7 = vcmask 15360   ;;  %vm50_vm8 = vcmask 1015696   ;;  %vm57_vm9 = vcmask 999296  }
  0x19   :  { %vm64_vm10 = vcmask 982896   ;;  %vm70_vm11 = vcmask 933696   ;;  %vm77_vm12 = vcmask 917296   ;;  %vm84_vm13 = vcmask 900896  }
  0x1a   :  { %vm90_vm14 = vcmask 851696   ;;  %vm97_vm15 = vcmask 835296   ;;  %vm110_vm1 = vcmask 786096   ;;  %vm124_vm3 = vcmask 753296  }
  0x1c   :  { %108 = vrot.lane.b32.xlu0 %v383_v18, %s480_s25  ;;  %115 = vrot.lane.b32.xlu1 %v384_v19, %s481_s26  ;;  %s490_s26 = smov 62  }
  0x20   :  { %122 = vrot.lane.b32.xlu0 %v385_v21, %s482_s2  ;;  %129 = vrot.lane.b32.xlu1 %v386_v22, %s483_s3  ;;  %s492_s3 = smov 56  }
  0x24   :  { %135 = vrot.lane.b32.xlu0 %v387_v23, %s484_s8  ;;  %142 = vrot.lane.b32.xlu1 %v388_v24, %s485_s9  ;;  %s494_s9 = smov 52  }
  0x28   :  { %149 = vrot.lane.b32.xlu0 %v389_v25, %s486_s14  ;;  %156 = vrot.lane.b32.xlu1 %v390_v26, %s487_s15  ;;  %s496_s15 = smov 46  }
  0x2c   :  { %162 = vrot.lane.b32.xlu0 %v391_v27, %s488_s20  ;;  %169 = vrot.lane.b32.xlu1 %v392_v28, %s489_s21  ;;  %s498_s21 = smov 42  }
  0x30   :  { %176 = vrot.lane.b32.xlu0 %v393_v29, %s490_s26  ;;  %183 = vrot.lane.b32.xlu1 %v394_v30, %s491_s27  ;;  %s500_s27 = smov 36  }
  0x34   :  { %189 = vrot.lane.b32.xlu0 %v395_v31, %s492_s3  ;;  %196 = vrot.lane.b32.xlu1 %v396_v32, %s493_s4  ;;  %s502_s4 = smov 32  }
  0x38   :  { %203 = vrot.lane.b32.xlu0 %v397_v33, %s494_s9  ;;  %210 = vrot.lane.b32.xlu1 %v398_v34, %s495_s10  ;;  %s504_s10 = smov 26  }
  0x3c   :  { %216 = vrot.lane.b32.xlu0 %v399_v35, %s496_s15  ;;  %223 = vrot.lane.b32.xlu1 %v400_v36, %s497_s16  ;;  %s506_s16 = smov 22  }
  0x40   :  { %230 = vrot.lane.b32.xlu0 %v401_v37, %s498_s21  ;;  %237 = vrot.lane.b32.xlu1 %v402_v38, %s499_s22  ;;  %s508_s22 = smov 16  }
  0x44   :  { %243 = vrot.lane.b32.xlu0 %v403_v39, %s500_s27  ;;  %250 = vrot.lane.b32.xlu1 %v404_v40, %s501_s28  ;;  %s510_s28 = smov 12  }
  0x48   :  { %257 = vrot.lane.b32.xlu0 %v405_v41, %s502_s4  ;;  %264 = vrot.lane.b32.xlu1 %v406_v42, %s503_s5  ;;  %s512_s5 = smov 6  }
  0x4c   :  { %270 = vrot.lane.b32.xlu0 %v407_v43, %s504_s10  ;;  %277 = vrot.lane.b32.xlu1 %v408_v44, %s505_s11 }
  0x50   :  { %284 = vrot.lane.b32.xlu0 %v409_v45, %s506_s16  ;;  %291 = vrot.lane.b32.xlu1 %v410_v46, %s507_s17 }
  0x54   :  { %297 = vrot.lane.b32.xlu0 %v411_v47, %s508_s22  ;;  %304 = vrot.lane.b32.xlu1 %v412_v48, %s509_s23 }
  0x58   :  { %311 = vrot.lane.b32.xlu0 %v413_v49, %s510_s28  ;;  %318 = vrot.lane.b32.xlu1 %v414_v50, %s511_s29 }
  0x5c   :  { %324 = vrot.lane.b32.xlu0 %v415_v51, %s512_s5  ;;  %331 = vrot.lane.b32.xlu1 %v416_v52, %s513_s6 }
  0x60   :  { %338 = vrot.lane.b32.xlu0 %v417_v53, %s514_s0 }
  0x76   :  { %v12_v54 = vpop.permute.xlu0 %11   ;;  %v40_v55 = vpop.permute.xlu1 %39  }
  0x77   :  { %15 = vst.msk [vmem:[#allocation0 + $0x18] sm:$0x1] %vm13_vm2, %v12_v54   ;;  %vm117_vm2 = vcmask 769696  }
  0x78   :  { %18 = vst.msk [vmem:[#allocation0 + $0x10] sm:$0x1] %vm16_vm4, %v12_v54   ;;  %vm131_vm4 = vcmask 736896  }
  0x79   :  { %45 = vst.msk [vmem:[#allocation0] sm:$0x1] %vm44_vm5, %v40_v55   ;;  %vm137_vm5 = vcmask 704096  }
  0x7a   :  { %v26_v56 = vpop.permute.xlu0 %25   ;;  %v49_v57 = vpop.permute.xlu1 %48  }
  0x7b   :  { %29 = vst.msk [vmem:[#allocation0 + $0x10] sm:$0x1] %vm9_vm0, %v26_v56   ;;  %vm104_vm0 = vcmask 818896  }
  0x7c   :  { %32 = vst.msk [vmem:[#allocation0 + $0x8] sm:$0x1] %vm30_vm6, %v26_v56   ;;  %vm144_vm6 = vcmask 687696  }
  0x7d   :  { %43 = vst.msk [vmem:[#allocation0 + $0x8] sm:$0x1] %vm41_vm7, %v40_v55   ;;  %vm151_vm7 = vcmask 671296  }
  0x7e   :  { %52 = vst.msk [vmem:[#allocation0 + $0x10] sm:$0x1] %vm50_vm8, %v49_v57   ;;  %v56_v58 = vpop.permute.xlu0 %55   ;;  %v63_v59 = vpop.permute.xlu1 %62   ;;  %vm158_vm8 = vcmask 654896  }
  0x7f   :  { %59 = vst.msk [vmem:[#allocation0 + $0x8] sm:$0x1] %vm57_vm9, %v56_v58   ;;  %vm164_vm9 = vcmask 622096  }
  0x80   :  { %65 = vst.msk [vmem:[#allocation0] sm:$0x1] %vm64_vm10, %v63_v59   ;;  %vm171_vm10 = vcmask 605696  }
  0x82   :  { %v69_v60 = vpop.permute.xlu0 %68   ;;  %v76_v61 = vpop.permute.xlu1 %75  }
  0x83   :  { %72 = vst.msk [vmem:[#allocation0 + $0x10] sm:$0x1] %vm70_vm11, %v69_v60   ;;  %vm178_vm11 = vcmask 589296  }
  0x84   :  { %79 = vst.msk [vmem:[#allocation0 + $0x8] sm:$0x1] %vm77_vm12, %v76_v61   ;;  %vm185_vm12 = vcmask 572896  }
  0x86   :  { %v83_v62 = vpop.permute.xlu0 %82   ;;  %v89_v63 = vpop.permute.xlu1 %88  }
  0x87   :  { %85 = vst.msk [vmem:[#allocation0] sm:$0x1] %vm84_vm13, %v83_v62   ;;  %vm191_vm13 = vcmask 540096  }
  0x88   :  { %92 = vst.msk [vmem:[#allocation0 + $0x10] sm:$0x1] %vm90_vm14, %v89_v63   ;;  %vm198_vm14 = vcmask 523696  }
  0x8a   :  { %v96_v0 = vpop.permute.xlu0 %95   ;;  %v103_v1 = vpop.permute.xlu1 %102  }
  0x8b   :  { %99 = vst.msk [vmem:[#allocation0 + $0x8] sm:$0x1] %vm97_vm15, %v96_v0   ;;  %vm205_vm15 = vcmask 507296  }
  0x8c   :  { %105 = vst.msk [vmem:[#allocation0] sm:$0x1] %vm104_vm0, %v103_v1   ;;  %vm212_vm0 = vcmask 490896  }
  0x8e   :  { %v109_v2 = vpop.permute.xlu0 %108   ;;  %v116_v3 = vpop.permute.xlu1 %115  }
  0x8f   :  { %112 = vst.msk [vmem:[#allocation0 + $0x18] sm:$0x1] %vm110_vm1, %v109_v2   ;;  %vm218_vm1 = vcmask 458096  }
  0x90   :  { %119 = vst.msk [vmem:[#allocation0 + $0x10] sm:$0x1] %vm117_vm2, %v116_v3   ;;  %vm225_vm2 = vcmask 441696  }
  0x92   :  { %v123_v4 = vpop.permute.xlu0 %122   ;;  %v130_v5 = vpop.permute.xlu1 %129  }
  0x93   :  { %126 = vst.msk [vmem:[#allocation0 + $0x8] sm:$0x1] %vm124_vm3, %v123_v4   ;;  %vm232_vm3 = vcmask 425296  }
  0x94   :  { %132 = vst.msk [vmem:[#allocation0] sm:$0x1] %vm131_vm4, %v130_v5   ;;  %vm239_vm4 = vcmask 408896  }
  0x96   :  { %v136_v6 = vpop.permute.xlu0 %135   ;;  %v143_v7 = vpop.permute.xlu1 %142  }
  0x97   :  { %139 = vst.msk [vmem:[#allocation0 + $0x18] sm:$0x1] %vm137_vm5, %v136_v6   ;;  %vm245_vm5 = vcmask 376096  }
  0x98   :  { %146 = vst.msk [vmem:[#allocation0 + $0x10] sm:$0x1] %vm144_vm6, %v143_v7   ;;  %vm252_vm6 = vcmask 359696  }
  0x9a   :  { %v150_v8 = vpop.permute.xlu0 %149   ;;  %v157_v9 = vpop.permute.xlu1 %156  }
  0x9b   :  { %153 = vst.msk [vmem:[#allocation0 + $0x8] sm:$0x1] %vm151_vm7, %v150_v8   ;;  %vm259_vm7 = vcmask 343296  }
  0x9c   :  { %159 = vst.msk [vmem:[#allocation0] sm:$0x1] %vm158_vm8, %v157_v9   ;;  %vm266_vm8 = vcmask 326896  }
  0x9e   :  { %v163_v10 = vpop.permute.xlu0 %162   ;;  %v170_v11 = vpop.permute.xlu1 %169  }
  0x9f   :  { %166 = vst.msk [vmem:[#allocation0 + $0x18] sm:$0x1] %vm164_vm9, %v163_v10   ;;  %vm272_vm9 = vcmask 294096  }
  0xa0   :  { %173 = vst.msk [vmem:[#allocation0 + $0x10] sm:$0x1] %vm171_vm10, %v170_v11   ;;  %vm279_vm10 = vcmask 277696  }
  0xa2   :  { %v177_v12 = vpop.permute.xlu0 %176   ;;  %v184_v13 = vpop.permute.xlu1 %183  }
  0xa3   :  { %180 = vst.msk [vmem:[#allocation0 + $0x8] sm:$0x1] %vm178_vm11, %v177_v12   ;;  %vm286_vm11 = vcmask 261296  }
  0xa4   :  { %186 = vst.msk [vmem:[#allocation0] sm:$0x1] %vm185_vm12, %v184_v13   ;;  %vm293_vm12 = vcmask 244896  }
  0xa6   :  { %v190_v14 = vpop.permute.xlu0 %189   ;;  %v197_v15 = vpop.permute.xlu1 %196  }
  0xa7   :  { %193 = vst.msk [vmem:[#allocation0 + $0x18] sm:$0x1] %vm191_vm13, %v190_v14   ;;  %vm299_vm13 = vcmask 212096  }
  0xa8   :  { %200 = vst.msk [vmem:[#allocation0 + $0x10] sm:$0x1] %vm198_vm14, %v197_v15   ;;  %vm306_vm14 = vcmask 195696  }
  0xaa   :  { %v204_v16 = vpop.permute.xlu0 %203   ;;  %v211_v17 = vpop.permute.xlu1 %210  }
  0xab   :  { %207 = vst.msk [vmem:[#allocation0 + $0x8] sm:$0x1] %vm205_vm15, %v204_v16   ;;  %vm313_vm15 = vcmask 179296  }
  0xac   :  { %213 = vst.msk [vmem:[#allocation0] sm:$0x1] %vm212_vm0, %v211_v17   ;;  %vm320_vm0 = vcmask 162896  }
  0xae   :  { %v217_v18 = vpop.permute.xlu0 %216   ;;  %v224_v19 = vpop.permute.xlu1 %223  }
  0xaf   :  { %220 = vst.msk [vmem:[#allocation0 + $0x18] sm:$0x1] %vm218_vm1, %v217_v18   ;;  %vm326_vm1 = vcmask 130096  }
  0xb0   :  { %227 = vst.msk [vmem:[#allocation0 + $0x10] sm:$0x1] %vm225_vm2, %v224_v19   ;;  %vm333_vm2 = vcmask 113696  }
  0xb2   :  { %v231_v20 = vpop.permute.xlu0 %230   ;;  %v238_v21 = vpop.permute.xlu1 %237  }
  0xb3   :  { %234 = vst.msk [vmem:[#allocation0 + $0x8] sm:$0x1] %vm232_vm3, %v231_v20   ;;  %vm340_vm3 = vcmask 97296  }
  0xb4   :  { %240 = vst.msk [vmem:[#allocation0] sm:$0x1] %vm239_vm4, %v238_v21  }
  0xb6   :  { %v244_v22 = vpop.permute.xlu0 %243   ;;  %v251_v23 = vpop.permute.xlu1 %250  }
  0xb7   :  { %247 = vst.msk [vmem:[#allocation0 + $0x18] sm:$0x1] %vm245_vm5, %v244_v22  }
  0xb8   :  { %254 = vst.msk [vmem:[#allocation0 + $0x10] sm:$0x1] %vm252_vm6, %v251_v23  }
  0xba   :  { %v258_v24 = vpop.permute.xlu0 %257   ;;  %v265_v25 = vpop.permute.xlu1 %264  }
  0xbb   :  { %261 = vst.msk [vmem:[#allocation0 + $0x8] sm:$0x1] %vm259_vm7, %v258_v24  }
  0xbc   :  { %267 = vst.msk [vmem:[#allocation0] sm:$0x1] %vm266_vm8, %v265_v25  }
  0xbe   :  { %v271_v26 = vpop.permute.xlu0 %270   ;;  %v278_v27 = vpop.permute.xlu1 %277  }
  0xbf   :  { %274 = vst.msk [vmem:[#allocation0 + $0x18] sm:$0x1] %vm272_vm9, %v271_v26  }
  0xc0   :  { %281 = vst.msk [vmem:[#allocation0 + $0x10] sm:$0x1] %vm279_vm10, %v278_v27  }
  0xc2   :  { %v285_v28 = vpop.permute.xlu0 %284   ;;  %v292_v29 = vpop.permute.xlu1 %291  }
  0xc3   :  { %288 = vst.msk [vmem:[#allocation0 + $0x8] sm:$0x1] %vm286_vm11, %v285_v28  }
  0xc4   :  { %294 = vst.msk [vmem:[#allocation0] sm:$0x1] %vm293_vm12, %v292_v29  }
  0xc6   :  { %v298_v30 = vpop.permute.xlu0 %297   ;;  %v305_v31 = vpop.permute.xlu1 %304  }
  0xc7   :  { %301 = vst.msk [vmem:[#allocation0 + $0x18] sm:$0x1] %vm299_vm13, %v298_v30  }
  0xc8   :  { %308 = vst.msk [vmem:[#allocation0 + $0x10] sm:$0x1] %vm306_vm14, %v305_v31  }
  0xca   :  { %v312_v32 = vpop.permute.xlu0 %311   ;;  %v319_v33 = vpop.permute.xlu1 %318  }
  0xcb   :  { %315 = vst.msk [vmem:[#allocation0 + $0x8] sm:$0x1] %vm313_vm15, %v312_v32  }
  0xcc   :  { %321 = vst.msk [vmem:[#allocation0] sm:$0x1] %vm320_vm0, %v319_v33  }
  0xce   :  { %v325_v34 = vpop.permute.xlu0 %324   ;;  %v332_v35 = vpop.permute.xlu1 %331  }
  0xcf   :  { %328 = vst.msk [vmem:[#allocation0 + $0x18] sm:$0x1] %vm326_vm1, %v325_v34  }
  0xd0   :  { %335 = vst.msk [vmem:[#allocation0 + $0x10] sm:$0x1] %vm333_vm2, %v332_v35  }
  0xd2   :  { %v339_v36 = vpop.permute.xlu0 %338  }
  0xd3   :  { %v346_v37 = vld [vmem:[#allocation0] sm:$0x1]  ;;  %342 = vst.msk [vmem:[#allocation0 + $0x8] sm:$0x1] %vm340_vm3, %v339_v36  }
  0xd4   :  { %348 = vst [vmem:[%s695_s1] sm:$0x1] %v346_v37 }
  0xd6   :  { %v361_v38 = vld [vmem:[#allocation0 + $0x18] sm:$0x1] }
  0xd7   :  { %420 = vst [vmem:[%s695_s1 + $0x3] sm:$0x1] %v361_v38  ;;  %v355_v39 = vld [vmem:[#allocation0 + $0x10] sm:$0x1] }
  0xd8   :  { %419 = vst [vmem:[%s695_s1 + $0x2] sm:$0x1] %v355_v39 }
  0xda   :  { %v350_v40 = vld [vmem:[#allocation0 + $0x8] sm:$0x1] }
  0xdb   :  { %418 = vst [vmem:[%s695_s1 + $0x1] sm:$0x1] %v350_v40 }

// kernel: tile.18
= control target key start
LH: loop header
LB: loop body
LE: loop exit
PB: predicated region body
PF: predicated region fallthrough
CT: control target
= control target key end

     0   :  { %s28_s0 = inlined_call_operand.vmem [shape: f32[20], index: 0, kind: input, shape index: {}]   ;;  %s29_s1 = inlined_call_operand.vmem [shape: f32[16,20], index: 1, kind: output, shape index: {}]  }
   0x1   :  { %v4_v0 = vld [vmem:[%s28_s0] ss:$0 sm:$0xff] }
   0x2   :  { %5 = vst [vmem:[%s29_s1] sm:$0xff] %v4_v0  ;;  %8 = vst [vmem:[%s29_s1 + $0x8] sm:$0xff] %v4_v0 }

// kernel: tile.19
= control target key start
LH: loop header
LB: loop body
LE: loop exit
PB: predicated region body
PF: predicated region fallthrough
CT: control target
= control target key end

     0   :  { %vm9_vm0 = vcmask 64512   ;;  %vm22_vm1 = vcmask 130048   ;;  %s170_s14 = smov 120   ;;  %s171_s15 = smov 100   ;;  %vm3_vm2 = vcmask 162816   ;;  %vm13_vm3 = vcmask 97280   ;;  %s258_s0 = inlined_call_operand.vmem [shape: f32[16,20], index: 0, kind: input, shape index: {}]   ;;  %s259_s1 = inlined_call_operand.vmem [shape: f32[1,320], index: 1, kind: output, shape index: {}]  }
   0x1   :  { %v136_v0 = vld [vmem:[%s258_s0 + $0x6] sm:$0x1]   ;;  %v140_v3 = vld [vmem:[%s258_s0 + $0x5] sm:$0x1]   ;;  %v138_v4 = vld [vmem:[%s258_s0 + $0xc] sm:$0x1]  }
   0x2   :  { %v137_v1 = vld [vmem:[%s258_s0 + $0x6] sm:$0x1]   ;;  %34 = vrot.lane.b32.xlu1 %v140_v3, %s171_s15  ;;  %v139_v5 = vld [vmem:[%s258_s0 + $0xc] sm:$0x1]   ;;  %v141_v7 = vld [vmem:[%s258_s0 + $0xb] sm:$0x1]  }
   0x3   :  { %v10_v2 = vsel %vm9_vm0, %v137_v1, %v136_v0  ;;  %v23_v6 = vsel %vm22_vm1, %v139_v5, %v138_v4  ;;  %s172_s20 = smov 112   ;;  %s173_s21 = smov 92   ;;  %v142_v8 = vld [vmem:[%s258_s0 + $0x4] sm:$0x1]   ;;  %v143_v9 = vld [vmem:[%s258_s0 + $0xa] sm:$0x1]  }
   0x4   :  { %11 = vrot.lane.b32.xlu0 %v10_v2, %s170_s14  ;;  %v2_v10 = vld [vmem:[%s258_s0] sm:$0x1]   ;;  %s174_s28 = smov 80   ;;  %s175_s29 = smov 72   ;;  %v144_v11 = vld [vmem:[%s258_s0 + $0x3] sm:$0x1]  }
   0x5   :  { %4 = vst.msk [vmem:[#allocation0] sm:$0x1] %vm3_vm2, %v2_v10   ;;  %v145_v12 = vld [vmem:[%s258_s0 + $0x9] sm:$0x1]   ;;  %s176_s5 = smov 60   ;;  %s177_s6 = smov 52  }
   0x6   :  { %40 = vrot.lane.b32.xlu1 %v141_v7, %s173_s21  ;;  %v146_v13 = vld [vmem:[%s258_s0 + $0xf] sm:$0x1]   ;;  %v147_v14 = vld [vmem:[%s258_s0 + $0x2] sm:$0x1]   ;;  %s178_s11 = smov 44   ;;  %s179_s12 = smov 40  }
   0x7   :  { %v148_v15 = vld [vmem:[%s258_s0 + $0x8] sm:$0x1]   ;;  %v149_v16 = vld [vmem:[%s258_s0 + $0xe] sm:$0x1]   ;;  %s180_s17 = smov 32   ;;  %s181_s18 = smov 24  }
   0x8   :  { %24 = vrot.lane.b32.xlu0 %v23_v6, %s172_s20  ;;  %v150_v17 = vld [vmem:[%s258_s0 + $0x1] sm:$0x1]   ;;  %v151_v18 = vld [vmem:[%s258_s0 + $0x7] sm:$0x1]   ;;  %s182_s23 = smov 20   ;;  %s183_s24 = smov 12  }
   0x9   :  { %v152_v19 = vld [vmem:[%s258_s0 + $0xd] sm:$0x1]   ;;  %s184_s0 = smov 4   ;;  %vm16_vm4 = vcmask 1048512   ;;  %vm36_vm5 = vcmask 982816   ;;  %vm26_vm6 = vcmask 31744  }
   0xa   :  { %53 = vrot.lane.b32.xlu1 %v143_v9, %s175_s29  ;;  %vm29_vm7 = vcmask 1048448   ;;  %vm42_vm8 = vcmask 917216   ;;  %vm49_vm9 = vcmask 818816   ;;  %vm55_vm10 = vcmask 753216  }
   0xb   :  { %vm62_vm11 = vcmask 654816   ;;  %vm68_vm12 = vcmask 589216   ;;  %vm75_vm13 = vcmask 523616   ;;  %vm82_vm14 = vcmask 490816  }
   0xc   :  { %47 = vrot.lane.b32.xlu0 %v142_v8, %s174_s28  ;;  %vm88_vm15 = vcmask 425216   ;;  %vm95_vm0 = vcmask 359616   ;;  %vm102_vm1 = vcmask 326816   ;;  %vm108_vm2 = vcmask 261216  }
   0xe   :  { %66 = vrot.lane.b32.xlu1 %v145_v12, %s177_s6 }
  0x10   :  { %60 = vrot.lane.b32.xlu0 %v144_v11, %s176_s5 }
  0x12   :  { %80 = vrot.lane.b32.xlu1 %v147_v14, %s179_s12 }
  0x14   :  { %73 = vrot.lane.b32.xlu0 %v146_v13, %s178_s11 }
  0x16   :  { %93 = vrot.lane.b32.xlu1 %v149_v16, %s181_s18 }
  0x18   :  { %86 = vrot.lane.b32.xlu0 %v148_v15, %s180_s17 }
  0x1a   :  { %106 = vrot.lane.b32.xlu1 %v151_v18, %s183_s24 }
  0x1c   :  { %100 = vrot.lane.b32.xlu0 %v150_v17, %s182_s23 }
  0x20   :  { %113 = vrot.lane.b32.xlu0 %v152_v19, %s184_s0 }
  0x74   :  { %v35_v21 = vpop.permute.xlu1 %34  }
  0x76   :  { %v12_v20 = vpop.permute.xlu0 %11  }
  0x77   :  { %15 = vst.msk [vmem:[#allocation0 + $0x8] sm:$0x1] %vm13_vm3, %v12_v20   ;;  %vm115_vm3 = vcmask 195616  }
  0x78   :  { %17 = vst.msk [vmem:[#allocation0] sm:$0x1] %vm16_vm4, %v12_v20   ;;  %v41_v23 = vpop.permute.xlu1 %40  }
  0x79   :  { %37 = vst.msk [vmem:[#allocation0] sm:$0x1] %vm36_vm5, %v35_v21  }
  0x7a   :  { %v25_v22 = vpop.permute.xlu0 %24  }
  0x7b   :  { %28 = vst.msk [vmem:[#allocation0 + $0x10] sm:$0x1] %vm26_vm6, %v25_v22  }
  0x7c   :  { %31 = vst.msk [vmem:[#allocation0 + $0x8] sm:$0x1] %vm29_vm7, %v25_v22   ;;  %v54_v25 = vpop.permute.xlu1 %53  }
  0x7d   :  { %44 = vst.msk [vmem:[#allocation0 + $0x8] sm:$0x1] %vm42_vm8, %v41_v23  }
  0x7e   :  { %v48_v24 = vpop.permute.xlu0 %47   ;;  %57 = vst.msk [vmem:[#allocation0 + $0x8] sm:$0x1] %vm55_vm10, %v54_v25  }
  0x7f   :  { %50 = vst.msk [vmem:[#allocation0] sm:$0x1] %vm49_vm9, %v48_v24  }
  0x80   :  { %v67_v27 = vpop.permute.xlu1 %66  }
  0x81   :  { %70 = vst.msk [vmem:[#allocation0 + $0x8] sm:$0x1] %vm68_vm12, %v67_v27  }
  0x82   :  { %v61_v26 = vpop.permute.xlu0 %60  }
  0x83   :  { %63 = vst.msk [vmem:[#allocation0] sm:$0x1] %vm62_vm11, %v61_v26  }
  0x84   :  { %v81_v29 = vpop.permute.xlu1 %80  }
  0x85   :  { %83 = vst.msk [vmem:[#allocation0] sm:$0x1] %vm82_vm14, %v81_v29  }
  0x86   :  { %v74_v28 = vpop.permute.xlu0 %73  }
  0x87   :  { %77 = vst.msk [vmem:[#allocation0 + $0x10] sm:$0x1] %vm75_vm13, %v74_v28  }
  0x88   :  { %v94_v31 = vpop.permute.xlu1 %93  }
  0x89   :  { %97 = vst.msk [vmem:[#allocation0 + $0x10] sm:$0x1] %vm95_vm0, %v94_v31  }
  0x8a   :  { %v87_v30 = vpop.permute.xlu0 %86  }
  0x8b   :  { %90 = vst.msk [vmem:[#allocation0 + $0x8] sm:$0x1] %vm88_vm15, %v87_v30  }
  0x8c   :  { %v107_v33 = vpop.permute.xlu1 %106  }
  0x8d   :  { %110 = vst.msk [vmem:[#allocation0 + $0x8] sm:$0x1] %vm108_vm2, %v107_v33  }
  0x8e   :  { %v101_v32 = vpop.permute.xlu0 %100  }
  0x8f   :  { %103 = vst.msk [vmem:[#allocation0] sm:$0x1] %vm102_vm1, %v101_v32  }
  0x92   :  { %v114_v34 = vpop.permute.xlu0 %113  }
  0x93   :  { %117 = vst.msk [vmem:[#allocation0 + $0x10] sm:$0x1] %vm115_vm3, %v114_v34  }
  0x94   :  { %v125_v36 = vld [vmem:[#allocation0 + $0x8] sm:$0x1] }
  0x95   :  { %153 = vst [vmem:[%s259_s1 + $0x1] sm:$0x1] %v125_v36 }
  0x96   :  { %v121_v35 = vld [vmem:[#allocation0] sm:$0x1] }
  0x97   :  { %123 = vst [vmem:[%s259_s1] sm:$0x1] %v121_v35 }
  0x9a   :  { %v130_v37 = vld [vmem:[#allocation0 + $0x10] sm:$0x1] }
  0x9b   :  { %154 = vst [vmem:[%s259_s1 + $0x2] sm:$0x1] %v130_v37 }

// kernel: cnn_forward.1
= control target key start
LH: loop header
LB: loop body
LE: loop exit
PB: predicated region body
PF: predicated region fallthrough
CT: control target
= control target key end

     0   :  { %v6391_v2 = vmov 0.0   ;;  %s6392_s13 = smov 100   ;;  %vm140_vm0 = vcmask 1043456   ;;  %vm6393_vm1 = vmmov 1   ;;  %vm115_vm3 = vcmask 228352   ;;  %s6399_s19 = smov 48   ;;  %s8887_s0 = inlined_call_operand.vmem [shape: f32[14,8,56], index: 0, kind: input, shape index: {}]   ;;  %s8888_s1 = inlined_call_operand.vmem [shape: f32[6,28,480], index: 1, kind: input, shape index: {}]   ;;  %s8889_s2 = inlined_call_operand.vmem [shape: f32[1,480], index: 2, kind: input, shape index: {}]   ;;  %s8890_s3 = inlined_call_operand.vmem [shape: f32[6,120,320], index: 3, kind: input, shape index: {}]   ;;  %s8891_s4 = inlined_call_operand.vmem [shape: f32[1,320], index: 4, kind: input, shape index: {}]   ;;  %s8892_s5 = inlined_call_operand.vmem [shape: f32[4,80,50], index: 5, kind: input, shape index: {}]   ;;  %s8893_s7 = inlined_call_operand.vmem [shape: f32[50,10], index: 7, kind: input, shape index: {}]   ;;  %s8894_s6 = inlined_call_operand.vmem [shape: f32[1,50], index: 6, kind: input, shape index: {}]   ;;  %s8895_s8 = inlined_call_operand.vmem [shape: f32[1,10], index: 8, kind: input, shape index: {}]   ;;  %s8896_s9 = inlined_call_operand.vmem [shape: f32[8,10], index: 9, kind: output, shape index: {}]  }
   0x1   :  { %v6453_v0 = vld [vmem:[%s8887_s0] sm:$0xff]  ;;  %v6458_v1 = vld [vmem:[%s8887_s0 + $0x10] sm:$0xff]  ;;  %217 = vmatprep.mubr.f32.mxu0 %v6391_v2  ;;  %354 = vmatprep.mubr.f32.mxu1 %v6391_v2  ;;  %v6469_v3 = vld [vmem:[%s8887_s0 + $0x8] sm:$0xff]  ;;  %vm2333_vm4 = vcmask 130048   ;;  %vm2478_vm5 = vcmask 64512   ;;  %vm2618_vm6 = vcmask 982016  }
   0x2   :  { %91 = vrot.lane.b32.xlu0 %v6453_v0, %s6392_s13  ;;  %95 = vrot.lane.b32.xlu1 %v6458_v1, %s6392_s13  ;;  %v6474_v4 = vld [vmem:[%s8887_s0 + $0x18] sm:$0xff]  ;;  %v6479_v5 = vld [vmem:[%s8887_s0 + $0x20] sm:$0xff]  ;;  %vm6502_vm2 = vmpackc.low %vm140_vm0, %vm6393_vm1  ;;  %vm6398_vm7 = vmmov 0   ;;  %vm3984_vm8 = vcmask 785408   ;;  %vm4029_vm9 = vcmask 392192   ;;  %vm4067_vm10 = vcmask 654336  }
   0x3   :  { %v6484_v6 = vld [vmem:[%s8887_s0 + $0x28] sm:$0xff]  ;;  %v4503_v10 = vld [vmem:[%s8888_s1 + $0x80] sm:$0xff]  ;;  %v4506_v14 = vld [vmem:[%s8888_s1 + $0x98] sm:$0xff]  ;;  %vm4411_vm11 = vcmask 1041408   ;;  %vm4407_vm12 = vcmask 408576   ;;  %vm4485_vm13 = vcmask 80896  }
   0x4   :  { %v4504_v7 = vld [vmem:[%s8888_s1 + $0x88] sm:$0xff]  ;;  %v4507_v11 = vld [vmem:[%s8888_s1 + $0xa0] sm:$0xff]  ;;  %v4510_v15 = vld [vmem:[%s8888_s1 + $0xb8] sm:$0xff] }
   0x5   :  { %v4508_v8 = vld [vmem:[%s8888_s1 + $0xa8] sm:$0xff]  ;;  %v5555_v13 = vpack.c.bf16 %v4507_v11, %v4503_v10  ;;  %v4505_v16 = vld [vmem:[%s8888_s1 + $0x90] sm:$0xff]  ;;  %v5563_v17 = vpack.c.bf16 %v4510_v15, %v4506_v14  ;;  %v6532_v22 = vld [vmem:[%s8887_s0 + $0x38] sm:$0xff] }
   0x6   :  { %93 = vrot.lane.b32.xlu0 %v6469_v3, %s6392_s13  ;;  %97 = vrot.lane.b32.xlu1 %v6474_v4, %s6392_s13  ;;  %v5553_v9 = vpack.c.bf16 %v4508_v8, %v4504_v7  ;;  %v4509_v18 = vld [vmem:[%s8888_s1 + $0xb0] sm:$0xff]  ;;  %v4512_v19 = vld [vmem:[%s8888_s1 + $0xc8] sm:$0xff] }
   0x7   :  { %v4516_v20 = vld [vmem:[%s8888_s1 + $0xe8] sm:$0xf]  ;;  %v6527_v21 = vld [vmem:[%s8887_s0 + $0x30] sm:$0xff]  ;;  %v5565_v23 = vpack.c.bf16 %v4509_v18, %v4505_v16  ;;  %v4511_v25 = vld [vmem:[%s8888_s1 + $0xc0] sm:$0xff]  ;;  %5564 = vmatprep.subr.bf16.mxu1 %v5563_v17 }
   0x8   :  { %5554 = vmatprep.subr.bf16.mxu0 %v5553_v9  ;;  %v5557_v24 = vpack.c.bf16 %v4516_v20, %v4512_v19  ;;  %v4515_v26 = vld [vmem:[%s8888_s1 + $0xe0] sm:$0xf]  ;;  %v4514_v27 = vld [vmem:[%s8888_s1 + $0xd8] sm:$0xff]  ;;  %v4513_v30 = vld [vmem:[%s8888_s1 + $0xd0] sm:$0xff] }
   0x9   :  { %5556 = vmatpush1.bf16.msra.mxu0 %v5555_v13  ;;  %v5560_v28 = vpack.c.bf16 %v4515_v26, %v4511_v25  ;;  %v4518_v29 = vld [vmem:[%s8888_s1 + $0xf8] sm:$0xf]  ;;  %v4517_v32 = vld [vmem:[%s8888_s1 + $0xf0] sm:$0xf]  ;;  %v47_v33 = vld [vmem:[%s8888_s1 + $0x8] sm:$0xff]  ;;  %5566 = vmatpush1.bf16.msra.mxu1 %v5565_v23 }
   0xa   :  { %99 = vrot.lane.b32.xlu0 %v6479_v5, %s6392_s13  ;;  %101 = vrot.lane.b32.xlu1 %v6484_v6, %s6392_s13  ;;  %v5567_v31 = vpack.c.bf16 %v4518_v29, %v4514_v27  ;;  %v51_v34 = vld [vmem:[%s8888_s1 + $0x28] sm:$0xff]  ;;  %v5570_v35 = vpack.c.bf16 %v4517_v32, %v4513_v30  ;;  %v49_v37 = vld [vmem:[%s8888_s1 + $0x18] sm:$0xff] }
   0xb   :  { %5559 = vmatprep.subr.msk.bf16.mxu0 %vm6502_vm2, %v5557_v24  ;;  %v5573_v36 = vpack.c.bf16 %v51_v34, %v47_v33  ;;  %v53_v38 = vld [vmem:[%s8888_s1 + $0x38] sm:$0xff]  ;;  %v6581_v40 = vld [vmem:[%s8887_s0 + $0x40] sm:$0xff]  ;;  %v6586_v41 = vld [vmem:[%s8887_s0 + $0x48] sm:$0xff] }
   0xc   :  { %5569 = vmatprep.subr.msk.bf16.mxu1 %vm6502_vm2, %v5567_v31  ;;  %v5583_v39 = vpack.c.bf16 %v53_v38, %v49_v37  ;;  %v6597_v42 = vld [vmem:[%s8887_s0 + $0x50] sm:$0xff]  ;;  %v6602_v43 = vld [vmem:[%s8887_s0 + $0x58] sm:$0xff]  ;;  %v6611_v44 = vld [vmem:[%s8887_s0 + $0x60] sm:$0xff] }
   0xd   :  { %5562 = vmatpush1.bf16.msk.msra.mxu0 %vm6502_vm2, %v5560_v28  ;;  %5572 = vmatpush1.bf16.msk.msra.mxu1 %vm6502_vm2, %v5570_v35  ;;  %v46_v45 = vld [vmem:[%s8888_s1] sm:$0xff]  ;;  %v48_v47 = vld [vmem:[%s8888_s1 + $0x10] sm:$0xff]  ;;  %v55_v49 = vld [vmem:[%s8888_s1 + $0x48] sm:$0xff] }
   0xe   :  { %103 = vrot.lane.b32.xlu0 %v6527_v21, %s6392_s13  ;;  %105 = vrot.lane.b32.xlu1 %v6532_v22, %s6392_s13  ;;  %v50_v46 = vld [vmem:[%s8888_s1 + $0x20] sm:$0xff]  ;;  %v52_v48 = vld [vmem:[%s8888_s1 + $0x30] sm:$0xff] }
   0xf   :  { %5574 = vmatprep.subr.bf16.mxu0 %v5573_v36  ;;  %5584 = vmatprep.subr.bf16.mxu1 %v5583_v39  ;;  %v59_v50 = vld [vmem:[%s8888_s1 + $0x68] sm:$0xf]  ;;  %v57_v51 = vld [vmem:[%s8888_s1 + $0x58] sm:$0xff]  ;;  %v5575_v53 = vpack.c.bf16 %v50_v46, %v46_v45  ;;  %v5585_v54 = vpack.c.bf16 %v52_v48, %v48_v47  ;;  %v54_v55 = vld [vmem:[%s8888_s1 + $0x40] sm:$0xff] }
  0x10   :  { %v61_v52 = vld [vmem:[%s8888_s1 + $0x78] sm:$0xf]  ;;  %v58_v56 = vld [vmem:[%s8888_s1 + $0x60] sm:$0xf]  ;;  %v5577_v58 = vpack.c.bf16 %v59_v50, %v55_v49  ;;  %v56_v60 = vld [vmem:[%s8888_s1 + $0x50] sm:$0xff] }
  0x11   :  { %v5587_v59 = vpack.c.bf16 %v61_v52, %v57_v51  ;;  %v60_v61 = vld [vmem:[%s8888_s1 + $0x70] sm:$0xf]  ;;  %v4576_v62 = vld [vmem:[%s8888_s1 + $0x108] sm:$0xff]  ;;  %v4578_v7 = vld [vmem:[%s8888_s1 + $0x118] sm:$0xff]  ;;  %v5580_v9 = vpack.c.bf16 %v58_v56, %v54_v55 }
  0x12   :  { %107 = vrot.lane.b32.xlu0 %v6581_v40, %s6392_s13  ;;  %109 = vrot.lane.b32.xlu1 %v6586_v41, %s6392_s13  ;;  %v4580_v63 = vld [vmem:[%s8888_s1 + $0x128] sm:$0xff]  ;;  %v4582_v8 = vld [vmem:[%s8888_s1 + $0x138] sm:$0xff]  ;;  %v5590_v10 = vpack.c.bf16 %v60_v61, %v56_v60 }
  0x13   :  { %v5593_v14 = vpack.c.bf16 %v4580_v63, %v4576_v62  ;;  %v5603_v15 = vpack.c.bf16 %v4582_v8, %v4578_v7  ;;  %v6756_v26 = vld [vmem:[%s8887_s0 + $0x68] sm:$0xff]  ;;  %v4575_v28 = vld [vmem:[%s8888_s1 + $0x100] sm:$0xff]  ;;  %v4577_v30 = vld [vmem:[%s8888_s1 + $0x110] sm:$0xff] }
  0x14   :  { %v4579_v29 = vld [vmem:[%s8888_s1 + $0x120] sm:$0xff]  ;;  %v4581_v31 = vld [vmem:[%s8888_s1 + $0x130] sm:$0xff]  ;;  %v4584_v32 = vld [vmem:[%s8888_s1 + $0x148] sm:$0xff] }
  0x15   :  { %v4588_v33 = vld [vmem:[%s8888_s1 + $0x168] sm:$0xf]  ;;  %v4586_v34 = vld [vmem:[%s8888_s1 + $0x158] sm:$0xff]  ;;  %v5595_v36 = vpack.c.bf16 %v4579_v29, %v4575_v28  ;;  %v5605_v37 = vpack.c.bf16 %v4581_v31, %v4577_v30  ;;  %v4583_v38 = vld [vmem:[%s8888_s1 + $0x140] sm:$0xff] }
  0x16   :  { %111 = vrot.lane.b32.xlu0 %v6597_v42, %s6392_s13  ;;  %113 = vrot.lane.b32.xlu1 %v6602_v43, %s6392_s13  ;;  %v4590_v35 = vld [vmem:[%s8888_s1 + $0x178] sm:$0xf]  ;;  %v4587_v39 = vld [vmem:[%s8888_s1 + $0x160] sm:$0xf]  ;;  %v5597_v45 = vpack.c.bf16 %v4588_v33, %v4584_v32 }
  0x17   :  { %v5607_v46 = vpack.c.bf16 %v4590_v35, %v4586_v34  ;;  %v4585_v47 = vld [vmem:[%s8888_s1 + $0x150] sm:$0xff]  ;;  %v4620_v49 = vld [vmem:[%s8888_s1 + $0x188] sm:$0xff]  ;;  %v4622_v51 = vld [vmem:[%s8888_s1 + $0x198] sm:$0xff] }
  0x18   :  { %v4589_v48 = vld [vmem:[%s8888_s1 + $0x170] sm:$0xf]  ;;  %v4624_v50 = vld [vmem:[%s8888_s1 + $0x1a8] sm:$0xff]  ;;  %v4626_v52 = vld [vmem:[%s8888_s1 + $0x1b8] sm:$0xff] }
  0x19   :  { %v5623_v55 = vpack.c.bf16 %v4626_v52, %v4622_v51  ;;  %v4619_v56 = vld [vmem:[%s8888_s1 + $0x180] sm:$0xff]  ;;  %v4628_v60 = vld [vmem:[%s8888_s1 + $0x1c8] sm:$0xff]  ;;  %v4630_v62 = vld [vmem:[%s8888_s1 + $0x1d8] sm:$0xff] }
  0x1a   :  { %1108 = vrot.lane.b32.xlu0 %v6611_v44, %s6392_s13  ;;  %1817 = vrot.lane.b32.xlu1 %v6756_v26, %s6392_s13  ;;  %v4632_v61 = vld [vmem:[%s8888_s1 + $0x1e8] sm:$0xf]  ;;  %v4634_v63 = vld [vmem:[%s8888_s1 + $0x1f8] sm:$0xf]  ;;  %s6395_s13 = smov 8  }
  0x1b   :  { %v4629_v28 = vld [vmem:[%s8888_s1 + $0x1d0] sm:$0xff]  ;;  %v4664_v30 = vld [vmem:[%s8888_s1 + $0x208] sm:$0xff]  ;;  %v4666_v32 = vld [vmem:[%s8888_s1 + $0x218] sm:$0xff] }
  0x1c   :  { %v4633_v29 = vld [vmem:[%s8888_s1 + $0x1f0] sm:$0xf]  ;;  %v4668_v31 = vld [vmem:[%s8888_s1 + $0x228] sm:$0xff]  ;;  %v4670_v33 = vld [vmem:[%s8888_s1 + $0x238] sm:$0xff] }
  0x1d   :  { %v5633_v35 = vpack.c.bf16 %v4668_v31, %v4664_v30  ;;  %v4671_v52 = vld [vmem:[%s8888_s1 + $0x240] sm:$0xff]  ;;  %v4722_v30 = vld [vmem:[%s8888_s1 + $0x2f8] sm:$0xf] }
  0x1e   :  { %v2155_v12 = vld [vmem:[%s8889_s2] sm:$0xf]  ;;  %s6394_s2 = smov 16  }
  0x74   :  { %v92_v57 = vpop.permute.xlu0 %91  ;;  %v6669_v13 = vpop.permute.xlu1 %95 }
  0x75   :  { %4521 = vmatmul.mubr.msk.f32.vlgmr.msra.gmra.mrb[0].mxu0 %vm115_vm3, %v92_v57  ;;  %4535 = vmatmul.mubr.msk.f32.vlgmr.msra.gmra.mrb[0].mxu1 %vm115_vm3, %v92_v57  ;;  %v4623_v57 = vld [vmem:[%s8888_s1 + $0x1a0] sm:$0xff] }
  0x76   :  { %5576 = vmatpush1.bf16.msra.mxu0 %v5575_v53  ;;  %223 = vmatprep.mubr.f32.mxu0 %v6391_v2  ;;  %v5600_v53 = vpack.c.bf16 %v4587_v39, %v4583_v38  ;;  %v5615_v7 = vpack.c.bf16 %v4623_v57, %v4619_v56  ;;  %v4667_v38 = vld [vmem:[%s8888_s1 + $0x220] sm:$0xff]  ;;  %v4665_v39 = vld [vmem:[%s8888_s1 + $0x210] sm:$0xff]  ;;  %v4708_v57 = vld [vmem:[%s8888_s1 + $0x288] sm:$0xff] }
  0x77   :  { %360 = vmatprep.mubr.f32.mxu1 %v6391_v2  ;;  %5586 = vmatpush1.bf16.msra.mxu1 %v5585_v54  ;;  %v5613_v54 = vpack.c.bf16 %v4624_v50, %v4620_v49  ;;  %v4678_v49 = vld [vmem:[%s8888_s1 + $0x278] sm:$0xf]  ;;  %v4677_v56 = vld [vmem:[%s8888_s1 + $0x270] sm:$0xf] }
  0x78   :  { %v6667_v11 = vpop.permute.xlu0 %93  ;;  %5579 = vmatprep.subr.msk.bf16.mxu0 %vm6502_vm2, %v5577_v58  ;;  %5589 = vmatprep.subr.msk.bf16.mxu1 %vm6502_vm2, %v5587_v59  ;;  %v6689_v16 = vpop.permute.xlu1 %97  ;;  %v4621_v58 = vld [vmem:[%s8888_s1 + $0x190] sm:$0xff] }
  0x79   :  { %4522 = vmatmul.mubr.msk.f32.gmra.mrb[2].mxu0 %vm115_vm3, %v6667_v11  ;;  %4536 = vmatmul.mubr.msk.f32.gmra.mrb[2].mxu1 %vm115_vm3, %v6667_v11  ;;  %v4625_v59 = vld [vmem:[%s8888_s1 + $0x1b0] sm:$0xff] }
  0x7a   :  { %229 = vmatprep.mubr.f32.mxu0 %v6391_v2  ;;  %366 = vmatprep.mubr.f32.mxu1 %v6391_v2  ;;  %v5625_v8 = vpack.c.bf16 %v4625_v59, %v4621_v58  ;;  %v4712_v58 = vld [vmem:[%s8888_s1 + $0x2a8] sm:$0xff]  ;;  %v4710_v59 = vld [vmem:[%s8888_s1 + $0x298] sm:$0xff] }
  0x7b   :  { %5582 = vmatpush1.bf16.msk.msra.mxu0 %vm6502_vm2, %v5580_v9  ;;  %5592 = vmatpush1.bf16.msk.msra.mxu1 %vm6502_vm2, %v5590_v10  ;;  %v4627_v9 = vld [vmem:[%s8888_s1 + $0x1c0] sm:$0xff] }
  0x7c   :  { %5594 = vmatprep.subr.bf16.mxu0 %v5593_v14  ;;  %5604 = vmatprep.subr.bf16.mxu1 %v5603_v15  ;;  %v6699_v17 = vpop.permute.xlu0 %99  ;;  %v6705_v18 = vpop.permute.xlu1 %101  ;;  %v4631_v10 = vld [vmem:[%s8888_s1 + $0x1e0] sm:$0xf]  ;;  %v5617_v14 = vpack.c.bf16 %v4632_v61, %v4628_v60  ;;  %v5627_v15 = vpack.c.bf16 %v4634_v63, %v4630_v62  ;;  %v4714_v60 = vld [vmem:[%s8888_s1 + $0x2b8] sm:$0xff]  ;;  %v5653_v62 = vpack.c.bf16 %v4712_v58, %v4708_v57 }
  0x7d   :  { %4523 = vmatmul.mubr.msk.f32.gmra.mrb[4].mxu0 %vm115_vm3, %v6669_v13  ;;  %4537 = vmatmul.mubr.msk.f32.gmra.mrb[4].mxu1 %vm115_vm3, %v6669_v13  ;;  %v5620_v34 = vpack.c.bf16 %v4631_v10, %v4627_v9  ;;  %v5663_v63 = vpack.c.bf16 %v4714_v60, %v4710_v59  ;;  %v4711_v9 = vld [vmem:[%s8888_s1 + $0x2a0] sm:$0xff]  ;;  %v4709_v10 = vld [vmem:[%s8888_s1 + $0x290] sm:$0xff] }
  0x7e   :  { %235 = vmatprep.mubr.f32.mxu0 %v6391_v2  ;;  %372 = vmatprep.mubr.f32.mxu1 %v6391_v2 }
  0x80   :  { %v6715_v19 = vpop.permute.xlu0 %103  ;;  %v6721_v20 = vpop.permute.xlu1 %105 }
  0x81   :  { %4524 = vmatmul.mubr.msk.f32.gmra.mrb[6].mxu0 %vm115_vm3, %v6689_v16  ;;  %4538 = vmatmul.mubr.msk.f32.gmra.mrb[6].mxu1 %vm115_vm3, %v6689_v16 }
  0x82   :  { %241 = vmatprep.mubr.f32.mxu0 %v6391_v2  ;;  %378 = vmatprep.mubr.f32.mxu1 %v6391_v2 }
  0x84   :  { %v6731_v23 = vpop.permute.xlu0 %107  ;;  %v6737_v24 = vpop.permute.xlu1 %109 }
  0x85   :  { %4525 = vmatmul.mubr.msk.f32.gmra.mrb[8].mxu0 %vm115_vm3, %v6699_v17  ;;  %4539 = vmatmul.mubr.msk.f32.gmra.mrb[8].mxu1 %vm115_vm3, %v6699_v17 }
  0x86   :  { %247 = vmatprep.mubr.f32.mxu0 %v6391_v2  ;;  %384 = vmatprep.mubr.f32.mxu1 %v6391_v2 }
  0x88   :  { %v6747_v25 = vpop.permute.xlu0 %111  ;;  %v6758_v27 = vpop.permute.xlu1 %113 }
  0x89   :  { %4526 = vmatmul.mubr.msk.f32.gmra.mrb[10].mxu0 %vm115_vm3, %v6705_v18  ;;  %4540 = vmatmul.mubr.msk.f32.gmra.mrb[10].mxu1 %vm115_vm3, %v6705_v18 }
  0x8a   :  { %253 = vmatprep.mubr.f32.mxu0 %v6391_v2  ;;  %390 = vmatprep.mubr.f32.mxu1 %v6391_v2 }
  0x8d   :  { %4527 = vmatmul.mubr.msk.f32.gmra.mrb[12].mxu0 %vm115_vm3, %v6715_v19  ;;  %4541 = vmatmul.mubr.msk.f32.gmra.mrb[12].mxu1 %vm115_vm3, %v6715_v19 }
  0x8e   :  { %259 = vmatprep.mubr.f32.mxu0 %v6391_v2  ;;  %396 = vmatprep.mubr.f32.mxu1 %v6391_v2 }
  0x91   :  { %4528 = vmatmul.mubr.msk.f32.gmra.mrb[14].mxu0 %vm115_vm3, %v6721_v20  ;;  %4542 = vmatmul.mubr.msk.f32.gmra.mrb[14].mxu1 %vm115_vm3, %v6721_v20 }
  0x92   :  { %265 = vmatprep.mubr.f32.mxu0 %v6391_v2  ;;  %402 = vmatprep.mubr.f32.mxu1 %v6391_v2 }
  0x95   :  { %4529 = vmatmul.mubr.msk.f32.gmra.mrb[16].mxu0 %vm115_vm3, %v6731_v23  ;;  %4543 = vmatmul.mubr.msk.f32.gmra.mrb[16].mxu1 %vm115_vm3, %v6731_v23 }
  0x96   :  { %271 = vmatprep.mubr.f32.mxu0 %v6391_v2  ;;  %408 = vmatprep.mubr.f32.mxu1 %v6391_v2 }
  0x99   :  { %4530 = vmatmul.mubr.msk.f32.gmra.mrb[18].mxu0 %vm115_vm3, %v6737_v24  ;;  %4544 = vmatmul.mubr.msk.f32.gmra.mrb[18].mxu1 %vm115_vm3, %v6737_v24 }
  0x9a   :  { %277 = vmatprep.mubr.f32.mxu0 %v6391_v2  ;;  %414 = vmatprep.mubr.f32.mxu1 %v6391_v2 }
  0x9d   :  { %4531 = vmatmul.mubr.msk.f32.gmra.mrb[20].mxu0 %vm115_vm3, %v6747_v25  ;;  %4545 = vmatmul.mubr.msk.f32.gmra.mrb[20].mxu1 %vm115_vm3, %v6747_v25 }
  0x9e   :  { %283 = vmatprep.mubr.f32.mxu0 %v6391_v2  ;;  %420 = vmatprep.mubr.f32.mxu1 %v6391_v2 }
  0xa1   :  { %4532 = vmatmul.mubr.msk.f32.gmra.mrb[22].mxu0 %vm115_vm3, %v6758_v27  ;;  %4546 = vmatmul.mubr.msk.f32.gmra.mrb[22].mxu1 %vm115_vm3, %v6758_v27 }
  0xa2   :  { %527 = vmatprep.mubr.f32.mxu0 %v6391_v2  ;;  %664 = vmatprep.mubr.f32.mxu1 %v6391_v2 }
  0xa5   :  { %4549 = vmatmul.mubr.msk.f32.vlgmr.msra.gmra.mrb[0].mxu0 %vm115_vm3, %v6453_v0  ;;  %4563 = vmatmul.mubr.msk.f32.vlgmr.msra.gmra.mrb[0].mxu1 %vm115_vm3, %v6453_v0  ;;  %v5610_v0 = vpack.c.bf16 %v4589_v48, %v4585_v47  ;;  %v4676_v47 = vld [vmem:[%s8888_s1 + $0x268] sm:$0xf]  ;;  %v4674_v48 = vld [vmem:[%s8888_s1 + $0x258] sm:$0xff] }
  0xa6   :  { %5596 = vmatpush1.bf16.msra.mxu0 %v5595_v36  ;;  %533 = vmatprep.mubr.f32.mxu0 %v6391_v2  ;;  %v5643_v36 = vpack.c.bf16 %v4670_v33, %v4666_v32  ;;  %v4715_v33 = vld [vmem:[%s8888_s1 + $0x2c0] sm:$0xff] }
  0xa7   :  { %670 = vmatprep.mubr.f32.mxu1 %v6391_v2  ;;  %5606 = vmatpush1.bf16.msra.mxu1 %v5605_v37  ;;  %v4663_v37 = vld [vmem:[%s8888_s1 + $0x200] sm:$0xff] }
  0xa8   :  { %5599 = vmatprep.subr.msk.bf16.mxu0 %vm6502_vm2, %v5597_v45  ;;  %5609 = vmatprep.subr.msk.bf16.mxu1 %vm6502_vm2, %v5607_v46  ;;  %v4669_v45 = vld [vmem:[%s8888_s1 + $0x230] sm:$0xff]  ;;  %v4672_v46 = vld [vmem:[%s8888_s1 + $0x248] sm:$0xff]  ;;  %v5635_v50 = vpack.c.bf16 %v4667_v38, %v4663_v37 }
  0xa9   :  { %4550 = vmatmul.mubr.msk.f32.gmra.mrb[2].mxu0 %vm115_vm3, %v6469_v3  ;;  %4564 = vmatmul.mubr.msk.f32.gmra.mrb[2].mxu1 %vm115_vm3, %v6469_v3  ;;  %v5645_v51 = vpack.c.bf16 %v4669_v45, %v4665_v39  ;;  %v4721_v37 = vld [vmem:[%s8888_s1 + $0x2f0] sm:$0xf] }
  0xaa   :  { %539 = vmatprep.mubr.f32.mxu0 %v6391_v2  ;;  %676 = vmatprep.mubr.f32.mxu1 %v6391_v2 }
  0xab   :  { %5602 = vmatpush1.bf16.msk.msra.mxu0 %vm6502_vm2, %v5600_v53  ;;  %5612 = vmatpush1.bf16.msk.msra.mxu1 %vm6502_vm2, %v5610_v0  ;;  %v4675_v53 = vld [vmem:[%s8888_s1 + $0x260] sm:$0xf]  ;;  %v5637_v0 = vpack.c.bf16 %v4676_v47, %v4672_v46 }
  0xac   :  { %5614 = vmatprep.subr.bf16.mxu0 %v5613_v54  ;;  %5624 = vmatprep.subr.bf16.mxu1 %v5623_v55  ;;  %v5647_v54 = vpack.c.bf16 %v4678_v49, %v4674_v48  ;;  %v4673_v55 = vld [vmem:[%s8888_s1 + $0x250] sm:$0xff]  ;;  %v5640_v61 = vpack.c.bf16 %v4675_v53, %v4671_v52 }
  0xad   :  { %4551 = vmatmul.mubr.msk.f32.gmra.mrb[4].mxu0 %vm115_vm3, %v6458_v1  ;;  %4565 = vmatmul.mubr.msk.f32.gmra.mrb[4].mxu1 %vm115_vm3, %v6458_v1 }
  0xae   :  { %545 = vmatprep.mubr.f32.mxu0 %v6391_v2  ;;  %682 = vmatprep.mubr.f32.mxu1 %v6391_v2 }
  0xb1   :  { %4552 = vmatmul.mubr.msk.f32.gmra.mrb[6].mxu0 %vm115_vm3, %v6474_v4  ;;  %4566 = vmatmul.mubr.msk.f32.gmra.mrb[6].mxu1 %vm115_vm3, %v6474_v4 }
  0xb2   :  { %551 = vmatprep.mubr.f32.mxu0 %v6391_v2  ;;  %688 = vmatprep.mubr.f32.mxu1 %v6391_v2 }
  0xb5   :  { %4553 = vmatmul.mubr.msk.f32.gmra.mrb[8].mxu0 %vm115_vm3, %v6479_v5  ;;  %4567 = vmatmul.mubr.msk.f32.gmra.mrb[8].mxu1 %vm115_vm3, %v6479_v5 }
  0xb6   :  { %557 = vmatprep.mubr.f32.mxu0 %v6391_v2  ;;  %694 = vmatprep.mubr.f32.mxu1 %v6391_v2 }
  0xb9   :  { %4554 = vmatmul.mubr.msk.f32.gmra.mrb[10].mxu0 %vm115_vm3, %v6484_v6  ;;  %4568 = vmatmul.mubr.msk.f32.gmra.mrb[10].mxu1 %vm115_vm3, %v6484_v6 }
  0xba   :  { %563 = vmatprep.mubr.f32.mxu0 %v6391_v2  ;;  %700 = vmatprep.mubr.f32.mxu1 %v6391_v2 }
  0xbd   :  { %4555 = vmatmul.mubr.msk.f32.gmra.mrb[12].mxu0 %vm115_vm3, %v6527_v21  ;;  %4569 = vmatmul.mubr.msk.f32.gmra.mrb[12].mxu1 %vm115_vm3, %v6527_v21 }
  0xbe   :  { %569 = vmatprep.mubr.f32.mxu0 %v6391_v2  ;;  %706 = vmatprep.mubr.f32.mxu1 %v6391_v2 }
  0xc1   :  { %4556 = vmatmul.mubr.msk.f32.gmra.mrb[14].mxu0 %vm115_vm3, %v6532_v22  ;;  %4570 = vmatmul.mubr.msk.f32.gmra.mrb[14].mxu1 %vm115_vm3, %v6532_v22 }
  0xc2   :  { %575 = vmatprep.mubr.f32.mxu0 %v6391_v2  ;;  %712 = vmatprep.mubr.f32.mxu1 %v6391_v2 }
  0xc5   :  { %4557 = vmatmul.mubr.msk.f32.gmra.mrb[16].mxu0 %vm115_vm3, %v6581_v40  ;;  %4571 = vmatmul.mubr.msk.f32.gmra.mrb[16].mxu1 %vm115_vm3, %v6581_v40 }
  0xc6   :  { %581 = vmatprep.mubr.f32.mxu0 %v6391_v2  ;;  %718 = vmatprep.mubr.f32.mxu1 %v6391_v2 }
  0xc9   :  { %4558 = vmatmul.mubr.msk.f32.gmra.mrb[18].mxu0 %vm115_vm3, %v6586_v41  ;;  %4572 = vmatmul.mubr.msk.f32.gmra.mrb[18].mxu1 %vm115_vm3, %v6586_v41 }
  0xca   :  { %587 = vmatprep.mubr.f32.mxu0 %v6391_v2  ;;  %724 = vmatprep.mubr.f32.mxu1 %v6391_v2 }
  0xcd   :  { %4559 = vmatmul.mubr.msk.f32.gmra.mrb[20].mxu0 %vm115_vm3, %v6597_v42  ;;  %4573 = vmatmul.mubr.msk.f32.gmra.mrb[20].mxu1 %vm115_vm3, %v6597_v42 }
  0xce   :  { %593 = vmatprep.mubr.f32.mxu0 %v6391_v2  ;;  %730 = vmatprep.mubr.f32.mxu1 %v6391_v2 }
  0xd1   :  { %4560 = vmatmul.mubr.msk.f32.gmra.mrb[22].mxu0 %vm115_vm3, %v6602_v43  ;;  %4574 = vmatmul.mubr.msk.f32.gmra.mrb[22].mxu1 %vm115_vm3, %v6602_v43 }
  0xd2   :  { %833 = vmatprep.mubr.f32.mxu0 %v6391_v2  ;;  %970 = vmatprep.mubr.f32.mxu1 %v6391_v2 }
  0xd5   :  { %4593 = vmatmul.mubr.msk.f32.vlgmr.msra.gmra.mrb[0].mxu0 %vm115_vm3, %v6469_v3  ;;  %4607 = vmatmul.mubr.msk.f32.vlgmr.msra.gmra.mrb[0].mxu1 %vm115_vm3, %v6469_v3  ;;  %v5630_v3 = vpack.c.bf16 %v4633_v29, %v4629_v28  ;;  %v4720_v28 = vld [vmem:[%s8888_s1 + $0x2e8] sm:$0xf]  ;;  %v4718_v29 = vld [vmem:[%s8888_s1 + $0x2d8] sm:$0xff] }
  0xd6   :  { %5616 = vmatpush1.bf16.msra.mxu0 %v5615_v7  ;;  %839 = vmatprep.mubr.f32.mxu0 %v6391_v2  ;;  %v7148_v7 = vpop.permute.xlu0 %1108 }
  0xd7   :  { %976 = vmatprep.mubr.f32.mxu1 %v6391_v2  ;;  %5626 = vmatpush1.bf16.msra.mxu1 %v5625_v8  ;;  %v4707_v8 = vld [vmem:[%s8888_s1 + $0x280] sm:$0xff] }
  0xd8   :  { %5619 = vmatprep.subr.msk.bf16.mxu0 %vm6502_vm2, %v5617_v14  ;;  %5629 = vmatprep.subr.msk.bf16.mxu1 %vm6502_vm2, %v5627_v15  ;;  %v4713_v14 = vld [vmem:[%s8888_s1 + $0x2b0] sm:$0xff]  ;;  %v4716_v15 = vld [vmem:[%s8888_s1 + $0x2c8] sm:$0xff]  ;;  %v5655_v31 = vpack.c.bf16 %v4711_v9, %v4707_v8 }
  0xd9   :  { %4594 = vmatmul.mubr.msk.f32.gmra.mrb[2].mxu0 %vm115_vm3, %v6458_v1  ;;  %4608 = vmatmul.mubr.msk.f32.gmra.mrb[2].mxu1 %vm115_vm3, %v6458_v1  ;;  %v5665_v32 = vpack.c.bf16 %v4713_v14, %v4709_v10 }
  0xda   :  { %845 = vmatprep.mubr.f32.mxu0 %v6391_v2  ;;  %982 = vmatprep.mubr.f32.mxu1 %v6391_v2 }
  0xdb   :  { %5622 = vmatpush1.bf16.msk.msra.mxu0 %vm6502_vm2, %v5620_v34  ;;  %5632 = vmatpush1.bf16.msk.msra.mxu1 %vm6502_vm2, %v5630_v3  ;;  %v5657_v34 = vpack.c.bf16 %v4720_v28, %v4716_v15  ;;  %v4719_v3 = vld [vmem:[%s8888_s1 + $0x2e0] sm:$0xf] }
  0xdc   :  { %5634 = vmatprep.subr.bf16.mxu0 %v5633_v35  ;;  %5644 = vmatprep.subr.bf16.mxu1 %v5643_v36  ;;  %v5667_v35 = vpack.c.bf16 %v4722_v30, %v4718_v29  ;;  %v4717_v36 = vld [vmem:[%s8888_s1 + $0x2d0] sm:$0xff]  ;;  %v5660_v38 = vpack.c.bf16 %v4719_v3, %v4715_v33 }
  0xdd   :  { %4595 = vmatmul.mubr.msk.f32.gmra.mrb[4].mxu0 %vm115_vm3, %v6474_v4  ;;  %4609 = vmatmul.mubr.msk.f32.gmra.mrb[4].mxu1 %vm115_vm3, %v6474_v4  ;;  %v5670_v39 = vpack.c.bf16 %v4721_v37, %v4717_v36 }
  0xde   :  { %851 = vmatprep.mubr.f32.mxu0 %v6391_v2  ;;  %988 = vmatprep.mubr.f32.mxu1 %v6391_v2 }
  0xe1   :  { %4596 = vmatmul.mubr.msk.f32.gmra.mrb[6].mxu0 %vm115_vm3, %v6479_v5  ;;  %4610 = vmatmul.mubr.msk.f32.gmra.mrb[6].mxu1 %vm115_vm3, %v6479_v5 }
  0xe2   :  { %857 = vmatprep.mubr.f32.mxu0 %v6391_v2  ;;  %994 = vmatprep.mubr.f32.mxu1 %v6391_v2 }
  0xe5   :  { %4597 = vmatmul.mubr.msk.f32.gmra.mrb[8].mxu0 %vm115_vm3, %v6484_v6  ;;  %4611 = vmatmul.mubr.msk.f32.gmra.mrb[8].mxu1 %vm115_vm3, %v6484_v6 }
  0xe6   :  { %863 = vmatprep.mubr.f32.mxu0 %v6391_v2  ;;  %1000 = vmatprep.mubr.f32.mxu1 %v6391_v2 }
  0xe9   :  { %4598 = vmatmul.mubr.msk.f32.gmra.mrb[10].mxu0 %vm115_vm3, %v6527_v21  ;;  %4612 = vmatmul.mubr.msk.f32.gmra.mrb[10].mxu1 %vm115_vm3, %v6527_v21 }
  0xea   :  { %869 = vmatprep.mubr.f32.mxu0 %v6391_v2  ;;  %1006 = vmatprep.mubr.f32.mxu1 %v6391_v2 }
  0xed   :  { %4599 = vmatmul.mubr.msk.f32.gmra.mrb[12].mxu0 %vm115_vm3, %v6532_v22  ;;  %4613 = vmatmul.mubr.msk.f32.gmra.mrb[12].mxu1 %vm115_vm3, %v6532_v22 }
  0xee   :  { %875 = vmatprep.mubr.f32.mxu0 %v6391_v2  ;;  %1012 = vmatprep.mubr.f32.mxu1 %v6391_v2 }
  0xf1   :  { %4600 = vmatmul.mubr.msk.f32.gmra.mrb[14].mxu0 %vm115_vm3, %v6581_v40  ;;  %4614 = vmatmul.mubr.msk.f32.gmra.mrb[14].mxu1 %vm115_vm3, %v6581_v40 }
  0xf2   :  { %881 = vmatprep.mubr.f32.mxu0 %v6391_v2  ;;  %1018 = vmatprep.mubr.f32.mxu1 %v6391_v2 }
  0xf5   :  { %4601 = vmatmul.mubr.msk.f32.gmra.mrb[16].mxu0 %vm115_vm3, %v6586_v41  ;;  %4615 = vmatmul.mubr.msk.f32.gmra.mrb[16].mxu1 %vm115_vm3, %v6586_v41 }
  0xf6   :  { %887 = vmatprep.mubr.f32.mxu0 %v6391_v2  ;;  %1024 = vmatprep.mubr.f32.mxu1 %v6391_v2 }
  0xf9   :  { %4602 = vmatmul.mubr.msk.f32.gmra.mrb[18].mxu0 %vm115_vm3, %v6597_v42  ;;  %4616 = vmatmul.mubr.msk.f32.gmra.mrb[18].mxu1 %vm115_vm3, %v6597_v42 }
  0xfa   :  { %893 = vmatprep.mubr.f32.mxu0 %v6391_v2  ;;  %1030 = vmatprep.mubr.f32.mxu1 %v6391_v2 }
  0xfd   :  { %4603 = vmatmul.mubr.msk.f32.gmra.mrb[20].mxu0 %vm115_vm3, %v6602_v43  ;;  %4617 = vmatmul.mubr.msk.f32.gmra.mrb[20].mxu1 %vm115_vm3, %v6602_v43 }
  0xfe   :  { %899 = vmatprep.mubr.f32.mxu0 %v6391_v2  ;;  %1036 = vmatprep.mubr.f32.mxu1 %v6391_v2 }
 0x101   :  { %4604 = vmatmul.mubr.msk.f32.gmra.mrb[22].mxu0 %vm115_vm3, %v6611_v44  ;;  %4618 = vmatmul.mubr.msk.f32.gmra.mrb[22].mxu1 %vm115_vm3, %v6611_v44 }
 0x102   :  { %1188 = vmatprep.mubr.f32.mxu0 %v6391_v2  ;;  %1325 = vmatprep.mubr.f32.mxu1 %v6391_v2 }
 0x105   :  { %4637 = vmatmul.mubr.msk.f32.vlgmr.msra.gmra.mrb[0].mxu0 %vm115_vm3, %v6667_v11  ;;  %4651 = vmatmul.mubr.msk.f32.vlgmr.msra.gmra.mrb[0].mxu1 %vm115_vm3, %v6667_v11  ;;  %v5650_v11 = vpack.c.bf16 %v4677_v56, %v4673_v55 }
 0x106   :  { %5636 = vmatpush1.bf16.msra.mxu0 %v5635_v50  ;;  %1194 = vmatprep.mubr.f32.mxu0 %v6391_v2 }
 0x107   :  { %1331 = vmatprep.mubr.f32.mxu1 %v6391_v2  ;;  %5646 = vmatpush1.bf16.msra.mxu1 %v5645_v51 }
 0x108   :  { %5639 = vmatprep.subr.msk.bf16.mxu0 %vm6502_vm2, %v5637_v0  ;;  %5649 = vmatprep.subr.msk.bf16.mxu1 %vm6502_vm2, %v5647_v54 }
 0x109   :  { %4638 = vmatmul.mubr.msk.f32.gmra.mrb[2].mxu0 %vm115_vm3, %v6669_v13  ;;  %4652 = vmatmul.mubr.msk.f32.gmra.mrb[2].mxu1 %vm115_vm3, %v6669_v13 }
 0x10a   :  { %1200 = vmatprep.mubr.f32.mxu0 %v6391_v2  ;;  %1337 = vmatprep.mubr.f32.mxu1 %v6391_v2 }
 0x10b   :  { %5642 = vmatpush1.bf16.msk.msra.mxu0 %vm6502_vm2, %v5640_v61  ;;  %5652 = vmatpush1.bf16.msk.msra.mxu1 %vm6502_vm2, %v5650_v11 }
 0x10c   :  { %5654 = vmatprep.subr.bf16.mxu0 %v5653_v62  ;;  %5664 = vmatprep.subr.bf16.mxu1 %v5663_v63 }
 0x10d   :  { %4639 = vmatmul.mubr.msk.f32.gmra.mrb[4].mxu0 %vm115_vm3, %v6689_v16  ;;  %4653 = vmatmul.mubr.msk.f32.gmra.mrb[4].mxu1 %vm115_vm3, %v6689_v16 }
 0x10e   :  { %1206 = vmatprep.mubr.f32.mxu0 %v6391_v2  ;;  %1343 = vmatprep.mubr.f32.mxu1 %v6391_v2 }
 0x111   :  { %4640 = vmatmul.mubr.msk.f32.gmra.mrb[6].mxu0 %vm115_vm3, %v6699_v17  ;;  %4654 = vmatmul.mubr.msk.f32.gmra.mrb[6].mxu1 %vm115_vm3, %v6699_v17 }
 0x112   :  { %1212 = vmatprep.mubr.f32.mxu0 %v6391_v2  ;;  %1349 = vmatprep.mubr.f32.mxu1 %v6391_v2 }
 0x115   :  { %4641 = vmatmul.mubr.msk.f32.gmra.mrb[8].mxu0 %vm115_vm3, %v6705_v18  ;;  %4655 = vmatmul.mubr.msk.f32.gmra.mrb[8].mxu1 %vm115_vm3, %v6705_v18 }
 0x116   :  { %1218 = vmatprep.mubr.f32.mxu0 %v6391_v2  ;;  %1355 = vmatprep.mubr.f32.mxu1 %v6391_v2 }
 0x119   :  { %4642 = vmatmul.mubr.msk.f32.gmra.mrb[10].mxu0 %vm115_vm3, %v6715_v19  ;;  %4656 = vmatmul.mubr.msk.f32.gmra.mrb[10].mxu1 %vm115_vm3, %v6715_v19 }
 0x11a   :  { %1224 = vmatprep.mubr.f32.mxu0 %v6391_v2  ;;  %1361 = vmatprep.mubr.f32.mxu1 %v6391_v2 }
 0x11d   :  { %4643 = vmatmul.mubr.msk.f32.gmra.mrb[12].mxu0 %vm115_vm3, %v6721_v20  ;;  %4657 = vmatmul.mubr.msk.f32.gmra.mrb[12].mxu1 %vm115_vm3, %v6721_v20 }
 0x11e   :  { %1230 = vmatprep.mubr.f32.mxu0 %v6391_v2  ;;  %1367 = vmatprep.mubr.f32.mxu1 %v6391_v2 }
 0x121   :  { %4644 = vmatmul.mubr.msk.f32.gmra.mrb[14].mxu0 %vm115_vm3, %v6731_v23  ;;  %4658 = vmatmul.mubr.msk.f32.gmra.mrb[14].mxu1 %vm115_vm3, %v6731_v23 }
 0x122   :  { %1236 = vmatprep.mubr.f32.mxu0 %v6391_v2  ;;  %1373 = vmatprep.mubr.f32.mxu1 %v6391_v2 }
 0x125   :  { %4645 = vmatmul.mubr.msk.f32.gmra.mrb[16].mxu0 %vm115_vm3, %v6737_v24  ;;  %4659 = vmatmul.mubr.msk.f32.gmra.mrb[16].mxu1 %vm115_vm3, %v6737_v24 }
 0x126   :  { %1242 = vmatprep.mubr.f32.mxu0 %v6391_v2  ;;  %1379 = vmatprep.mubr.f32.mxu1 %v6391_v2 }
 0x129   :  { %4646 = vmatmul.mubr.msk.f32.gmra.mrb[18].mxu0 %vm115_vm3, %v6747_v25  ;;  %4660 = vmatmul.mubr.msk.f32.gmra.mrb[18].mxu1 %vm115_vm3, %v6747_v25 }
 0x12a   :  { %1248 = vmatprep.mubr.f32.mxu0 %v6391_v2  ;;  %1385 = vmatprep.mubr.f32.mxu1 %v6391_v2 }
 0x12d   :  { %4647 = vmatmul.mubr.msk.f32.gmra.mrb[20].mxu0 %vm115_vm3, %v6758_v27  ;;  %4661 = vmatmul.mubr.msk.f32.gmra.mrb[20].mxu1 %vm115_vm3, %v6758_v27 }
 0x12e   :  { %1254 = vmatprep.mubr.f32.mxu0 %v6391_v2  ;;  %1391 = vmatprep.mubr.f32.mxu1 %v6391_v2 }
 0x131   :  { %4648 = vmatmul.mubr.msk.f32.gmra.mrb[22].mxu0 %vm115_vm3, %v7148_v7  ;;  %4662 = vmatmul.mubr.msk.f32.gmra.mrb[22].mxu1 %vm115_vm3, %v7148_v7 }
 0x132   :  { %1542 = vmatprep.mubr.f32.mxu0 %v6391_v2  ;;  %1679 = vmatprep.mubr.f32.mxu1 %v6391_v2 }
 0x135   :  { %4681 = vmatmul.mubr.msk.f32.vlgmr.msra.gmra.mrb[0].mxu0 %vm115_vm3, %v6458_v1  ;;  %4695 = vmatmul.mubr.msk.f32.vlgmr.msra.gmra.mrb[0].mxu1 %vm115_vm3, %v6458_v1  ;;  %v1818_v1 = vpop.permute.xlu1 %1817 }
 0x136   :  { %5656 = vmatpush1.bf16.msra.mxu0 %v5655_v31  ;;  %1548 = vmatprep.mubr.f32.mxu0 %v6391_v2 }
 0x137   :  { %1685 = vmatprep.mubr.f32.mxu1 %v6391_v2  ;;  %5666 = vmatpush1.bf16.msra.mxu1 %v5665_v32 }
 0x138   :  { %5659 = vmatprep.subr.msk.bf16.mxu0 %vm6502_vm2, %v5657_v34  ;;  %5669 = vmatprep.subr.msk.bf16.mxu1 %vm6502_vm2, %v5667_v35 }
 0x139   :  { %4682 = vmatmul.mubr.msk.f32.gmra.mrb[2].mxu0 %vm115_vm3, %v6474_v4  ;;  %4696 = vmatmul.mubr.msk.f32.gmra.mrb[2].mxu1 %vm115_vm3, %v6474_v4  ;;  %v2157_v4 = vlaneseq }
 0x13a   :  { %1554 = vmatprep.mubr.f32.mxu0 %v6391_v2  ;;  %1691 = vmatprep.mubr.f32.mxu1 %v6391_v2 }
 0x13b   :  { %5662 = vmatpush1.bf16.msk.msra.mxu0 %vm6502_vm2, %v5660_v38  ;;  %5672 = vmatpush1.bf16.msk.msra.mxu1 %vm6502_vm2, %v5670_v39 }
 0x13d   :  { %4683 = vmatmul.mubr.msk.f32.gmra.mrb[4].mxu0 %vm115_vm3, %v6479_v5  ;;  %4697 = vmatmul.mubr.msk.f32.gmra.mrb[4].mxu1 %vm115_vm3, %v6479_v5  ;;  %v7341_v5 = vshrl.u32 %v2157_v4, 7 }
 0x13e   :  { %1560 = vmatprep.mubr.f32.mxu0 %v6391_v2  ;;  %1697 = vmatprep.mubr.f32.mxu1 %v6391_v2 }
 0x141   :  { %4684 = vmatmul.mubr.msk.f32.gmra.mrb[6].mxu0 %vm115_vm3, %v6484_v6  ;;  %4698 = vmatmul.mubr.msk.f32.gmra.mrb[6].mxu1 %vm115_vm3, %v6484_v6  ;;  %v2159_v6 = vsub.s32 0, %v7341_v5 }
 0x142   :  { %1566 = vmatprep.mubr.f32.mxu0 %v6391_v2  ;;  %1703 = vmatprep.mubr.f32.mxu1 %v6391_v2 }
 0x145   :  { %4685 = vmatmul.mubr.msk.f32.gmra.mrb[8].mxu0 %vm115_vm3, %v6527_v21  ;;  %4699 = vmatmul.mubr.msk.f32.gmra.mrb[8].mxu1 %vm115_vm3, %v6527_v21  ;;  %v7349_v21 = vrot.slane %v2155_v12, %v2159_v6 }
 0x146   :  { %1572 = vmatprep.mubr.f32.mxu0 %v6391_v2  ;;  %1709 = vmatprep.mubr.f32.mxu1 %v6391_v2 }
 0x149   :  { %4686 = vmatmul.mubr.msk.f32.gmra.mrb[10].mxu0 %vm115_vm3, %v6532_v22  ;;  %4700 = vmatmul.mubr.msk.f32.gmra.mrb[10].mxu1 %vm115_vm3, %v6532_v22  ;;  %v2167_v22 = vsub.s32 2, %v7341_v5 }
 0x14a   :  { %1578 = vmatprep.mubr.f32.mxu0 %v6391_v2  ;;  %1715 = vmatprep.mubr.f32.mxu1 %v6391_v2 }
 0x14d   :  { %4687 = vmatmul.mubr.msk.f32.gmra.mrb[12].mxu0 %vm115_vm3, %v6581_v40  ;;  %4701 = vmatmul.mubr.msk.f32.gmra.mrb[12].mxu1 %vm115_vm3, %v6581_v40 }
 0x14e   :  { %1584 = vmatprep.mubr.f32.mxu0 %v6391_v2  ;;  %1721 = vmatprep.mubr.f32.mxu1 %v6391_v2 }
 0x151   :  { %4688 = vmatmul.mubr.msk.f32.gmra.mrb[14].mxu0 %vm115_vm3, %v6586_v41  ;;  %4702 = vmatmul.mubr.msk.f32.gmra.mrb[14].mxu1 %vm115_vm3, %v6586_v41 }
 0x152   :  { %1590 = vmatprep.mubr.f32.mxu0 %v6391_v2  ;;  %1727 = vmatprep.mubr.f32.mxu1 %v6391_v2 }
 0x155   :  { %4689 = vmatmul.mubr.msk.f32.gmra.mrb[16].mxu0 %vm115_vm3, %v6597_v42  ;;  %4703 = vmatmul.mubr.msk.f32.gmra.mrb[16].mxu1 %vm115_vm3, %v6597_v42  ;;  %v2163_v42 = vsub.s32 1, %v7341_v5 }
 0x156   :  { %1596 = vmatprep.mubr.f32.mxu0 %v6391_v2  ;;  %1733 = vmatprep.mubr.f32.mxu1 %v6391_v2 }
 0x159   :  { %4690 = vmatmul.mubr.msk.f32.gmra.mrb[18].mxu0 %vm115_vm3, %v6602_v43  ;;  %4704 = vmatmul.mubr.msk.f32.gmra.mrb[18].mxu1 %vm115_vm3, %v6602_v43 }
 0x15a   :  { %1602 = vmatprep.mubr.f32.mxu0 %v6391_v2  ;;  %1739 = vmatprep.mubr.f32.mxu1 %v6391_v2 }
 0x15d   :  { %4691 = vmatmul.mubr.msk.f32.gmra.mrb[20].mxu0 %vm115_vm3, %v6611_v44  ;;  %4705 = vmatmul.mubr.msk.f32.gmra.mrb[20].mxu1 %vm115_vm3, %v6611_v44 }
 0x15e   :  { %1608 = vmatprep.mubr.f32.mxu0 %v6391_v2  ;;  %1745 = vmatprep.mubr.f32.mxu1 %v6391_v2 }
 0x161   :  { %4692 = vmatmul.mubr.msk.f32.gmra.mrb[22].mxu0 %vm115_vm3, %v6756_v26  ;;  %4706 = vmatmul.mubr.msk.f32.gmra.mrb[22].mxu1 %vm115_vm3, %v6756_v26 }
 0x162   :  { %1897 = vmatprep.mubr.f32.mxu0 %v6391_v2  ;;  %2034 = vmatprep.mubr.f32.mxu1 %v6391_v2 }
 0x165   :  { %4725 = vmatmul.mubr.msk.f32.vlgmr.msra.gmra.mrb[0].mxu0 %vm115_vm3, %v6669_v13  ;;  %4739 = vmatmul.mubr.msk.f32.vlgmr.msra.gmra.mrb[0].mxu1 %vm115_vm3, %v6669_v13 }
 0x166   :  { %1903 = vmatprep.mubr.f32.mxu0 %v6391_v2  ;;  %2040 = vmatprep.mubr.f32.mxu1 %v6391_v2 }
 0x169   :  { %4726 = vmatmul.mubr.msk.f32.gmra.mrb[2].mxu0 %vm115_vm3, %v6689_v16  ;;  %4740 = vmatmul.mubr.msk.f32.gmra.mrb[2].mxu1 %vm115_vm3, %v6689_v16  ;;  %v7362_v16 = vrot.slane %v2155_v12, %v2167_v22 }
 0x16a   :  { %1909 = vmatprep.mubr.f32.mxu0 %v6391_v2  ;;  %2046 = vmatprep.mubr.f32.mxu1 %v6391_v2 }
 0x16d   :  { %4727 = vmatmul.mubr.msk.f32.gmra.mrb[4].mxu0 %vm115_vm3, %v6699_v17  ;;  %4741 = vmatmul.mubr.msk.f32.gmra.mrb[4].mxu1 %vm115_vm3, %v6699_v17  ;;  %v7366_v17 = vrot.slane %v2155_v12, %v2163_v42 }
 0x16e   :  { %1915 = vmatprep.mubr.f32.mxu0 %v6391_v2  ;;  %2052 = vmatprep.mubr.f32.mxu1 %v6391_v2 }
 0x171   :  { %4728 = vmatmul.mubr.msk.f32.gmra.mrb[6].mxu0 %vm115_vm3, %v6705_v18  ;;  %4742 = vmatmul.mubr.msk.f32.gmra.mrb[6].mxu1 %vm115_vm3, %v6705_v18  ;;  %v2171_v18 = vsub.s32 3, %v7341_v5 }
 0x172   :  { %1921 = vmatprep.mubr.f32.mxu0 %v6391_v2  ;;  %2058 = vmatprep.mubr.f32.mxu1 %v6391_v2 }
 0x173   :  { %v7377_v45 = vrot.slane %v2155_v12, %v2171_v18 }
 0x175   :  { %4729 = vmatmul.mubr.msk.f32.gmra.mrb[8].mxu0 %vm115_vm3, %v6715_v19  ;;  %4743 = vmatmul.mubr.msk.f32.gmra.mrb[8].mxu1 %vm115_vm3, %v6715_v19 }
 0x176   :  { %1927 = vmatprep.mubr.f32.mxu0 %v6391_v2  ;;  %2064 = vmatprep.mubr.f32.mxu1 %v6391_v2 }
 0x179   :  { %4730 = vmatmul.mubr.msk.f32.gmra.mrb[10].mxu0 %vm115_vm3, %v6721_v20  ;;  %4744 = vmatmul.mubr.msk.f32.gmra.mrb[10].mxu1 %vm115_vm3, %v6721_v20 }
 0x17a   :  { %1933 = vmatprep.mubr.f32.mxu0 %v6391_v2  ;;  %2070 = vmatprep.mubr.f32.mxu1 %v6391_v2 }
 0x17d   :  { %4731 = vmatmul.mubr.msk.f32.gmra.mrb[12].mxu0 %vm115_vm3, %v6731_v23  ;;  %4745 = vmatmul.mubr.msk.f32.gmra.mrb[12].mxu1 %vm115_vm3, %v6731_v23 }
 0x17e   :  { %1939 = vmatprep.mubr.f32.mxu0 %v6391_v2  ;;  %2076 = vmatprep.mubr.f32.mxu1 %v6391_v2 }
 0x181   :  { %4732 = vmatmul.mubr.msk.f32.gmra.mrb[14].mxu0 %vm115_vm3, %v6737_v24  ;;  %4746 = vmatmul.mubr.msk.f32.gmra.mrb[14].mxu1 %vm115_vm3, %v6737_v24 }
 0x182   :  { %1945 = vmatprep.mubr.f32.mxu0 %v6391_v2  ;;  %2082 = vmatprep.mubr.f32.mxu1 %v6391_v2 }
 0x185   :  { %4733 = vmatmul.mubr.msk.f32.gmra.mrb[16].mxu0 %vm115_vm3, %v6747_v25  ;;  %4747 = vmatmul.mubr.msk.f32.gmra.mrb[16].mxu1 %vm115_vm3, %v6747_v25 }
 0x186   :  { %1951 = vmatprep.mubr.f32.mxu0 %v6391_v2  ;;  %2088 = vmatprep.mubr.f32.mxu1 %v6391_v2 }
 0x189   :  { %4734 = vmatmul.mubr.msk.f32.gmra.mrb[18].mxu0 %vm115_vm3, %v6758_v27  ;;  %4748 = vmatmul.mubr.msk.f32.gmra.mrb[18].mxu1 %vm115_vm3, %v6758_v27 }
 0x18a   :  { %1957 = vmatprep.mubr.f32.mxu0 %v6391_v2  ;;  %2094 = vmatprep.mubr.f32.mxu1 %v6391_v2 }
 0x18d   :  { %4735 = vmatmul.mubr.msk.f32.gmra.mrb[20].mxu0 %vm115_vm3, %v7148_v7  ;;  %4749 = vmatmul.mubr.msk.f32.gmra.mrb[20].mxu1 %vm115_vm3, %v7148_v7 }
 0x18e   :  { %1963 = vmatprep.mubr.f32.mxu0 %v6391_v2  ;;  %2100 = vmatprep.mubr.f32.mxu1 %v6391_v2 }
 0x191   :  { %4736 = vmatmul.mubr.msk.f32.gmra.mrb[22].mxu0 %vm115_vm3, %v1818_v1  ;;  %4750 = vmatmul.mubr.msk.f32.gmra.mrb[22].mxu1 %vm115_vm3, %v1818_v1 }
 0x192   :  { %2695 = vmatprep.mubr.f32.mxu0 %v6391_v2 }
 0x238   :  { %v1899_v40 = vpop.f32.mrb[0].mxu0  ;;  %v7352_v41 = vpop.f32.mrb[0].mxu1 }
 0x239   :  { %v7356_v43 = vadd.f32 %v7349_v21, %v1899_v40  ;;  %v1901_v44 = vpop.f32.mrb[1].mxu0  ;;  %v7358_v13 = vpop.f32.mrb[1].mxu1 }
 0x23a   :  { %v7410_v62 = vadd.f32 %v7366_v17, %v1901_v44 }
 0x23c   :  { %v1905_v19 = vpop.f32.mrb[2].mxu0  ;;  %v2042_v20 = vpop.f32.mrb[2].mxu1 }
 0x23d   :  { %v7370_v23 = vadd.f32 %v7349_v21, %v1905_v19  ;;  %v2183_v24 = vadd.f32 %v7362_v16, %v2042_v20  ;;  %v1907_v25 = vpop.f32.mrb[3].mxu0  ;;  %v2044_v26 = vpop.f32.mrb[3].mxu1  ;;  %v2180_v20 = vadd.f32 %v7377_v45, %v7358_v13 }
 0x23e   :  { %v7374_v27 = vadd.f32 %v7366_v17, %v1907_v25  ;;  %v2184_v51 = vadd.f32 %v7377_v45, %v2044_v26 }
 0x23f   :  { %2269 = vrot.lane.b32.xlu1 %v2183_v24, %s6394_s2 }
 0x240   :  { %v7379_v46 = vpop.f32.mrb[4].mxu1  ;;  %2267 = vrot.lane.b32.xlu0 %v7374_v27, %s6394_s2  ;;  %v1911_v47 = vpop.f32.mrb[4].mxu0 }
 0x241   :  { %v7384_v48 = vadd.f32 %v7349_v21, %v1911_v47  ;;  %v7386_v49 = vpop.f32.mrb[5].mxu0  ;;  %v7388_v50 = vpop.f32.mrb[5].mxu1 }
 0x244   :  { %v2054_v52 = vpop.f32.mrb[6].mxu1  ;;  %2271 = vrot.lane.b32.xlu0 %v2184_v51, %s6394_s2  ;;  %v1917_v53 = vpop.f32.mrb[6].mxu0 }
 0x245   :  { %v2191_v0 = vadd.f32 %v7362_v16, %v2054_v52  ;;  %v7394_v54 = vadd.f32 %v7349_v21, %v1917_v53  ;;  %v1919_v55 = vpop.f32.mrb[7].mxu0  ;;  %v2056_v56 = vpop.f32.mrb[7].mxu1 }
 0x246   :  { %v7397_v57 = vadd.f32 %v7366_v17, %v1919_v55  ;;  %v2192_v63 = vadd.f32 %v7377_v45, %v2056_v56  ;;  %v2179_v55 = vadd.f32 %v7362_v16, %v7352_v41  ;;  %v2187_v56 = vadd.f32 %v7362_v16, %v7379_v46 }
 0x248   :  { %v7399_v58 = vpop.f32.mrb[8].mxu1  ;;  %2281 = vrot.lane.b32.xlu0 %v2191_v0, %s6394_s2  ;;  %2279 = vrot.lane.b32.xlu1 %v7397_v57, %s6394_s2  ;;  %v1923_v59 = vpop.f32.mrb[8].mxu0 }
 0x249   :  { %v7405_v60 = vadd.f32 %v7349_v21, %v1923_v59  ;;  %v1925_v61 = vpop.f32.mrb[9].mxu0  ;;  %v7407_v11 = vpop.f32.mrb[9].mxu1 }
 0x24c   :  { %v2066_v7 = vpop.f32.mrb[10].mxu1  ;;  %2261 = vrot.lane.b32.xlu0 %v7410_v62, %s6394_s2  ;;  %2283 = vrot.lane.b32.xlu1 %v2192_v63, %s6394_s2  ;;  %v1929_v8 = vpop.f32.mrb[10].mxu0 }
 0x24d   :  { %v2199_v9 = vadd.f32 %v7362_v16, %v2066_v7  ;;  %v7418_v10 = vadd.f32 %v7349_v21, %v1929_v8  ;;  %v1931_v14 = vpop.f32.mrb[11].mxu0  ;;  %v2068_v15 = vpop.f32.mrb[11].mxu1 }
 0x24e   :  { %v7421_v28 = vadd.f32 %v7366_v17, %v1931_v14  ;;  %v2200_v34 = vadd.f32 %v7377_v45, %v2068_v15  ;;  %v7490_v15 = vadd.f32 %v7366_v17, %v7386_v49 }
 0x250   :  { %v7423_v29 = vpop.f32.mrb[12].mxu1  ;;  %2293 = vrot.lane.b32.xlu1 %v2199_v9, %s6394_s2  ;;  %2291 = vrot.lane.b32.xlu0 %v7421_v28, %s6394_s2  ;;  %v1935_v30 = vpop.f32.mrb[12].mxu0 }
 0x251   :  { %v7429_v31 = vadd.f32 %v7349_v21, %v1935_v30  ;;  %v7431_v32 = vpop.f32.mrb[13].mxu0  ;;  %v7433_v33 = vpop.f32.mrb[13].mxu1  ;;  %v7493_v30 = vadd.f32 %v7366_v17, %v1925_v61 }
 0x254   :  { %v2078_v3 = vpop.f32.mrb[14].mxu1  ;;  %2295 = vrot.lane.b32.xlu0 %v2200_v34, %s6394_s2  ;;  %v1941_v35 = vpop.f32.mrb[14].mxu0 }
 0x255   :  { %v2207_v36 = vadd.f32 %v7362_v16, %v2078_v3  ;;  %v7439_v37 = vadd.f32 %v7349_v21, %v1941_v35  ;;  %v1943_v38 = vpop.f32.mrb[15].mxu0  ;;  %v2080_v39 = vpop.f32.mrb[15].mxu1 }
 0x256   :  { %v7442_v1 = vadd.f32 %v7366_v17, %v1943_v38  ;;  %v2208_v24 = vadd.f32 %v7377_v45, %v2080_v39 }
 0x258   :  { %v2084_v4 = vpop.f32.mrb[16].mxu1  ;;  %2305 = vrot.lane.b32.xlu0 %v2207_v36, %s6394_s2  ;;  %2303 = vrot.lane.b32.xlu1 %v7442_v1, %s6394_s2  ;;  %v1947_v12 = vpop.f32.mrb[16].mxu0 }
 0x259   :  { %v7448_v40 = vadd.f32 %v7362_v16, %v2084_v4  ;;  %v7451_v44 = vadd.f32 %v7349_v21, %v1947_v12  ;;  %v1949_v18 = vpop.f32.mrb[17].mxu0  ;;  %v2086_v19 = vpop.f32.mrb[17].mxu1  ;;  %v2188_v4 = vadd.f32 %v7377_v45, %v7388_v50  ;;  %v2196_v12 = vadd.f32 %v7377_v45, %v7407_v11 }
 0x25a   :  { %v7457_v25 = vadd.f32 %v7366_v17, %v1949_v18  ;;  %v7460_v26 = vadd.f32 %v7377_v45, %v2086_v19  ;;  %v7531_v50 = vadd.f32 %v7366_v17, %v7431_v32  ;;  %v2204_v11 = vadd.f32 %v7377_v45, %v7433_v33  ;;  %v4754_v32 = vld [vmem:[%s8890_s3 + $0x180] sm:$0xff]  ;;  %v4761_v33 = vld [vmem:[%s8890_s3 + $0x1b8] sm:$0xff] }
 0x25c   :  { %v2090_v47 = vpop.f32.mrb[18].mxu1  ;;  %2265 = vrot.lane.b32.xlu0 %v2180_v20, %s6394_s2  ;;  %2307 = vrot.lane.b32.xlu1 %v2208_v24, %s6394_s2  ;;  %v1953_v51 = vpop.f32.mrb[18].mxu0  ;;  %v2203_v20 = vadd.f32 %v7362_v16, %v7423_v29  ;;  %v4751_v29 = vld [vmem:[%s8890_s3 + $0x168] sm:$0xff] }
 0x25d   :  { %v7465_v52 = vadd.f32 %v7362_v16, %v2090_v47  ;;  %v7468_v53 = vadd.f32 %v7349_v21, %v1953_v51  ;;  %v1955_v13 = vpop.f32.mrb[19].mxu0  ;;  %v2092_v0 = vpop.f32.mrb[19].mxu1  ;;  %v5675_v24 = vpack.c.bf16 %v4754_v32, %v4751_v29  ;;  %v4757_v51 = vld [vmem:[%s8890_s3 + $0x198] sm:$0xff]  ;;  %v4772_v32 = vld [vmem:[%s8890_s3 + $0x210] sm:$0xff] }
 0x25e   :  { %v7475_v59 = vadd.f32 %v7366_v17, %v1955_v13  ;;  %v7478_v63 = vadd.f32 %v7377_v45, %v2092_v0  ;;  %v4760_v13 = vld [vmem:[%s8890_s3 + $0x1b0] sm:$0xff] }
 0x25f   :  { %v4764_v0 = vld [vmem:[%s8890_s3 + $0x1d0] sm:$0xff] }
 0x260   :  { %v2096_v7 = vpop.f32.mrb[20].mxu1  ;;  %2275 = vrot.lane.b32.xlu0 %v2187_v56, %s6394_s2  ;;  %2263 = vrot.lane.b32.xlu1 %v2179_v55, %s6394_s2  ;;  %v1959_v8 = vpop.f32.mrb[20].mxu0  ;;  %v4767_v55 = vld [vmem:[%s8890_s3 + $0x1e8] sm:$0xff]  ;;  %v4753_v56 = vld [vmem:[%s8890_s3 + $0x178] sm:$0xff] }
 0x261   :  { %v7483_v9 = vadd.f32 %v7362_v16, %v2096_v7  ;;  %v7486_v41 = vadd.f32 %v7349_v21, %v1959_v8  ;;  %v1961_v14 = vpop.f32.mrb[21].mxu0  ;;  %v2098_v46 = vpop.f32.mrb[21].mxu1  ;;  %v4756_v7 = vld [vmem:[%s8890_s3 + $0x190] sm:$0xff]  ;;  %v5679_v8 = vpack.c.bf16 %v4760_v13, %v4757_v51 }
 0x262   :  { %v7496_v34 = vadd.f32 %v7366_v17, %v1961_v14  ;;  %v7499_v3 = vadd.f32 %v7377_v45, %v2098_v46  ;;  %v5701_v14 = vpack.c.bf16 %v4756_v7, %v4753_v56  ;;  %v4763_v46 = vld [vmem:[%s8890_s3 + $0x1c8] sm:$0xff]  ;;  %v4778_v56 = vld [vmem:[%s8890_s3 + $0x240] sm:$0xff] }
 0x263   :  { %v4782_v7 = vld [vmem:[%s8890_s3 + $0x260] sm:$0xff] }
 0x264   :  { %v2102_v35 = vpop.f32.mrb[22].mxu1  ;;  %2285 = vrot.lane.b32.xlu0 %v7493_v30, %s6394_s2  ;;  %2273 = vrot.lane.b32.xlu1 %v7490_v15, %s6394_s2  ;;  %v1965_v36 = vpop.f32.mrb[22].mxu0 }
 0x265   :  { %v7506_v49 = vadd.f32 %v7362_v16, %v2102_v35  ;;  %v7509_v61 = vadd.f32 %v7349_v21, %v1965_v36  ;;  %v1967_v38 = vpop.f32.mrb[23].mxu0  ;;  %v2104_v39 = vpop.f32.mrb[23].mxu1  ;;  %v2195_v21 = vadd.f32 %v7362_v16, %v7399_v58  ;;  %v4752_v58 = vld [vmem:[%s8890_s3 + $0x170] sm:$0xff]  ;;  %v4755_v16 = vld [vmem:[%s8890_s3 + $0x188] sm:$0xff]  ;;  %v5681_v35 = vpack.c.bf16 %v4767_v55, %v4764_v0  ;;  %v4766_v36 = vld [vmem:[%s8890_s3 + $0x1e0] sm:$0xff]  ;;  %5702 = vmatprep.subr.bf16.mxu1 %v5701_v14 }
 0x266   :  { %v7516_v18 = vadd.f32 %v7366_v17, %v1967_v38  ;;  %v7519_v19 = vadd.f32 %v7377_v45, %v2104_v39  ;;  %v5673_v17 = vpack.c.bf16 %v4755_v16, %v4752_v58  ;;  %v4758_v45 = vld [vmem:[%s8890_s3 + $0x1a0] sm:$0xff]  ;;  %v4759_v38 = vld [vmem:[%s8890_s3 + $0x1a8] sm:$0xff]  ;;  %5704 = vmatpush3.bf16.msra.mxu1 %v5701_v14  ;;  %v5683_v58 = vpack.c.bf16 %v4766_v36, %v4763_v46  ;;  %v4769_v16 = vld [vmem:[%s8890_s3 + $0x1f8] sm:$0xff] }
 0x267   :  { %v5677_v47 = vpack.c.bf16 %v4761_v33, %v4758_v45  ;;  %v4762_v39 = vld [vmem:[%s8890_s3 + $0x1c0] sm:$0xff]  ;;  %v4771_v45 = vld [vmem:[%s8890_s3 + $0x208] sm:$0xff]  ;;  %v5687_v51 = vpack.c.bf16 %v4772_v32, %v4769_v16  ;;  %v4784_v36 = vld [vmem:[%s8890_s3 + $0x270] sm:$0xff] }
 0x268   :  { %2289 = vrot.lane.b32.xlu0 %v2196_v12, %s6394_s2  ;;  %2277 = vrot.lane.b32.xlu1 %v2188_v4, %s6394_s2  ;;  %v4770_v4 = vld [vmem:[%s8890_s3 + $0x200] sm:$0xff]  ;;  %v4773_v12 = vld [vmem:[%s8890_s3 + $0x218] sm:$0xff] }
 0x269   :  { %5674 = vmatprep.subr.bf16.mxu0 %v5673_v17  ;;  %v5685_v17 = vpack.c.bf16 %v4773_v12, %v4770_v4  ;;  %v4774_v33 = vld [vmem:[%s8890_s3 + $0x220] sm:$0xff]  ;;  %v4775_v55 = vld [vmem:[%s8890_s3 + $0x228] sm:$0xff]  ;;  %v4777_v12 = vld [vmem:[%s8890_s3 + $0x238] sm:$0xff] }
 0x26a   :  { %5676 = vmatpush1.bf16.msra.mxu0 %v5675_v24  ;;  %v4776_v24 = vld [vmem:[%s8890_s3 + $0x230] sm:$0xff]  ;;  %v5713_v13 = vpack.c.bf16 %v4774_v33, %v4771_v45  ;;  %v5691_v14 = vpack.c.bf16 %v4778_v56, %v4775_v55  ;;  %v4791_v4 = vld [vmem:[%s8890_s3 + $0x2a8] sm:$0xff]  ;;  %v4786_v32 = vld [vmem:[%s8890_s3 + $0x280] sm:$0xff] }
 0x26b   :  { %5678 = vmatprep.subr.bf16.mxu0 %v5677_v47  ;;  %v4779_v47 = vld [vmem:[%s8890_s3 + $0x248] sm:$0xff]  ;;  %v4794_v33 = vld [vmem:[%s8890_s3 + $0x2c0] sm:$0xff]  ;;  %v4789_v55 = vld [vmem:[%s8890_s3 + $0x298] sm:$0xff] }
 0x26c   :  { %2299 = vrot.lane.b32.xlu0 %v2203_v20, %s6394_s2  ;;  %2287 = vrot.lane.b32.xlu1 %v2195_v21, %s6394_s2  ;;  %v5705_v21 = vpack.c.bf16 %v4762_v39, %v4759_v38  ;;  %v4765_v20 = vld [vmem:[%s8890_s3 + $0x1d8] sm:$0xff]  ;;  %v5689_v0 = vpack.c.bf16 %v4779_v47, %v4776_v24  ;;  %v4788_v39 = vld [vmem:[%s8890_s3 + $0x290] sm:$0xff] }
 0x26d   :  { %v2528_v24 = vld [vmem:[%s8890_s3 + $0x8] sm:$0xff]  ;;  %v2531_v47 = vld [vmem:[%s8890_s3 + $0x20] sm:$0xff]  ;;  %v4792_v56 = vld [vmem:[%s8890_s3 + $0x2b0] sm:$0xff] }
 0x26e   :  { %5680 = vmatpush1.bf16.msra.mxu0 %v5679_v8  ;;  %5706 = vmatprep.subr.bf16.mxu1 %v5705_v21  ;;  %v4785_v8 = vld [vmem:[%s8890_s3 + $0x278] sm:$0xff] }
 0x26f   :  { %5682 = vmatprep.subr.bf16.mxu0 %v5681_v35  ;;  %5708 = vmatpush3.bf16.msra.mxu1 %v5705_v21  ;;  %v5693_v46 = vpack.c.bf16 %v4785_v8, %v4782_v7  ;;  %v4781_v35 = vld [vmem:[%s8890_s3 + $0x258] sm:$0xff]  ;;  %v5697_v21 = vpack.c.bf16 %v4791_v4, %v4788_v39  ;;  %v5725_v8 = vpack.c.bf16 %v4792_v56, %v4789_v55  ;;  %v2532_v4 = vld [vmem:[%s8890_s3 + $0x28] sm:$0xff] }
 0x270   :  { %2297 = vrot.lane.b32.xlu1 %v7531_v50, %s6394_s2  ;;  %v5695_v38 = vpack.c.bf16 %v4784_v36, %v4781_v35 }
 0x272   :  { %5684 = vmatpush1.bf16.msra.mxu0 %v5683_v58  ;;  %v4790_v58 = vld [vmem:[%s8890_s3 + $0x2a0] sm:$0xff] }
 0x273   :  { %5686 = vmatprep.subr.bf16.mxu0 %v5685_v17  ;;  %v4783_v17 = vld [vmem:[%s8890_s3 + $0x268] sm:$0xff] }
 0x274   :  { %2301 = vrot.lane.b32.xlu1 %v2204_v11, %s6394_s2  ;;  %v4768_v11 = vld [vmem:[%s8890_s3 + $0x1f0] sm:$0xff]  ;;  %v5721_v45 = vpack.c.bf16 %v4786_v32, %v4783_v17 }
 0x275   :  { %v5709_v29 = vpack.c.bf16 %v4768_v11, %v4765_v20  ;;  %v4780_v20 = vld [vmem:[%s8890_s3 + $0x250] sm:$0xff]  ;;  %v4787_v11 = vld [vmem:[%s8890_s3 + $0x288] sm:$0xff] }
 0x276   :  { %5688 = vmatpush1.bf16.msra.mxu0 %v5687_v51  ;;  %v5717_v16 = vpack.c.bf16 %v4780_v20, %v4777_v12  ;;  %v4793_v51 = vld [vmem:[%s8890_s3 + $0x2b8] sm:$0xff] }
 0x277   :  { %5710 = vmatprep.subr.bf16.mxu1 %v5709_v29  ;;  %5690 = vmatprep.subr.bf16.mxu0 %v5689_v0 }
 0x278   :  { %5712 = vmatpush3.bf16.msra.mxu1 %v5709_v29  ;;  %v5699_v29 = vpack.c.bf16 %v4790_v58, %v4787_v11 }
 0x279   :  { %5714 = vmatprep.subr.bf16.mxu1 %v5713_v13 }
 0x27a   :  { %5692 = vmatpush1.bf16.msra.mxu0 %v5691_v14 }
 0x27b   :  { %5694 = vmatprep.subr.bf16.mxu0 %v5693_v46 }
 0x27c   :  { %5716 = vmatpush3.bf16.msra.mxu1 %v5713_v13  ;;  %v5729_v13 = vpack.c.bf16 %v2531_v47, %v2528_v24 }
 0x27d   :  { %5718 = vmatprep.subr.bf16.mxu1 %v5717_v16 }
 0x27e   :  { %5696 = vmatpush1.bf16.msra.mxu0 %v5695_v38  ;;  %v4795_v38 = vld [vmem:[%s8890_s3 + $0x2c8] sm:$0xff] }
 0x27f   :  { %5698 = vmatprep.subr.bf16.mxu0 %v5697_v21 }
 0x280   :  { %5720 = vmatpush3.bf16.msra.mxu1 %v5717_v16 }
 0x281   :  { %5722 = vmatprep.subr.bf16.mxu1 %v5721_v45 }
 0x282   :  { %5700 = vmatpush1.bf16.msra.mxu0 %v5699_v29 }
 0x283   :  { %2659 = vmatprep.subr.mxu0 %v4794_v33 }
 0x284   :  { %5724 = vmatpush3.bf16.msra.mxu1 %v5721_v45 }
 0x285   :  { %5726 = vmatprep.subr.bf16.mxu1 %v5725_v8 }
 0x286   :  { %2660 = vmatpush1.msra.mxu0 %v4793_v51 }
 0x287   :  { %5730 = vmatprep.subr.bf16.mxu0 %v5729_v13 }
 0x288   :  { %5728 = vmatpush3.bf16.msra.mxu1 %v5725_v8 }
 0x289   :  { %5256 = vmatprep.subr.mxu1 %v4795_v38 }
 0x28c   :  { %5257 = vmatpush3.msra.mxu1 %v4795_v38 }
 0x2b1   :  { %v2270_v0 = vpop.permute.xlu1 %2269 }
 0x2b2   :  { %v2268_v7 = vpop.permute.xlu0 %2267 }
 0x2b3   :  { %v2336_v14 = vsel %vm2333_vm4, %v2268_v7, %v2270_v0 }
 0x2b4   :  { %v7678_v46 = vmax.f32 %v7370_v23, %v2336_v14  ;;  %v2529_v23 = vld [vmem:[%s8890_s3 + $0x10] sm:$0xff] }
 0x2b5   :  { %v7693_v12 = vpack.c.bf16 %v2532_v4, %v2529_v23 }
 0x2b6   :  { %v2272_v35 = vpop.permute.xlu0 %2271  ;;  %2434 = vrot.lane.b32.xlu0 %v7678_v46, %s6395_s13 }
 0x2b7   :  { %v2337_v36 = vsel %vm2333_vm4, %v2270_v0, %v2272_v35  ;;  %5758 = vmatprep.subr.bf16.mxu1 %v7693_v12 }
 0x2b8   :  { %v2385_v39 = vmax.f32 %v7374_v27, %v2337_v36 }
 0x2ba   :  { %v2282_v21 = vpop.permute.xlu0 %2281  ;;  %v2280_v20 = vpop.permute.xlu1 %2279  ;;  %2436 = vrot.lane.b32.xlu1 %v2385_v39, %s6395_s13 }
 0x2bb   :  { %v2340_v11 = vsel %vm2333_vm4, %v2280_v20, %v2282_v21 }
 0x2bc   :  { %v7699_v27 = vmax.f32 %v7394_v54, %v2340_v11 }
 0x2be   :  { %v2262_v58 = vpop.permute.xlu0 %2261  ;;  %v2284_v16 = vpop.permute.xlu1 %2283  ;;  %2442 = vrot.lane.b32.xlu0 %v7699_v27, %s6395_s13 }
 0x2bf   :  { %v2341_v29 = vsel %vm2333_vm4, %v2282_v21, %v2284_v16 }
 0x2c0   :  { %v2389_v17 = vmax.f32 %v7397_v57, %v2341_v29 }
 0x2c2   :  { %v2294_v32 = vpop.permute.xlu1 %2293  ;;  %v2292_v45 = vpop.permute.xlu0 %2291  ;;  %2444 = vrot.lane.b32.xlu1 %v2389_v17, %s6395_s13  ;;  %2309 = vrot.lane.b32.xlu0 %v7457_v25, %s6394_s2 }
 0x2c3   :  { %v2344_v33 = vsel %vm2333_vm4, %v2292_v45, %v2294_v32 }
 0x2c4   :  { %v7715_v57 = vmax.f32 %v7418_v10, %v2344_v33 }
 0x2c6   :  { %v2296_v54 = vpop.permute.xlu0 %2295  ;;  %2311 = vrot.lane.b32.xlu1 %v7448_v40, %s6394_s2  ;;  %2313 = vrot.lane.b32.xlu0 %v7460_v26, %s6394_s2 }
 0x2c7   :  { %v2345_v24 = vsel %vm2333_vm4, %v2294_v32, %v2296_v54 }
 0x2c8   :  { %v2393_v47 = vmax.f32 %v7421_v28, %v2345_v24 }
 0x2ca   :  { %v2306_v51 = vpop.permute.xlu0 %2305  ;;  %2452 = vrot.lane.b32.xlu1 %v2393_v47, %s6395_s13  ;;  %v2304_v13 = vpop.permute.xlu1 %2303  ;;  %2450 = vrot.lane.b32.xlu0 %v7715_v57, %s6395_s13 }
 0x2cb   :  { %v2348_v0 = vsel %vm2333_vm4, %v2304_v13, %v2306_v51  ;;  %v2533_v13 = vld [vmem:[%s8890_s3 + $0x30] sm:$0xff] }
 0x2cc   :  { %v7723_v40 = vmax.f32 %v7439_v37, %v2348_v0  ;;  %v2536_v0 = vld [vmem:[%s8890_s3 + $0x48] sm:$0xff] }
 0x2ce   :  { %v2266_v26 = vpop.permute.xlu0 %2265  ;;  %2458 = vrot.lane.b32.xlu1 %v7723_v40, %s6395_s13  ;;  %v2308_v10 = vpop.permute.xlu1 %2307 }
 0x2cf   :  { %v2349_v55 = vsel %vm2333_vm4, %v2306_v51, %v2308_v10  ;;  %v5735_v10 = vpack.c.bf16 %v2536_v0, %v2533_v13  ;;  %v2557_v0 = vld [vmem:[%s8890_s3 + $0xf0] sm:$0xff] }
 0x2d0   :  { %v2397_v28 = vmax.f32 %v7442_v1, %v2349_v55 }
 0x2d2   :  { %v2276_v56 = vpop.permute.xlu0 %2275  ;;  %v2264_v7 = vpop.permute.xlu1 %2263  ;;  %2460 = vrot.lane.b32.xlu0 %v2397_v28, %s6395_s13 }
 0x2d3   :  { %v2334_v8 = vsel %vm2333_vm4, %v2262_v58, %v2264_v7  ;;  %v2335_v14 = vsel %vm2333_vm4, %v2264_v7, %v2266_v26  ;;  %v2540_v26 = vld [vmem:[%s8890_s3 + $0x68] sm:$0xff]  ;;  %v2539_v7 = vld [vmem:[%s8890_s3 + $0x60] sm:$0xff] }
 0x2d4   :  { %v7733_v37 = vmax.f32 %v7356_v43, %v2334_v8  ;;  %v2383_v35 = vmax.f32 %v7410_v62, %v2335_v14  ;;  %v2542_v8 = vld [vmem:[%s8890_s3 + $0x78] sm:$0xff] }
 0x2d6   :  { %2430 = vrot.lane.b32.xlu1 %v7733_v37, %s6395_s13  ;;  %v2274_v36 = vpop.permute.xlu1 %2273  ;;  %2432 = vrot.lane.b32.xlu0 %v2383_v35, %s6395_s13  ;;  %v2286_v38 = vpop.permute.xlu0 %2285  ;;  %v2546_v35 = vld [vmem:[%s8890_s3 + $0x98] sm:$0xff] }
 0x2d7   :  { %v2338_v1 = vsel %vm2333_vm4, %v2274_v36, %v2276_v56 }
 0x2d8   :  { %v7741_v39 = vmax.f32 %v7384_v48, %v2338_v1  ;;  %v2549_v1 = vld [vmem:[%s8890_s3 + $0xb0] sm:$0xff] }
 0x2da   :  { %2438 = vrot.lane.b32.xlu1 %v7741_v39, %s6395_s13  ;;  %v2278_v23 = vpop.permute.xlu1 %2277  ;;  %v2290_v4 = vpop.permute.xlu0 %2289 }
 0x2db   :  { %v2339_v43 = vsel %vm2333_vm4, %v2276_v56, %v2278_v23  ;;  %v2538_v23 = vld [vmem:[%s8890_s3 + $0x58] sm:$0xff] }
 0x2dc   :  { %v2387_v62 = vmax.f32 %v7490_v15, %v2339_v43  ;;  %v5739_v43 = vpack.c.bf16 %v2542_v8, %v2539_v7 }
 0x2de   :  { %v2288_v21 = vpop.permute.xlu1 %2287  ;;  %2440 = vrot.lane.b32.xlu0 %v2387_v62, %s6395_s13  ;;  %v2300_v15 = vpop.permute.xlu0 %2299 }
 0x2df   :  { %v2342_v20 = vsel %vm2333_vm4, %v2286_v38, %v2288_v21  ;;  %v2343_v11 = vsel %vm2333_vm4, %v2288_v21, %v2290_v4  ;;  %v2535_v38 = vld [vmem:[%s8890_s3 + $0x40] sm:$0xff] }
 0x2e0   :  { %v7751_v58 = vmax.f32 %v7405_v60, %v2342_v20  ;;  %v2391_v48 = vmax.f32 %v7493_v30, %v2343_v11  ;;  %v2548_v20 = vld [vmem:[%s8890_s3 + $0xa8] sm:$0xff] }
 0x2e2   :  { %2446 = vrot.lane.b32.xlu1 %v7751_v58, %s6395_s13  ;;  %v2298_v16 = vpop.permute.xlu1 %2297  ;;  %2448 = vrot.lane.b32.xlu0 %v2391_v48, %s6395_s13 }
 0x2e3   :  { %v2346_v29 = vsel %vm2333_vm4, %v2298_v16, %v2300_v15  ;;  %v5741_v16 = vpack.c.bf16 %v2549_v1, %v2546_v35  ;;  %v2563_v1 = vld [vmem:[%s8890_s3 + $0x120] sm:$0xff] }
 0x2e4   :  { %v7763_v60 = vmax.f32 %v7429_v31, %v2346_v29  ;;  %v2552_v29 = vld [vmem:[%s8890_s3 + $0xc8] sm:$0xff] }
 0x2e6   :  { %v2302_v17 = vpop.permute.xlu1 %2301  ;;  %2317 = vrot.lane.b32.xlu0 %v7465_v52, %s6394_s2  ;;  %2315 = vrot.lane.b32.xlu1 %v7475_v59, %s6394_s2 }
 0x2e7   :  { %v2347_v30 = vsel %vm2333_vm4, %v2300_v15, %v2302_v17  ;;  %v5761_v15 = vpack.c.bf16 %v2538_v23, %v2535_v38  ;;  %v2566_v38 = vld [vmem:[%s8890_s3 + $0x138] sm:$0xff] }
 0x2e8   :  { %v2395_v32 = vmax.f32 %v7531_v50, %v2347_v30  ;;  %v2530_v50 = vld [vmem:[%s8890_s3 + $0x18] sm:$0xff] }
 0x2ea   :  { %2454 = vrot.lane.b32.xlu0 %v7763_v60, %s6395_s13  ;;  %2319 = vrot.lane.b32.xlu1 %v7478_v63, %s6394_s2  ;;  %v2527_v63 = vld [vmem:[%s8890_s3] sm:$0xff] }
 0x2eb   :  { %v5731_v54 = vpack.c.bf16 %v2530_v50, %v2527_v63  ;;  %v2551_v50 = vld [vmem:[%s8890_s3 + $0xc0] sm:$0xff] }
 0x2ee   :  { %2456 = vrot.lane.b32.xlu1 %v2395_v32, %s6395_s13  ;;  %2321 = vrot.lane.b32.xlu0 %v7496_v34, %s6394_s2  ;;  %v2555_v32 = vld [vmem:[%s8890_s3 + $0xe0] sm:$0xff] }
 0x2f2   :  { %2323 = vrot.lane.b32.xlu1 %v7483_v9, %s6394_s2  ;;  %2325 = vrot.lane.b32.xlu0 %v7499_v3, %s6394_s2  ;;  %v2534_v9 = vld [vmem:[%s8890_s3 + $0x38] sm:$0xff]  ;;  %v2537_v3 = vld [vmem:[%s8890_s3 + $0x50] sm:$0xff] }
 0x2f3   :  { %v5733_v51 = vpack.c.bf16 %v2537_v3, %v2534_v9 }
 0x328   :  { %v2435_v31 = vpop.permute.xlu0 %2434 }
 0x32c   :  { %v2437_v52 = vpop.permute.xlu1 %2436 }
 0x32d   :  { %v2480_v45 = vsel %vm2478_vm5, %v2435_v31, %v2437_v52  ;;  %v2541_v31 = vld [vmem:[%s8890_s3 + $0x70] sm:$0xff] }
 0x32e   :  { %v2504_v33 = vmax.f32 %v7678_v46, %v2480_v45  ;;  %v2543_v46 = vld [vmem:[%s8890_s3 + $0x80] sm:$0xff]  ;;  %v2554_v45 = vld [vmem:[%s8890_s3 + $0xd8] sm:$0xff] }
 0x32f   :  { %v5737_v56 = vpack.c.bf16 %v2543_v46, %v2540_v26  ;;  %v5747_v13 = vpack.c.bf16 %v2554_v45, %v2551_v50  ;;  %v2560_v46 = vld [vmem:[%s8890_s3 + $0x108] sm:$0xff]  ;;  %v2569_v50 = vld [vmem:[%s8890_s3 + $0x150] sm:$0xff] }
 0x330   :  { %v2516_v24 = vmax.f32 %v2504_v33, 0.0  ;;  %v2443_v47 = vpop.permute.xlu0 %2442  ;;  %v2558_v33 = vld [vmem:[%s8890_s3 + $0xf8] sm:$0xff]  ;;  %v5751_v7 = vpack.c.bf16 %v2560_v46, %v2557_v0  ;;  %v2571_v46 = vld [vmem:[%s8890_s3 + $0x160] sm:$0xff] }
 0x332   :  { %4796 = vmatmul.mubr.msk.f32.vlgmr.msra.gmra.mrb[24].mxu0 %vm2618_vm6, %v2516_v24  ;;  %5258 = vmatprep.mubr.msk.f32.mxu1 %vm2618_vm6, %v2516_v24 }
 0x333   :  { %5732 = vmatpush1.bf16.msra.mxu0 %v5731_v54  ;;  %2701 = vmatprep.mubr.f32.mxu0 %v6391_v2  ;;  %v2561_v54 = vld [vmem:[%s8890_s3 + $0x110] sm:$0xff] }
 0x334   :  { %v2445_v55 = vpop.permute.xlu1 %2444  ;;  %v2310_v28 = vpop.permute.xlu0 %2309  ;;  %5734 = vmatprep.subr.bf16.mxu0 %v5733_v51  ;;  %v2550_v51 = vld [vmem:[%s8890_s3 + $0xb8] sm:$0xff] }
 0x335   :  { %v2482_v14 = vsel %vm2478_vm5, %v2443_v47, %v2445_v55  ;;  %v2547_v47 = vld [vmem:[%s8890_s3 + $0xa0] sm:$0xff] }
 0x336   :  { %v2506_v36 = vmax.f32 %v7699_v27, %v2482_v14  ;;  %v2545_v27 = vld [vmem:[%s8890_s3 + $0x90] sm:$0xff]  ;;  %v5769_v55 = vpack.c.bf16 %v2550_v51, %v2547_v47 }
 0x337   :  { %5736 = vmatpush1.bf16.msra.mxu0 %v5735_v10  ;;  %v2564_v10 = vld [vmem:[%s8890_s3 + $0x128] sm:$0xff]  ;;  %v4828_v47 = vld [vmem:[%s8890_s3 + $0x350] sm:$0xff] }
 0x338   :  { %v7827_v62 = vmax.f32 %v2506_v36, 0.0  ;;  %v2312_v4 = vpop.permute.xlu1 %2311  ;;  %v2314_v21 = vpop.permute.xlu0 %2313  ;;  %5738 = vmatprep.subr.bf16.mxu0 %v5737_v56  ;;  %v2556_v56 = vld [vmem:[%s8890_s3 + $0xe8] sm:$0xff] }
 0x339   :  { %v2350_v11 = vsel %vm2333_vm4, %v2310_v28, %v2312_v4  ;;  %v2351_v48 = vsel %vm2333_vm4, %v2312_v4, %v2314_v21  ;;  %v2567_v28 = vld [vmem:[%s8890_s3 + $0x140] sm:$0xff]  ;;  %v5755_v21 = vpack.c.bf16 %v2566_v38, %v2563_v1  ;;  %v4820_v38 = vld [vmem:[%s8890_s3 + $0x310] sm:$0xff] }
 0x33a   :  { %v7841_v17 = vmax.f32 %v7451_v44, %v2350_v11  ;;  %v2399_v30 = vmax.f32 %v7457_v25, %v2351_v48  ;;  %4797 = vmatmul.mubr.msk.f32.gmra.mrb[26].mxu0 %vm2618_vm6, %v7827_v62  ;;  %5259 = vmatmul.mubr.msk.f32.vlgmr.msra.gmra.mrb[24].mxu1 %vm2618_vm6, %v7827_v62  ;;  %v2544_v44 = vld [vmem:[%s8890_s3 + $0x88] sm:$0xff]  ;;  %v5743_v25 = vpack.c.bf16 %v2548_v20, %v2545_v27  ;;  %v2570_v48 = vld [vmem:[%s8890_s3 + $0x158] sm:$0xff]  ;;  %v4834_v1 = vld [vmem:[%s8890_s3 + $0x380] sm:$0xff] }
 0x33b   :  { %5740 = vmatpush1.bf16.msra.mxu0 %v5739_v43  ;;  %5760 = vmatpush3.bf16.msra.mxu1 %v7693_v12  ;;  %v5745_v12 = vpack.c.bf16 %v2555_v32, %v2552_v29  ;;  %v5765_v3 = vpack.c.bf16 %v2544_v44, %v2541_v31  ;;  %v5753_v35 = vpack.c.bf16 %v2567_v28, %v2564_v10  ;;  %v2562_v43 = vld [vmem:[%s8890_s3 + $0x118] sm:$0xff]  ;;  %v4816_v29 = vld [vmem:[%s8890_s3 + $0x2f0] sm:$0xff]  ;;  %v4815_v31 = vld [vmem:[%s8890_s3 + $0x2e8] sm:$0xff] }
 0x33c   :  { %v2453_v52 = vpop.permute.xlu1 %2452  ;;  %v2451_v63 = vpop.permute.xlu0 %2450  ;;  %2462 = vrot.lane.b32.xlu1 %v7841_v17, %s6395_s13  ;;  %2464 = vrot.lane.b32.xlu0 %v2399_v30, %s6395_s13  ;;  %v4812_v30 = vld [vmem:[%s8890_s3 + $0x2d0] sm:$0xff]  ;;  %v4814_v10 = vld [vmem:[%s8890_s3 + $0x2e0] sm:$0xff] }
 0x33d   :  { %v2484_v9 = vsel %vm2478_vm5, %v2451_v63, %v2453_v52  ;;  %5742 = vmatprep.subr.bf16.mxu0 %v5741_v16  ;;  %5762 = vmatprep.subr.bf16.mxu1 %v5761_v15  ;;  %v2565_v44 = vld [vmem:[%s8890_s3 + $0x130] sm:$0xff]  ;;  %v4822_v52 = vld [vmem:[%s8890_s3 + $0x320] sm:$0xff] }
 0x33e   :  { %v2508_v24 = vmax.f32 %v7715_v57, %v2484_v9  ;;  %2707 = vmatprep.mubr.f32.mxu0 %v6391_v2  ;;  %v5749_v57 = vpack.c.bf16 %v2561_v54, %v2558_v33  ;;  %v5787_v9 = vpack.c.bf16 %v4815_v31, %v4812_v30  ;;  %v4818_v33 = vld [vmem:[%s8890_s3 + $0x300] sm:$0xff]  ;;  %v4821_v54 = vld [vmem:[%s8890_s3 + $0x318] sm:$0xff] }
 0x33f   :  { %5744 = vmatpush1.bf16.msra.mxu0 %v5743_v25  ;;  %5764 = vmatpush3.bf16.msra.mxu1 %v5761_v15  ;;  %v2568_v25 = vld [vmem:[%s8890_s3 + $0x148] sm:$0xff] }
 0x340   :  { %v7885_v26 = vmax.f32 %v2508_v24, 0.0  ;;  %2329 = vrot.lane.b32.xlu0 %v7506_v49, %s6394_s2  ;;  %2327 = vrot.lane.b32.xlu1 %v7516_v18, %s6394_s2  ;;  %v2553_v49 = vld [vmem:[%s8890_s3 + $0xd0] sm:$0xff]  ;;  %v2459_v8 = vpop.permute.xlu1 %2458  ;;  %v4825_v24 = vld [vmem:[%s8890_s3 + $0x338] sm:$0xff] }
 0x341   :  { %5746 = vmatprep.subr.bf16.mxu0 %v5745_v12  ;;  %5766 = vmatprep.subr.bf16.mxu1 %v5765_v3  ;;  %v5773_v36 = vpack.c.bf16 %v2556_v56, %v2553_v49  ;;  %v5781_v12 = vpack.c.bf16 %v2568_v25, %v2565_v44  ;;  %v5793_v49 = vpack.c.bf16 %v4828_v47, %v4825_v24  ;;  %v4824_v56 = vld [vmem:[%s8890_s3 + $0x330] sm:$0xff] }
 0x342   :  { %4798 = vmatmul.mubr.msk.f32.gmra.mrb[28].mxu0 %vm2618_vm6, %v7885_v26  ;;  %5261 = vmatprep.mubr.msk.f32.mxu1 %vm2618_vm6, %v7885_v26 }
 0x343   :  { %5748 = vmatpush1.bf16.msra.mxu0 %v5747_v13  ;;  %5768 = vmatpush3.bf16.msra.mxu1 %v5765_v3 }
 0x344   :  { %v2461_v14 = vpop.permute.xlu0 %2460  ;;  %2331 = vrot.lane.b32.xlu1 %v7519_v19, %s6394_s2  ;;  %5750 = vmatprep.subr.bf16.mxu0 %v5749_v57  ;;  %v2559_v19 = vld [vmem:[%s8890_s3 + $0x100] sm:$0xff]  ;;  %v5791_v57 = vpack.c.bf16 %v4821_v54, %v4818_v33 }
 0x345   :  { %v2486_v23 = vsel %vm2478_vm5, %v2459_v8, %v2461_v14  ;;  %5770 = vmatprep.subr.bf16.mxu1 %v5769_v55  ;;  %2713 = vmatprep.mubr.f32.mxu0 %v6391_v2  ;;  %v5777_v16 = vpack.c.bf16 %v2562_v43, %v2559_v19  ;;  %v4831_v8 = vld [vmem:[%s8890_s3 + $0x368] sm:$0xff] }
 0x346   :  { %v2510_v4 = vmax.f32 %v7723_v40, %v2486_v23  ;;  %v4813_v40 = vld [vmem:[%s8890_s3 + $0x2d8] sm:$0xff]  ;;  %v4823_v23 = vld [vmem:[%s8890_s3 + $0x328] sm:$0xff] }
 0x347   :  { %5752 = vmatpush1.bf16.msra.mxu0 %v5751_v7  ;;  %5772 = vmatpush3.bf16.msra.mxu1 %v5769_v55  ;;  %v5785_v45 = vpack.c.bf16 %v4816_v29, %v4813_v40  ;;  %v4817_v55 = vld [vmem:[%s8890_s3 + $0x2f8] sm:$0xff]  ;;  %v4827_v7 = vld [vmem:[%s8890_s3 + $0x348] sm:$0xff] }
 0x348   :  { %v7927_v27 = vmax.f32 %v2510_v4, 0.0  ;;  %v2431_v20 = vpop.permute.xlu1 %2430  ;;  %v2433_v11 = vpop.permute.xlu0 %2432  ;;  %5754 = vmatprep.subr.bf16.mxu0 %v5753_v35  ;;  %5774 = vmatprep.subr.bf16.mxu1 %v5773_v36  ;;  %v5795_v43 = vpack.c.bf16 %v4827_v7, %v4824_v56  ;;  %v4829_v40 = vld [vmem:[%s8890_s3 + $0x358] sm:$0xff] }
 0x349   :  { %v2479_v15 = vsel %vm2478_vm5, %v2431_v20, %v2433_v11  ;;  %v4833_v20 = vld [vmem:[%s8890_s3 + $0x378] sm:$0xff] }
 0x34a   :  { %v2503_v32 = vmax.f32 %v7733_v37, %v2479_v15  ;;  %4799 = vmatmul.mubr.msk.f32.gmra.mrb[30].mxu0 %vm2618_vm6, %v7927_v27  ;;  %5262 = vmatmul.mubr.msk.f32.gmra.mrb[26].mxu1 %vm2618_vm6, %v7927_v27  ;;  %v4819_v37 = vld [vmem:[%s8890_s3 + $0x308] sm:$0xff]  ;;  %v4837_v11 = vld [vmem:[%s8890_s3 + $0x398] sm:$0xff]  ;;  %v4826_v15 = vld [vmem:[%s8890_s3 + $0x340] sm:$0xff] }
 0x34b   :  { %5756 = vmatpush1.bf16.msra.mxu0 %v5755_v21  ;;  %5776 = vmatpush3.bf16.msra.mxu1 %v5773_v36  ;;  %v5789_v3 = vpack.c.bf16 %v4822_v52, %v4819_v37  ;;  %v5813_v36 = vpack.c.bf16 %v4817_v55, %v4814_v10  ;;  %v4830_v21 = vld [vmem:[%s8890_s3 + $0x360] sm:$0xff]  ;;  %v5821_v52 = vpack.c.bf16 %v4829_v40, %v4826_v15  ;;  %v4869_v40 = vld [vmem:[%s8890_s3 + $0x458] sm:$0xff] }
 0x34c   :  { %v2515_v63 = vmax.f32 %v2503_v32, 0.0  ;;  %2845 = vmatprep.subr.mxu0 %v2570_v48  ;;  %5778 = vmatprep.subr.bf16.mxu1 %v5777_v16  ;;  %v2439_v51 = vpop.permute.xlu1 %2438  ;;  %v5817_v48 = vpack.c.bf16 %v4823_v23, %v4820_v38  ;;  %v5799_v44 = vpack.c.bf16 %v4833_v20, %v4830_v21  ;;  %v4866_v15 = vld [vmem:[%s8890_s3 + $0x440] sm:$0xff] }
 0x34d   :  { %2881 = vmatprep.mubr.f32.mxu0 %v6391_v2 }
 0x34e   :  { %5294 = vmatprep.mubr.msk.f32.mxu1 %vm2618_vm6, %v2515_v63 }
 0x34f   :  { %2846 = vmatpush1.msra.mxu0 %v2569_v50  ;;  %5780 = vmatpush3.bf16.msra.mxu1 %v5777_v16  ;;  %v4840_v16 = vld [vmem:[%s8890_s3 + $0x3b0] sm:$0xff]  ;;  %v4839_v50 = vld [vmem:[%s8890_s3 + $0x3a8] sm:$0xff] }
 0x350   :  { %4804 = vmatmul.mubr.msk.f32.vlgmr.msra.gmra.mrb[24].mxu0 %vm2618_vm6, %v2515_v63  ;;  %5786 = vmatprep.subr.bf16.mxu0 %v5785_v45  ;;  %v2441_v13 = vpop.permute.xlu0 %2440  ;;  %v5801_v37 = vpack.c.bf16 %v4840_v16, %v4837_v11  ;;  %v4836_v63 = vld [vmem:[%s8890_s3 + $0x390] sm:$0xff]  ;;  %v4846_v45 = vld [vmem:[%s8890_s3 + $0x3e0] sm:$0xff] }
 0x351   :  { %5788 = vmatpush1.bf16.msra.mxu0 %v5787_v9  ;;  %v2481_v0 = vsel %vm2478_vm5, %v2439_v51, %v2441_v13  ;;  %5782 = vmatprep.subr.bf16.mxu1 %v5781_v12  ;;  %v4832_v9 = vld [vmem:[%s8890_s3 + $0x370] sm:$0xff]  ;;  %v5803_v24 = vpack.c.bf16 %v4839_v50, %v4836_v63  ;;  %v5841_v63 = vpack.c.bf16 %v4869_v40, %v4866_v15  ;;  %v4895_v15 = vld [vmem:[%s8890_s3 + $0x528] sm:$0xff]  ;;  %v4898_v40 = vld [vmem:[%s8890_s3 + $0x540] sm:$0xff] }
 0x352   :  { %v2505_v28 = vmax.f32 %v7741_v39, %v2481_v0  ;;  %5790 = vmatprep.subr.bf16.mxu0 %v5789_v3  ;;  %2887 = vmatprep.mubr.f32.mxu0 %v6391_v2  ;;  %v4842_v0 = vld [vmem:[%s8890_s3 + $0x3c0] sm:$0xff] }
 0x353   :  { %5784 = vmatpush3.bf16.msra.mxu1 %v5781_v12  ;;  %v4835_v12 = vld [vmem:[%s8890_s3 + $0x388] sm:$0xff] }
 0x354   :  { %v8001_v14 = vmax.f32 %v2505_v28, 0.0  ;;  %v2447_v39 = vpop.permute.xlu1 %2446  ;;  %v2449_v35 = vpop.permute.xlu0 %2448  ;;  %5292 = vmatprep.subr.mxu1 %v2571_v46  ;;  %v5825_v13 = vpack.c.bf16 %v4835_v12, %v4832_v9  ;;  %v4838_v28 = vld [vmem:[%s8890_s3 + $0x3a0] sm:$0xff] }
 0x355   :  { %5792 = vmatpush1.bf16.msra.mxu0 %v5791_v57  ;;  %v2483_v19 = vsel %vm2478_vm5, %v2447_v39, %v2449_v35  ;;  %v4845_v57 = vld [vmem:[%s8890_s3 + $0x3d8] sm:$0xff]  ;;  %v4848_v39 = vld [vmem:[%s8890_s3 + $0x3f0] sm:$0xff]  ;;  %v4851_v35 = vld [vmem:[%s8890_s3 + $0x408] sm:$0xff] }
 0x356   :  { %v2507_v4 = vmax.f32 %v7751_v58, %v2483_v19  ;;  %4805 = vmatmul.mubr.msk.f32.gmra.mrb[26].mxu0 %vm2618_vm6, %v8001_v14  ;;  %5794 = vmatprep.subr.bf16.mxu0 %v5793_v49  ;;  %v5797_v58 = vpack.c.bf16 %v4834_v1, %v4831_v8  ;;  %v4841_v49 = vld [vmem:[%s8890_s3 + $0x3b8] sm:$0xff]  ;;  %v5807_v7 = vpack.c.bf16 %v4845_v57, %v4842_v0  ;;  %v4874_v9 = vld [vmem:[%s8890_s3 + $0x480] sm:$0xff]  ;;  %v4880_v0 = vld [vmem:[%s8890_s3 + $0x4b0] sm:$0xff] }
 0x357   :  { %5293 = vmatpush3.msra.mxu1 %v2571_v46  ;;  %2893 = vmatprep.mubr.f32.mxu0 %v6391_v2  ;;  %v4849_v46 = vld [vmem:[%s8890_s3 + $0x3f8] sm:$0xff]  ;;  %v5829_v1 = vpack.c.bf16 %v4841_v49, %v4838_v28  ;;  %v5811_v20 = vpack.c.bf16 %v4851_v35, %v4848_v39  ;;  %v4878_v12 = vld [vmem:[%s8890_s3 + $0x4a0] sm:$0xff]  ;;  %v4876_v57 = vld [vmem:[%s8890_s3 + $0x490] sm:$0xff] }
 0x358   :  { %v8035_v29 = vmax.f32 %v2507_v4, 0.0  ;;  %5295 = vmatmul.mubr.msk.f32.vlgmr.msra.gmra.mrb[24].mxu1 %vm2618_vm6, %v8001_v14  ;;  %5814 = vmatprep.subr.bf16.mxu1 %v5813_v36  ;;  %v2318_v30 = vpop.permute.xlu0 %2317  ;;  %v2316_v32 = vpop.permute.xlu1 %2315  ;;  %v4879_v49 = vld [vmem:[%s8890_s3 + $0x4a8] sm:$0xff]  ;;  %v4882_v39 = vld [vmem:[%s8890_s3 + $0x4c0] sm:$0xff] }
 0x359   :  { %5796 = vmatpush1.bf16.msra.mxu0 %v5795_v43  ;;  %5816 = vmatpush3.bf16.msra.mxu1 %v5813_v36  ;;  %v2352_v31 = vsel %vm2333_vm4, %v2316_v32, %v2318_v30  ;;  %v4847_v43 = vld [vmem:[%s8890_s3 + $0x3e8] sm:$0xff]  ;;  %v4868_v32 = vld [vmem:[%s8890_s3 + $0x450] sm:$0xff]  ;;  %v4890_v35 = vld [vmem:[%s8890_s3 + $0x500] sm:$0xff] }
 0x35a   :  { %v8041_v25 = vmax.f32 %v7468_v53, %v2352_v31  ;;  %4806 = vmatmul.mubr.msk.f32.gmra.mrb[28].mxu0 %vm2618_vm6, %v8035_v29  ;;  %5297 = vmatprep.mubr.msk.f32.mxu1 %vm2618_vm6, %v8035_v29  ;;  %v4843_v53 = vld [vmem:[%s8890_s3 + $0x3c8] sm:$0xff]  ;;  %v4854_v31 = vld [vmem:[%s8890_s3 + $0x420] sm:$0xff] }
 0x35b   :  { %5798 = vmatprep.subr.bf16.mxu0 %v5797_v58  ;;  %5818 = vmatprep.subr.bf16.mxu1 %v5817_v48  ;;  %v5805_v51 = vpack.c.bf16 %v4846_v45, %v4843_v53  ;;  %v4871_v45 = vld [vmem:[%s8890_s3 + $0x468] sm:$0xff] }
 0x35c   :  { %v2455_v3 = vpop.permute.xlu0 %2454  ;;  %v2320_v33 = vpop.permute.xlu1 %2319  ;;  %2466 = vrot.lane.b32.xlu0 %v8041_v25, %s6395_s13  ;;  %2899 = vmatprep.mubr.f32.mxu0 %v6391_v2 }
 0x35d   :  { %5800 = vmatpush1.bf16.msra.mxu0 %v5799_v44  ;;  %5820 = vmatpush3.bf16.msra.mxu1 %v5817_v48  ;;  %v2353_v54 = vsel %vm2333_vm4, %v2318_v30, %v2320_v33  ;;  %v4855_v48 = vld [vmem:[%s8890_s3 + $0x428] sm:$0xff]  ;;  %v4865_v30 = vld [vmem:[%s8890_s3 + $0x438] sm:$0xff]  ;;  %v4856_v33 = vld [vmem:[%s8890_s3 + $0x430] sm:$0xff] }
 0x35e   :  { %v2401_v47 = vmax.f32 %v7475_v59, %v2353_v54  ;;  %5802 = vmatprep.subr.bf16.mxu0 %v5801_v37  ;;  %5822 = vmatprep.subr.bf16.mxu1 %v5821_v52  ;;  %v4852_v59 = vld [vmem:[%s8890_s3 + $0x410] sm:$0xff]  ;;  %v5843_v50 = vpack.c.bf16 %v4868_v32, %v4865_v30  ;;  %v4870_v54 = vld [vmem:[%s8890_s3 + $0x460] sm:$0xff] }
 0x35f   :  { %v5809_v36 = vpack.c.bf16 %v4852_v59, %v4849_v46  ;;  %v4872_v37 = vld [vmem:[%s8890_s3 + $0x470] sm:$0xff]  ;;  %v4894_v30 = vld [vmem:[%s8890_s3 + $0x520] sm:$0xff] }
 0x360   :  { %v2457_v10 = vpop.permute.xlu1 %2456  ;;  %v2322_v55 = vpop.permute.xlu0 %2321  ;;  %2468 = vrot.lane.b32.xlu1 %v2401_v47, %s6395_s13  ;;  %v4873_v47 = vld [vmem:[%s8890_s3 + $0x478] sm:$0xff]  ;;  %v4884_v46 = vld [vmem:[%s8890_s3 + $0x4d0] sm:$0xff]  ;;  %v4902_v32 = vld [vmem:[%s8890_s3 + $0x560] sm:$0xff] }
 0x361   :  { %5804 = vmatpush1.bf16.msra.mxu0 %v5803_v24  ;;  %5824 = vmatpush3.bf16.msra.mxu1 %v5821_v52  ;;  %v2485_v56 = vsel %vm2478_vm5, %v2455_v3, %v2457_v10  ;;  %v4875_v52 = vld [vmem:[%s8890_s3 + $0x488] sm:$0xff]  ;;  %v4881_v3 = vld [vmem:[%s8890_s3 + $0x4b8] sm:$0xff]  ;;  %v5847_v24 = vpack.c.bf16 %v4874_v9, %v4871_v45  ;;  %v5873_v28 = vpack.c.bf16 %v4876_v57, %v4873_v47  ;;  %v4900_v45 = vld [vmem:[%s8890_s3 + $0x550] sm:$0xff] }
 0x362   :  { %v2509_v8 = vmax.f32 %v7763_v60, %v2485_v56  ;;  %5806 = vmatprep.subr.bf16.mxu0 %v5805_v51  ;;  %5826 = vmatprep.subr.bf16.mxu1 %v5825_v13  ;;  %v4844_v60 = vld [vmem:[%s8890_s3 + $0x3d0] sm:$0xff]  ;;  %v5845_v53 = vpack.c.bf16 %v4875_v52, %v4872_v37  ;;  %v5849_v51 = vpack.c.bf16 %v4881_v3, %v4878_v12  ;;  %v4887_v10 = vld [vmem:[%s8890_s3 + $0x4e8] sm:$0xff] }
 0x363   :  { %v5833_v16 = vpack.c.bf16 %v4847_v43, %v4844_v60  ;;  %v5853_v56 = vpack.c.bf16 %v4887_v10, %v4884_v46  ;;  %v4889_v43 = vld [vmem:[%s8890_s3 + $0x4f8] sm:$0xff]  ;;  %v4903_v3 = vld [vmem:[%s8890_s3 + $0x568] sm:$0xff]  ;;  %v4920_v57 = vld [vmem:[%s8890_s3 + $0x5b0] sm:$0xff] }
 0x364   :  { %v8097_v38 = vmax.f32 %v2509_v8, 0.0  ;;  %v2324_v23 = vpop.permute.xlu1 %2323  ;;  %v2326_v19 = vpop.permute.xlu0 %2325  ;;  %v4886_v8 = vld [vmem:[%s8890_s3 + $0x4e0] sm:$0xff]  ;;  %v4923_v46 = vld [vmem:[%s8890_s3 + $0x5c8] sm:$0xff] }
 0x365   :  { %5808 = vmatpush1.bf16.msra.mxu0 %v5807_v7  ;;  %5828 = vmatpush3.bf16.msra.mxu1 %v5825_v13  ;;  %v2354_v4 = vsel %vm2333_vm4, %v2322_v55, %v2324_v23  ;;  %v2355_v21 = vsel %vm2333_vm4, %v2324_v23, %v2326_v19  ;;  %v4877_v13 = vld [vmem:[%s8890_s3 + $0x498] sm:$0xff]  ;;  %v4883_v7 = vld [vmem:[%s8890_s3 + $0x4c8] sm:$0xff]  ;;  %v5877_v23 = vpack.c.bf16 %v4882_v39, %v4879_v49 }
 0x366   :  { %v8108_v11 = vmax.f32 %v7486_v41, %v2354_v4  ;;  %v2403_v58 = vmax.f32 %v7496_v34, %v2355_v21  ;;  %4807 = vmatmul.mubr.msk.f32.gmra.mrb[30].mxu0 %vm2618_vm6, %v8097_v38  ;;  %5298 = vmatmul.mubr.msk.f32.gmra.mrb[26].mxu1 %vm2618_vm6, %v8097_v38  ;;  %v4850_v41 = vld [vmem:[%s8890_s3 + $0x400] sm:$0xff]  ;;  %v4853_v34 = vld [vmem:[%s8890_s3 + $0x418] sm:$0xff]  ;;  %v5851_v59 = vpack.c.bf16 %v4880_v0, %v4877_v13  ;;  %v4892_v4 = vld [vmem:[%s8890_s3 + $0x510] sm:$0xff] }
 0x367   :  { %5810 = vmatprep.subr.bf16.mxu0 %v5809_v36  ;;  %5830 = vmatprep.subr.bf16.mxu1 %v5829_v1  ;;  %v5837_v44 = vpack.c.bf16 %v4853_v34, %v4850_v41  ;;  %v4893_v36 = vld [vmem:[%s8890_s3 + $0x518] sm:$0xff]  ;;  %v4888_v21 = vld [vmem:[%s8890_s3 + $0x4f0] sm:$0xff]  ;;  %v4891_v41 = vld [vmem:[%s8890_s3 + $0x508] sm:$0xff]  ;;  %v5925_v10 = vpack.c.bf16 %v4923_v46, %v4920_v57 }
 0x368   :  { %5330 = vmatprep.mubr.msk.f32.mxu1 %vm2618_vm6, %v8001_v14  ;;  %2470 = vrot.lane.b32.xlu0 %v8108_v11, %s6395_s13  ;;  %v4885_v19 = vld [vmem:[%s8890_s3 + $0x4d8] sm:$0xff]  ;;  %v5857_v60 = vpack.c.bf16 %v4893_v36, %v4890_v35  ;;  %v5885_v37 = vpack.c.bf16 %v4894_v30, %v4891_v41  ;;  %v4918_v35 = vld [vmem:[%s8890_s3 + $0x5a0] sm:$0xff]  ;;  %v4931_v41 = vld [vmem:[%s8890_s3 + $0x608] sm:$0xff] }
 0x369   :  { %5812 = vmatpush1.bf16.msra.mxu0 %v5811_v20  ;;  %5832 = vmatpush3.bf16.msra.mxu1 %v5829_v1  ;;  %v5855_v1 = vpack.c.bf16 %v4886_v8, %v4883_v7  ;;  %v4896_v20 = vld [vmem:[%s8890_s3 + $0x530] sm:$0xff]  ;;  %v4909_v0 = vld [vmem:[%s8890_s3 + $0x598] sm:$0xff]  ;;  %v4930_v30 = vld [vmem:[%s8890_s3 + $0x600] sm:$0xff] }
 0x36a   :  { %2472 = vrot.lane.b32.xlu1 %v2403_v58, %s6395_s13  ;;  %3068 = vmatprep.subr.mxu0 %v4855_v48  ;;  %v4899_v58 = vld [vmem:[%s8890_s3 + $0x548] sm:$0xff]  ;;  %v5859_v48 = vpack.c.bf16 %v4892_v4, %v4889_v43  ;;  %v4921_v36 = vld [vmem:[%s8890_s3 + $0x5b8] sm:$0xff]  ;;  %v4952_v46 = vld [vmem:[%s8890_s3 + $0x6b0] sm:$0xff] }
 0x36b   :  { %5834 = vmatprep.subr.bf16.mxu1 %v5833_v16  ;;  %3104 = vmatprep.mubr.f32.mxu0 %v6391_v2  ;;  %v5861_v34 = vpack.c.bf16 %v4899_v58, %v4896_v20  ;;  %v5899_v43 = vpack.c.bf16 %v4921_v36, %v4918_v35  ;;  %v4924_v20 = vld [vmem:[%s8890_s3 + $0x5d0] sm:$0xff]  ;;  %v4927_v58 = vld [vmem:[%s8890_s3 + $0x5e8] sm:$0xff]  ;;  %v4949_v57 = vld [vmem:[%s8890_s3 + $0x698] sm:$0xff] }
 0x36c   :  { %v4958_v35 = vld [vmem:[%s8890_s3 + $0x6e0] sm:$0xff]  ;;  %v4956_v36 = vld [vmem:[%s8890_s3 + $0x6d0] sm:$0xff] }
 0x36d   :  { %3069 = vmatpush1.msra.mxu0 %v4854_v31  ;;  %5836 = vmatpush3.bf16.msra.mxu1 %v5833_v16  ;;  %v5881_v16 = vpack.c.bf16 %v4888_v21, %v4885_v19  ;;  %v4905_v31 = vld [vmem:[%s8890_s3 + $0x578] sm:$0xff] }
 0x36e   :  { %4857 = vmatmul.mubr.msk.f32.vlgmr.msra.gmra.mrb[24].mxu0 %vm2618_vm6, %v8001_v14  ;;  %5838 = vmatprep.subr.bf16.mxu1 %v5837_v44  ;;  %v4867_v14 = vld [vmem:[%s8890_s3 + $0x448] sm:$0xff]  ;;  %v5865_v52 = vpack.c.bf16 %v4905_v31, %v4902_v32  ;;  %v4929_v19 = vld [vmem:[%s8890_s3 + $0x5f8] sm:$0xff] }
 0x36f   :  { %3110 = vmatprep.mubr.f32.mxu0 %v6391_v2  ;;  %5842 = vmatprep.subr.bf16.mxu0 %v5841_v63  ;;  %v5869_v55 = vpack.c.bf16 %v4870_v54, %v4867_v14  ;;  %v4901_v63 = vld [vmem:[%s8890_s3 + $0x558] sm:$0xff]  ;;  %v4908_v14 = vld [vmem:[%s8890_s3 + $0x590] sm:$0xff]  ;;  %v4919_v54 = vld [vmem:[%s8890_s3 + $0x5a8] sm:$0xff] }
 0x370   :  { %5844 = vmatpush1.bf16.msra.mxu0 %v5843_v50  ;;  %v4904_v50 = vld [vmem:[%s8890_s3 + $0x570] sm:$0xff]  ;;  %v4933_v32 = vld [vmem:[%s8890_s3 + $0x618] sm:$0xff] }
 0x371   :  { %5840 = vmatpush3.bf16.msra.mxu1 %v5837_v44  ;;  %5846 = vmatprep.subr.bf16.mxu0 %v5845_v53  ;;  %v5863_v44 = vpack.c.bf16 %v4898_v40, %v4895_v15  ;;  %v4897_v53 = vld [vmem:[%s8890_s3 + $0x538] sm:$0xff]  ;;  %v5867_v9 = vpack.c.bf16 %v4904_v50, %v4901_v63  ;;  %v5903_v15 = vpack.c.bf16 %v4927_v58, %v4924_v20  ;;  %v4972_v20 = vld [vmem:[%s8890_s3 + $0x710] sm:$0xff]  ;;  %v4975_v58 = vld [vmem:[%s8890_s3 + $0x728] sm:$0xff] }
 0x372   :  { %4858 = vmatmul.mubr.msk.f32.gmra.mrb[26].mxu0 %vm2618_vm6, %v8035_v29  ;;  %5328 = vmatprep.subr.mxu1 %v4856_v33  ;;  %v5889_v12 = vpack.c.bf16 %v4900_v45, %v4897_v53  ;;  %v4941_v63 = vld [vmem:[%s8890_s3 + $0x658] sm:$0xff]  ;;  %v5907_v50 = vpack.c.bf16 %v4933_v32, %v4930_v30  ;;  %v4936_v45 = vld [vmem:[%s8890_s3 + $0x630] sm:$0xff] }
 0x373   :  { %3116 = vmatprep.mubr.f32.mxu0 %v6391_v2 }
 0x374   :  { %5848 = vmatpush1.bf16.msra.mxu0 %v5847_v24  ;;  %v4922_v24 = vld [vmem:[%s8890_s3 + $0x5c0] sm:$0xff] }
 0x375   :  { %5329 = vmatpush3.msra.mxu1 %v4856_v33  ;;  %5850 = vmatprep.subr.bf16.mxu0 %v5849_v51  ;;  %v4906_v33 = vld [vmem:[%s8890_s3 + $0x580] sm:$0xff]  ;;  %v4907_v51 = vld [vmem:[%s8890_s3 + $0x588] sm:$0xff]  ;;  %v5897_v13 = vpack.c.bf16 %v4922_v24, %v4919_v54 }
 0x376   :  { %4859 = vmatmul.mubr.msk.f32.gmra.mrb[28].mxu0 %vm2618_vm6, %v8097_v38  ;;  %5331 = vmatmul.mubr.msk.f32.vlgmr.msra.gmra.mrb[24].mxu1 %vm2618_vm6, %v8035_v29  ;;  %v5893_v47 = vpack.c.bf16 %v4906_v33, %v4903_v3  ;;  %v4943_v3 = vld [vmem:[%s8890_s3 + $0x668] sm:$0xff]  ;;  %v4946_v33 = vld [vmem:[%s8890_s3 + $0x680] sm:$0xff] }
 0x377   :  { %5333 = vmatprep.mubr.msk.f32.mxu1 %vm2618_vm6, %v8097_v38  ;;  %5870 = vmatprep.subr.bf16.mxu1 %v5869_v55  ;;  %v4947_v54 = vld [vmem:[%s8890_s3 + $0x688] sm:$0xff] }
 0x378   :  { %5872 = vmatpush3.bf16.msra.mxu1 %v5869_v55  ;;  %5852 = vmatpush1.bf16.msra.mxu0 %v5851_v59 }
 0x379   :  { %5874 = vmatprep.subr.bf16.mxu1 %v5873_v28  ;;  %5854 = vmatprep.subr.bf16.mxu0 %v5853_v56 }
 0x37a   :  { %3122 = vmatprep.mubr.f32.mxu0 %v6391_v2 }
 0x37c   :  { %5876 = vmatpush3.bf16.msra.mxu1 %v5873_v28  ;;  %5856 = vmatpush1.bf16.msra.mxu0 %v5855_v1 }
 0x37d   :  { %5878 = vmatprep.subr.bf16.mxu1 %v5877_v23  ;;  %5858 = vmatprep.subr.bf16.mxu0 %v5857_v60 }
 0x380   :  { %5880 = vmatpush3.bf16.msra.mxu1 %v5877_v23  ;;  %5860 = vmatpush1.bf16.msra.mxu0 %v5859_v48  ;;  %v4928_v23 = vld [vmem:[%s8890_s3 + $0x5f0] sm:$0xff] }
 0x381   :  { %5882 = vmatprep.subr.bf16.mxu1 %v5881_v16  ;;  %5862 = vmatprep.subr.bf16.mxu0 %v5861_v34  ;;  %v4934_v34 = vld [vmem:[%s8890_s3 + $0x620] sm:$0xff] }
 0x382   :  { %v5905_v40 = vpack.c.bf16 %v4934_v34, %v4931_v41 }
 0x384   :  { %5884 = vmatpush3.bf16.msra.mxu1 %v5881_v16  ;;  %5864 = vmatpush1.bf16.msra.mxu0 %v5863_v44  ;;  %v4937_v44 = vld [vmem:[%s8890_s3 + $0x638] sm:$0xff] }
 0x385   :  { %5886 = vmatprep.subr.bf16.mxu1 %v5885_v37  ;;  %5866 = vmatprep.subr.bf16.mxu0 %v5865_v52  ;;  %v4938_v52 = vld [vmem:[%s8890_s3 + $0x640] sm:$0xff] }
 0x388   :  { %5888 = vmatpush3.bf16.msra.mxu1 %v5885_v37  ;;  %5868 = vmatpush1.bf16.msra.mxu0 %v5867_v9  ;;  %v4940_v37 = vld [vmem:[%s8890_s3 + $0x650] sm:$0xff]  ;;  %v4939_v9 = vld [vmem:[%s8890_s3 + $0x648] sm:$0xff] }
 0x389   :  { %5890 = vmatprep.subr.bf16.mxu1 %v5889_v12  ;;  %3303 = vmatprep.subr.mxu0 %v4908_v14  ;;  %v5909_v53 = vpack.c.bf16 %v4940_v37, %v4937_v44  ;;  %v4944_v14 = vld [vmem:[%s8890_s3 + $0x670] sm:$0xff]  ;;  %v5911_v24 = vpack.c.bf16 %v4939_v9, %v4936_v45  ;;  %v4971_v44 = vld [vmem:[%s8890_s3 + $0x708] sm:$0xff]  ;;  %v4974_v37 = vld [vmem:[%s8890_s3 + $0x720] sm:$0xff] }
 0x38a   :  { %v4977_v9 = vld [vmem:[%s8890_s3 + $0x738] sm:$0xff] }
 0x38c   :  { %5892 = vmatpush3.bf16.msra.mxu1 %v5889_v12  ;;  %3304 = vmatpush1.msra.mxu0 %v4907_v51  ;;  %v5937_v12 = vpack.c.bf16 %v4941_v63, %v4938_v52  ;;  %v4942_v51 = vld [vmem:[%s8890_s3 + $0x660] sm:$0xff]  ;;  %v4979_v63 = vld [vmem:[%s8890_s3 + $0x748] sm:$0xff] }
 0x38d   :  { %5894 = vmatprep.subr.bf16.mxu1 %v5893_v47  ;;  %5898 = vmatprep.subr.bf16.mxu0 %v5897_v13  ;;  %v4945_v13 = vld [vmem:[%s8890_s3 + $0x678] sm:$0xff]  ;;  %v4978_v52 = vld [vmem:[%s8890_s3 + $0x740] sm:$0xff] }
 0x390   :  { %5896 = vmatpush3.bf16.msra.mxu1 %v5893_v47  ;;  %v5913_v47 = vpack.c.bf16 %v4946_v33, %v4943_v3 }
 0x391   :  { %5364 = vmatprep.subr.mxu1 %v4909_v0 }
 0x394   :  { %5365 = vmatpush3.msra.mxu1 %v4909_v0  ;;  %v5941_v0 = vpack.c.bf16 %v4947_v54, %v4944_v14  ;;  %v4984_v54 = vld [vmem:[%s8890_s3 + $0x770] sm:$0xff] }
 0x395   :  { %5926 = vmatprep.subr.bf16.mxu1 %v5925_v10 }
 0x3ae   :  { %v2463_v55 = vpop.permute.xlu1 %2462  ;;  %v2465_v59 = vpop.permute.xlu0 %2464 }
 0x3af   :  { %v2487_v28 = vsel %vm2478_vm5, %v2463_v55, %v2465_v59  ;;  %v4953_v55 = vld [vmem:[%s8890_s3 + $0x6b8] sm:$0xff]  ;;  %v5915_v59 = vpack.c.bf16 %v4945_v13, %v4942_v51  ;;  %v4988_v13 = vld [vmem:[%s8890_s3 + $0x790] sm:$0xff] }
 0x3b0   :  { %v2511_v49 = vmax.f32 %v7841_v17, %v2487_v28  ;;  %v4925_v17 = vld [vmem:[%s8890_s3 + $0x5d8] sm:$0xff]  ;;  %v5917_v28 = vpack.c.bf16 %v4952_v46, %v4949_v57  ;;  %v4983_v57 = vld [vmem:[%s8890_s3 + $0x768] sm:$0xff]  ;;  %v4986_v46 = vld [vmem:[%s8890_s3 + $0x780] sm:$0xff] }
 0x3b1   :  { %v5901_v21 = vpack.c.bf16 %v4928_v23, %v4925_v17  ;;  %v4959_v17 = vld [vmem:[%s8890_s3 + $0x6e8] sm:$0xff] }
 0x3b2   :  { %v8298_v56 = vmax.f32 %v2511_v49, 0.0  ;;  %v2330_v7 = vpop.permute.xlu0 %2329  ;;  %v2328_v8 = vpop.permute.xlu1 %2327  ;;  %v4948_v49 = vld [vmem:[%s8890_s3 + $0x690] sm:$0xff] }
 0x3b3   :  { %v2356_v39 = vsel %vm2333_vm4, %v2328_v8, %v2330_v7 }
 0x3b4   :  { %v8308_v1 = vmax.f32 %v7509_v61, %v2356_v39  ;;  %4860 = vmatmul.mubr.msk.f32.gmra.mrb[30].mxu0 %vm2618_vm6, %v8298_v56  ;;  %5334 = vmatmul.mubr.msk.f32.gmra.mrb[26].mxu1 %vm2618_vm6, %v8298_v56  ;;  %v4926_v61 = vld [vmem:[%s8890_s3 + $0x5e0] sm:$0xff]  ;;  %v4955_v39 = vld [vmem:[%s8890_s3 + $0x6c8] sm:$0xff] }
 0x3b5   :  { %5366 = vmatprep.mubr.msk.f32.mxu1 %vm2618_vm6, %v7827_v62  ;;  %3339 = vmatprep.mubr.f32.mxu0 %v6391_v2  ;;  %v5929_v16 = vpack.c.bf16 %v4929_v19, %v4926_v61  ;;  %v5921_v61 = vpack.c.bf16 %v4958_v35, %v4955_v39  ;;  %v4954_v19 = vld [vmem:[%s8890_s3 + $0x6c0] sm:$0xff]  ;;  %v4992_v35 = vld [vmem:[%s8890_s3 + $0x7b0] sm:$0xff] }
 0x3b6   :  { %2474 = vrot.lane.b32.xlu0 %v8308_v1, %s6395_s13  ;;  %v2332_v60 = vpop.permute.xlu1 %2331 }
 0x3b7   :  { %v2357_v4 = vsel %vm2333_vm4, %v2330_v7, %v2332_v60  ;;  %v4951_v7 = vld [vmem:[%s8890_s3 + $0x6a8] sm:$0xff]  ;;  %v4957_v60 = vld [vmem:[%s8890_s3 + $0x6d8] sm:$0xff] }
 0x3b8   :  { %v2405_v48 = vmax.f32 %v7516_v18, %v2357_v4  ;;  %4910 = vmatmul.mubr.msk.f32.vlgmr.msra.gmra.mrb[24].mxu0 %vm2618_vm6, %v7827_v62  ;;  %5367 = vmatmul.mubr.msk.f32.vlgmr.msra.gmra.mrb[24].mxu1 %vm2618_vm6, %v7885_v26  ;;  %v4932_v18 = vld [vmem:[%s8890_s3 + $0x610] sm:$0xff]  ;;  %v4935_v62 = vld [vmem:[%s8890_s3 + $0x628] sm:$0xff]  ;;  %v5919_v23 = vpack.c.bf16 %v4951_v7, %v4948_v49  ;;  %v5923_v4 = vpack.c.bf16 %v4957_v60, %v4954_v19  ;;  %v4994_v7 = vld [vmem:[%s8890_s3 + $0x7c0] sm:$0xff] }
 0x3b9   :  { %5369 = vmatprep.mubr.msk.f32.mxu1 %vm2618_vm6, %v7927_v27  ;;  %3345 = vmatprep.mubr.f32.mxu0 %v6391_v2  ;;  %v5933_v31 = vpack.c.bf16 %v4935_v62, %v4932_v18  ;;  %v4960_v18 = vld [vmem:[%s8890_s3 + $0x6f0] sm:$0xff]  ;;  %v5953_v62 = vpack.c.bf16 %v4975_v58, %v4972_v20  ;;  %v4991_v49 = vld [vmem:[%s8890_s3 + $0x7a8] sm:$0xff]  ;;  %v4998_v20 = vld [vmem:[%s8890_s3 + $0x7e0] sm:$0xff] }
 0x3ba   :  { %2476 = vrot.lane.b32.xlu1 %v2405_v48, %s6395_s13  ;;  %5900 = vmatpush1.bf16.msra.mxu0 %v5899_v43  ;;  %v5949_v43 = vpack.c.bf16 %v4959_v17, %v4956_v36  ;;  %v4962_v48 = vld [vmem:[%s8890_s3 + $0x700] sm:$0xff]  ;;  %v4996_v36 = vld [vmem:[%s8890_s3 + $0x7d0] sm:$0xff]  ;;  %v5993_v17 = vpack.c.bf16 %v4994_v7, %v4991_v49  ;;  %v5005_v58 = vld [vmem:[%s8890_s3 + $0x818] sm:$0xff]  ;;  %s6396_s13 = smov 96  }
 0x3bb   :  { %5928 = vmatpush3.bf16.msra.mxu1 %v5925_v10  ;;  %5902 = vmatprep.subr.bf16.mxu0 %v5901_v21  ;;  %v4950_v10 = vld [vmem:[%s8890_s3 + $0x6a0] sm:$0xff]  ;;  %v4961_v21 = vld [vmem:[%s8890_s3 + $0x6f8] sm:$0xff]  ;;  %v5000_v19 = vld [vmem:[%s8890_s3 + $0x7f0] sm:$0xff] }
 0x3bc   :  { %4911 = vmatmul.mubr.msk.f32.gmra.mrb[26].mxu0 %vm2618_vm6, %v7885_v26  ;;  %5930 = vmatprep.subr.bf16.mxu1 %v5929_v16  ;;  %v5945_v8 = vpack.c.bf16 %v4953_v55, %v4950_v10  ;;  %v4993_v55 = vld [vmem:[%s8890_s3 + $0x7b8] sm:$0xff]  ;;  %v5024_v7 = vld [vmem:[%s8892_s5 + $0x50] sm:$0xff] }
 0x3bd   :  { %3351 = vmatprep.mubr.f32.mxu0 %v6391_v2 }
 0x3be   :  { %5904 = vmatpush1.bf16.msra.mxu0 %v5903_v15  ;;  %v4973_v15 = vld [vmem:[%s8890_s3 + $0x718] sm:$0xff] }
 0x3bf   :  { %5932 = vmatpush3.bf16.msra.mxu1 %v5929_v16  ;;  %5906 = vmatprep.subr.bf16.mxu0 %v5905_v40  ;;  %v4976_v40 = vld [vmem:[%s8890_s3 + $0x730] sm:$0xff] }
 0x3c0   :  { %4912 = vmatmul.mubr.msk.f32.gmra.mrb[28].mxu0 %vm2618_vm6, %v7927_v27  ;;  %5934 = vmatprep.subr.bf16.mxu1 %v5933_v31 }
 0x3c1   :  { %3357 = vmatprep.mubr.f32.mxu0 %v6391_v2 }
 0x3c2   :  { %5908 = vmatpush1.bf16.msra.mxu0 %v5907_v50  ;;  %v4982_v50 = vld [vmem:[%s8890_s3 + $0x760] sm:$0xff] }
 0x3c3   :  { %5936 = vmatpush3.bf16.msra.mxu1 %v5933_v31  ;;  %5910 = vmatprep.subr.bf16.mxu0 %v5909_v53  ;;  %v5981_v31 = vpack.c.bf16 %v4976_v40, %v4973_v15  ;;  %v5955_v53 = vpack.c.bf16 %v4974_v37, %v4971_v44  ;;  %v5985_v33 = vpack.c.bf16 %v4982_v50, %v4979_v63  ;;  %v5004_v15 = vld [vmem:[%s8890_s3 + $0x810] sm:$0xff]  ;;  %v5007_v63 = vld [vmem:[%s8890_s3 + $0x828] sm:$0xff]  ;;  %v5010_v50 = vld [vmem:[%s8890_s3 + $0x840] sm:$0xff] }
 0x3c4   :  { %5938 = vmatprep.subr.bf16.mxu1 %v5937_v12  ;;  %v5008_v40 = vld [vmem:[%s8890_s3 + $0x830] sm:$0xff] }
 0x3c5   :  { %v5012_v44 = vld [vmem:[%s8890_s3 + $0x850] sm:$0xff] }
 0x3c6   :  { %5912 = vmatpush1.bf16.msra.mxu0 %v5911_v24  ;;  %v4987_v24 = vld [vmem:[%s8890_s3 + $0x788] sm:$0xff] }
 0x3c7   :  { %5940 = vmatpush3.bf16.msra.mxu1 %v5937_v12  ;;  %5914 = vmatprep.subr.bf16.mxu0 %v5913_v47  ;;  %v4980_v12 = vld [vmem:[%s8890_s3 + $0x750] sm:$0xff]  ;;  %v5961_v10 = vpack.c.bf16 %v4987_v24, %v4984_v54 }
 0x3c8   :  { %5942 = vmatprep.subr.bf16.mxu1 %v5941_v0  ;;  %v5959_v51 = vpack.c.bf16 %v4980_v12, %v4977_v9  ;;  %v5015_v9 = vld [vmem:[%s8890_s3 + $0x868] sm:$0xff]  ;;  %v5013_v12 = vld [vmem:[%s8890_s3 + $0x858] sm:$0xff] }
 0x3ca   :  { %5916 = vmatpush1.bf16.msra.mxu0 %v5915_v59 }
 0x3cb   :  { %5944 = vmatpush3.bf16.msra.mxu1 %v5941_v0  ;;  %5918 = vmatprep.subr.bf16.mxu0 %v5917_v28 }
 0x3cc   :  { %5946 = vmatprep.subr.bf16.mxu1 %v5945_v8 }
 0x3ce   :  { %5920 = vmatpush1.bf16.msra.mxu0 %v5919_v23  ;;  %v2467_v16 = vpop.permute.xlu0 %2466  ;;  %v4999_v23 = vld [vmem:[%s8890_s3 + $0x7e8] sm:$0xff] }
 0x3cf   :  { %5948 = vmatpush3.bf16.msra.mxu1 %v5945_v8  ;;  %5922 = vmatprep.subr.bf16.mxu0 %v5921_v61  ;;  %v5963_v8 = vpack.c.bf16 %v4986_v46, %v4983_v57  ;;  %v4997_v61 = vld [vmem:[%s8890_s3 + $0x7d8] sm:$0xff] }
 0x3d0   :  { %5950 = vmatprep.subr.bf16.mxu1 %v5949_v43 }
 0x3d2   :  { %v2469_v41 = vpop.permute.xlu1 %2468  ;;  %5924 = vmatpush1.bf16.msra.mxu0 %v5923_v4  ;;  %v5997_v4 = vpack.c.bf16 %v5000_v19, %v4997_v61  ;;  %v4047_v61 = vld [vmem:[%s8892_s5 + $0x8] sm:$0xff] }
 0x3d3   :  { %v2488_v34 = vsel %vm2478_vm5, %v2467_v16, %v2469_v41  ;;  %5952 = vmatpush3.bf16.msra.mxu1 %v5949_v43  ;;  %3538 = vmatprep.subr.mxu0 %v4961_v21  ;;  %v5969_v43 = vpack.c.bf16 %v4999_v23, %v4996_v36  ;;  %v4995_v21 = vld [vmem:[%s8890_s3 + $0x7c8] sm:$0xff]  ;;  %v5006_v16 = vld [vmem:[%s8890_s3 + $0x820] sm:$0xff] }
 0x3d4   :  { %v2512_v30 = vmax.f32 %v8041_v25, %v2488_v34  ;;  %5400 = vmatprep.subr.mxu1 %v4962_v48  ;;  %v4981_v25 = vld [vmem:[%s8890_s3 + $0x758] sm:$0xff]  ;;  %v5971_v41 = vpack.c.bf16 %v4998_v20, %v4995_v21  ;;  %v4046_v23 = vld [vmem:[%s8892_s5] sm:$0xff] }
 0x3d5   :  { %v5957_v3 = vpack.c.bf16 %v4981_v25, %v4978_v52 }
 0x3d6   :  { %v8466_v32 = vmax.f32 %v2512_v30, 0.0  ;;  %3539 = vmatpush1.msra.mxu0 %v4960_v18  ;;  %v5011_v30 = vld [vmem:[%s8890_s3 + $0x848] sm:$0xff] }
 0x3d7   :  { %5401 = vmatpush3.msra.mxu1 %v4962_v48  ;;  %5954 = vmatprep.subr.bf16.mxu0 %v5953_v62  ;;  %v5003_v48 = vld [vmem:[%s8890_s3 + $0x808] sm:$0xff]  ;;  %v5001_v62 = vld [vmem:[%s8890_s3 + $0x7f8] sm:$0xff]  ;;  %v5977_v52 = vpack.c.bf16 %v5011_v30, %v5008_v40  ;;  %v4050_v30 = vld [vmem:[%s8892_s5 + $0x20] sm:$0xff] }
 0x3d8   :  { %4913 = vmatmul.mubr.msk.f32.gmra.mrb[30].mxu0 %vm2618_vm6, %v8466_v32  ;;  %5370 = vmatmul.mubr.msk.f32.gmra.mrb[26].mxu1 %vm2618_vm6, %v8466_v32  ;;  %v6001_v18 = vpack.c.bf16 %v5006_v16, %v5003_v48  ;;  %v5975_v37 = vpack.c.bf16 %v5004_v15, %v5001_v62  ;;  %v5028_v48 = vld [vmem:[%s8892_s5 + $0x70] sm:$0xff]  ;;  %v5029_v16 = vld [vmem:[%s8892_s5 + $0x78] sm:$0xff]  ;;  %v5030_v15 = vld [vmem:[%s8892_s5 + $0x80] sm:$0xff] }
 0x3d9   :  { %5402 = vmatprep.mubr.msk.f32.mxu1 %vm2618_vm6, %v8035_v29  ;;  %3574 = vmatprep.mubr.f32.mxu0 %v6391_v2  ;;  %v5031_v40 = vld [vmem:[%s8892_s5 + $0x88] sm:$0xff] }
 0x3da   :  { %v2471_v45 = vpop.permute.xlu0 %2470  ;;  %5982 = vmatprep.subr.bf16.mxu1 %v5981_v31 }
 0x3dc   :  { %v2473_v14 = vpop.permute.xlu1 %2472  ;;  %4963 = vmatmul.mubr.msk.f32.vlgmr.msra.gmra.mrb[24].mxu0 %vm2618_vm6, %v8035_v29  ;;  %5403 = vmatmul.mubr.msk.f32.vlgmr.msra.gmra.mrb[24].mxu1 %vm2618_vm6, %v8097_v38  ;;  %v4985_v29 = vld [vmem:[%s8890_s3 + $0x778] sm:$0xff] }
 0x3dd   :  { %v2489_v47 = vsel %vm2478_vm5, %v2471_v45, %v2473_v14  ;;  %5956 = vmatpush1.bf16.msra.mxu0 %v5955_v53  ;;  %5984 = vmatpush3.bf16.msra.mxu1 %v5981_v31  ;;  %v5989_v28 = vpack.c.bf16 %v4988_v13, %v4985_v29  ;;  %v5009_v31 = vld [vmem:[%s8890_s3 + $0x838] sm:$0xff]  ;;  %v5979_v53 = vpack.c.bf16 %v5010_v50, %v5007_v63  ;;  %v5014_v45 = vld [vmem:[%s8890_s3 + $0x860] sm:$0xff]  ;;  %v4052_v63 = vld [vmem:[%s8892_s5 + $0x30] sm:$0xff] }
 0x3de   :  { %v2513_v0 = vmax.f32 %v8108_v11, %v2489_v47  ;;  %5405 = vmatprep.mubr.msk.f32.mxu1 %vm2618_vm6, %v8298_v56  ;;  %3580 = vmatprep.mubr.f32.mxu0 %v6391_v2  ;;  %v4990_v11 = vld [vmem:[%s8890_s3 + $0x7a0] sm:$0xff]  ;;  %v6005_v25 = vpack.c.bf16 %v5012_v44, %v5009_v31  ;;  %v6019_v31 = vpack.c.bf16 %v5031_v40, %v5030_v15  ;;  %v4051_v44 = vld [vmem:[%s8892_s5 + $0x28] sm:$0xff]  ;;  %v5051_v15 = vld [vmem:[%s8892_s5 + $0x110] sm:$0xff] }
 0x3df   :  { %5958 = vmatprep.subr.bf16.mxu0 %v5957_v3  ;;  %5986 = vmatprep.subr.bf16.mxu1 %v5985_v33  ;;  %v5965_v39 = vpack.c.bf16 %v4993_v55, %v4990_v11  ;;  %v5052_v40 = vld [vmem:[%s8892_s5 + $0x118] sm:$0xff] }
 0x3e0   :  { %v2525_v59 = vmax.f32 %v2513_v0, 0.0  ;;  %4964 = vmatmul.mubr.msk.f32.gmra.mrb[26].mxu0 %vm2618_vm6, %v8097_v38  ;;  %v4989_v38 = vld [vmem:[%s8890_s3 + $0x798] sm:$0xff] }
 0x3e1   :  { %5960 = vmatpush1.bf16.msra.mxu0 %v5959_v51  ;;  %5988 = vmatpush3.bf16.msra.mxu1 %v5985_v33  ;;  %v5967_v60 = vpack.c.bf16 %v4992_v35, %v4989_v38 }
 0x3e2   :  { %5406 = vmatmul.mubr.msk.f32.gmra.mrb[26].mxu1 %vm2618_vm6, %v2525_v59  ;;  %3586 = vmatprep.mubr.f32.mxu0 %v6391_v2 }
 0x3e3   :  { %5438 = vmatprep.mubr.msk.f32.mxu1 %vm2618_vm6, %v7885_v26  ;;  %5962 = vmatprep.subr.bf16.mxu0 %v5961_v10 }
 0x3e4   :  { %5990 = vmatprep.subr.bf16.mxu1 %v5989_v28  ;;  %4965 = vmatmul.mubr.msk.f32.gmra.mrb[28].mxu0 %vm2618_vm6, %v8298_v56  ;;  %v5002_v56 = vld [vmem:[%s8890_s3 + $0x800] sm:$0xff] }
 0x3e5   :  { %5964 = vmatpush1.bf16.msra.mxu0 %v5963_v8  ;;  %5992 = vmatpush3.bf16.msra.mxu1 %v5989_v28  ;;  %v5973_v34 = vpack.c.bf16 %v5005_v58, %v5002_v56  ;;  %v5025_v8 = vld [vmem:[%s8892_s5 + $0x58] sm:$0xff] }
 0x3e6   :  { %3592 = vmatprep.mubr.f32.mxu0 %v6391_v2  ;;  %5966 = vmatprep.subr.bf16.mxu0 %v5965_v39  ;;  %v5026_v39 = vld [vmem:[%s8892_s5 + $0x60] sm:$0xff]  ;;  %v6010_v36 = vpack.c.bf16 %v5025_v8, %v5024_v7 }
 0x3e7   :  { %5994 = vmatprep.subr.bf16.mxu1 %v5993_v17 }
 0x3e8   :  { %4966 = vmatmul.mubr.msk.f32.gmra.mrb[30].mxu0 %vm2618_vm6, %v2525_v59 }
 0x3e9   :  { %5968 = vmatpush1.bf16.msra.mxu0 %v5967_v60  ;;  %5996 = vmatpush3.bf16.msra.mxu1 %v5993_v17  ;;  %v5027_v17 = vld [vmem:[%s8892_s5 + $0x68] sm:$0xff] }
 0x3ea   :  { %5970 = vmatprep.subr.bf16.mxu0 %v5969_v43  ;;  %5998 = vmatprep.subr.bf16.mxu1 %v5997_v4  ;;  %v6013_v56 = vpack.c.bf16 %v5027_v17, %v5026_v39 }
 0x3eb   :  { %3809 = vmatprep.mubr.f32.mxu0 %v6391_v2 }
 0x3ed   :  { %5972 = vmatpush1.bf16.msra.mxu0 %v5971_v41  ;;  %6000 = vmatpush3.bf16.msra.mxu1 %v5997_v4  ;;  %v6025_v4 = vpack.c.bf16 %v4047_v61, %v4046_v23  ;;  %v4048_v41 = vld [vmem:[%s8892_s5 + $0x10] sm:$0xff]  ;;  %v5039_v23 = vld [vmem:[%s8892_s5 + $0xb8] sm:$0xff] }
 0x3ee   :  { %5974 = vmatprep.subr.bf16.mxu0 %v5973_v34  ;;  %6002 = vmatprep.subr.bf16.mxu1 %v6001_v18  ;;  %v6016_v34 = vpack.c.bf16 %v5029_v16, %v5028_v48  ;;  %v5047_v61 = vld [vmem:[%s8892_s5 + $0xf0] sm:$0xff]  ;;  %v5049_v48 = vld [vmem:[%s8892_s5 + $0x100] sm:$0xff]  ;;  %v5050_v16 = vld [vmem:[%s8892_s5 + $0x108] sm:$0xff] }
 0x3f1   :  { %5976 = vmatpush1.bf16.msra.mxu0 %v5975_v37  ;;  %6004 = vmatpush3.bf16.msra.mxu1 %v6001_v18  ;;  %v4049_v18 = vld [vmem:[%s8892_s5 + $0x18] sm:$0xff]  ;;  %v6031_v37 = vpack.c.bf16 %v4051_v44, %v4050_v30  ;;  %v5044_v44 = vld [vmem:[%s8892_s5 + $0xe0] sm:$0xff] }
 0x3f2   :  { %5978 = vmatprep.subr.bf16.mxu0 %v5977_v52  ;;  %6006 = vmatprep.subr.bf16.mxu1 %v6005_v25  ;;  %v6028_v62 = vpack.c.bf16 %v4049_v18, %v4048_v41  ;;  %v5032_v52 = vld [vmem:[%s8892_s5 + $0x90] sm:$0xff] }
 0x3f3   :  { %v5042_v18 = vld [vmem:[%s8892_s5 + $0xd0] sm:$0xff] }
 0x3f5   :  { %5980 = vmatpush1.bf16.msra.mxu0 %v5979_v53  ;;  %6008 = vmatpush3.bf16.msra.mxu1 %v6005_v25  ;;  %v5033_v25 = vld [vmem:[%s8892_s5 + $0x98] sm:$0xff] }
 0x3f6   :  { %3773 = vmatprep.subr.mxu0 %v5014_v45  ;;  %5436 = vmatprep.subr.mxu1 %v5015_v9  ;;  %v6022_v50 = vpack.c.bf16 %v5033_v25, %v5032_v52  ;;  %v4053_v53 = vld [vmem:[%s8892_s5 + $0x38] sm:$0xff]  ;;  %v5053_v52 = vld [vmem:[%s8892_s5 + $0x120] sm:$0xff]  ;;  %v5054_v25 = vld [vmem:[%s8892_s5 + $0x128] sm:$0xff] }
 0x3f7   :  { %v6034_v45 = vpack.c.bf16 %v4053_v53, %v4052_v63  ;;  %v5055_v53 = vld [vmem:[%s8892_s5 + $0x130] sm:$0xff] }
 0x3f9   :  { %3774 = vmatpush1.msra.mxu0 %v5013_v12  ;;  %5437 = vmatpush3.msra.mxu1 %v5015_v9  ;;  %v4054_v12 = vld [vmem:[%s8892_s5 + $0x40] sm:$0xff] }
 0x3fa   :  { %5016 = vmatmul.mubr.msk.f32.vlgmr.msra.gmra.mrb[24].mxu0 %vm2618_vm6, %v7885_v26  ;;  %5439 = vmatmul.mubr.msk.f32.vlgmr.msra.gmra.mrb[24].mxu1 %vm2618_vm6, %v7927_v27 }
 0x3fb   :  { %5441 = vmatprep.mubr.msk.f32.mxu1 %vm2618_vm6, %v8466_v32  ;;  %3815 = vmatprep.mubr.f32.mxu0 %v6391_v2 }
 0x3fe   :  { %5017 = vmatmul.mubr.msk.f32.gmra.mrb[26].mxu0 %vm2618_vm6, %v7927_v27  ;;  %v3931_v27 = vld [vmem:[%s8891_s4] sm:$0x7] }
 0x3ff   :  { %3821 = vmatprep.mubr.f32.mxu0 %v6391_v2  ;;  %v3944_v24 = vrot.slane %v3931_v27, %v2167_v22  ;;  %v3940_v57 = vrot.slane %v3931_v27, %v2163_v42  ;;  %v6397_v42 = vmov 0.0|0.0  }
 0x400   :  { %6009 = vmatprep.subr.bf16.mxu0 %v6397_v42  ;;  %6024 = vmatprep.subr.bf16.mxu1 %v6397_v42 }
 0x401   :  { %6011 = vmatpush3.bf16.msra.mxu0 %v6010_v36  ;;  %6026 = vmatpush3.bf16.msra.mxu1 %v6025_v4 }
 0x402   :  { %5018 = vmatmul.mubr.msk.f32.gmra.mrb[28].mxu0 %vm2618_vm6, %v8466_v32  ;;  %v3936_v32 = vrot.slane %v3931_v27, %v2159_v6  ;;  %6012 = vmatprep.subr.bf16.mxu0 %v6397_v42 }
 0x403   :  { %3827 = vmatprep.mubr.f32.mxu0 %v6391_v2  ;;  %6027 = vmatprep.subr.bf16.mxu1 %v6397_v42 }
 0x405   :  { %6014 = vmatpush3.bf16.msra.mxu0 %v6013_v56  ;;  %6029 = vmatpush3.bf16.msra.mxu1 %v6028_v62  ;;  %v5043_v62 = vld [vmem:[%s8892_s5 + $0xd8] sm:$0xff] }
 0x406   :  { %6015 = vmatprep.subr.bf16.mxu0 %v6397_v42  ;;  %6030 = vmatprep.subr.bf16.mxu1 %v6397_v42  ;;  %v6049_v30 = vpack.c.bf16 %v5043_v62, %v5042_v18 }
 0x409   :  { %6017 = vmatpush3.bf16.msra.mxu0 %v6016_v34  ;;  %6032 = vmatpush3.bf16.msra.mxu1 %v6031_v37  ;;  %v6058_v34 = vpack.c.bf16 %v5050_v16, %v5049_v48  ;;  %v5045_v37 = vld [vmem:[%s8892_s5 + $0xe8] sm:$0xff] }
 0x40a   :  { %6018 = vmatprep.subr.bf16.mxu0 %v6397_v42  ;;  %6033 = vmatprep.subr.bf16.mxu1 %v6397_v42  ;;  %v6052_v63 = vpack.c.bf16 %v5045_v37, %v5044_v44 }
 0x40d   :  { %6020 = vmatpush3.bf16.msra.mxu0 %v6019_v31  ;;  %6035 = vmatpush3.bf16.msra.mxu1 %v6034_v45  ;;  %v6061_v31 = vpack.c.bf16 %v5052_v40, %v5051_v15  ;;  %v5056_v45 = vld [vmem:[%s8892_s5 + $0x138] sm:$0xff] }
 0x40e   :  { %6021 = vmatprep.subr.bf16.mxu0 %v6397_v42  ;;  %6036 = vmatprep.subr.bf16.mxu1 %v6397_v42 }
 0x411   :  { %6023 = vmatpush3.bf16.msra.mxu0 %v6022_v50  ;;  %v6064_v50 = vpack.c.bf16 %v5054_v25, %v5053_v52 }
 0x412   :  { %6039 = vmatprep.subr.bf16.mxu0 %v6397_v42 }
 0x428   :  { %v2475_v3 = vpop.permute.xlu0 %2474 }
 0x42c   :  { %v2477_v26 = vpop.permute.xlu1 %2476 }
 0x42d   :  { %v2490_v33 = vsel %vm2478_vm5, %v2475_v3, %v2477_v26  ;;  %v4055_v3 = vld [vmem:[%s8892_s5 + $0x48] sm:$0xff] }
 0x42e   :  { %v2514_v14 = vmax.f32 %v8308_v1, %v2490_v33  ;;  %v6037_v33 = vpack.c.bf16 %v4055_v3, %v4054_v12 }
 0x430   :  { %v2526_v54 = vmax.f32 %v2514_v14, 0.0  ;;  %6038 = vmatpush3.bf16.msra.mxu1 %v6037_v33 }
 0x431   :  { %6054 = vmatprep.subr.bf16.mxu1 %v6397_v42 }
 0x432   :  { %5019 = vmatmul.mubr.msk.f32.gmra.mrb[30].mxu0 %vm2618_vm6, %v2526_v54  ;;  %5442 = vmatmul.mubr.msk.f32.gmra.mrb[26].mxu1 %vm2618_vm6, %v2526_v54 }
 0x433   :  { %5464 = vmatprep.mubr.msk.f32.mxu0 %vm6398_vm7, %v6391_v2  ;;  %5487 = vmatprep.mubr.msk.f32.mxu1 %vm6398_vm7, %v6391_v2 }
 0x4cd   :  { %v3811_v47 = vpop.f32.mrb[24].mxu0  ;;  %v5440_v51 = vpop.f32.mrb[24].mxu1 }
 0x4ce   :  { %v8642_v29 = vadd.f32 %v3936_v32, %v3811_v47  ;;  %v3953_v1 = vadd.f32 %v5440_v51, %v3944_v24  ;;  %v3813_v13 = vpop.f32.mrb[25].mxu0  ;;  %v3900_v0 = vpop.f32.mrb[25].mxu1 }
 0x4cf   :  { %v3950_v10 = vadd.f32 %v3944_v24, %v3900_v0  ;;  %v8656_v49 = vadd.f32 %v3940_v57, %v3813_v13 }
 0x4d0   :  { %3974 = vrot.lane.b32.xlu1 %v3953_v1, %s6396_s13 }
 0x4d1   :  { %v3817_v46 = vpop.f32.mrb[26].mxu0 }
 0x4d2   :  { %v8647_v11 = vadd.f32 %v3936_v32, %v3817_v46  ;;  %v3819_v6 = vpop.f32.mrb[27].mxu0 }
 0x4d3   :  { %v8649_v55 = vadd.f32 %v3940_v57, %v3819_v6 }
 0x4d4   :  { %3970 = vrot.lane.b32.xlu1 %v3950_v10, %s6396_s13 }
 0x4d5   :  { %3972 = vrot.lane.b32.xlu0 %v8649_v55, %s6396_s13  ;;  %v3823_v22 = vpop.f32.mrb[28].mxu0 }
 0x4d6   :  { %v8654_v59 = vadd.f32 %v3936_v32, %v3823_v22  ;;  %v3825_v28 = vpop.f32.mrb[29].mxu0 }
 0x4d7   :  { %v8660_v5 = vadd.f32 %v3940_v57, %v3825_v28 }
 0x4d9   :  { %3968 = vrot.lane.b32.xlu0 %v8656_v49, %s6396_s13 }
 0x4dd   :  { %3976 = vrot.lane.b32.xlu0 %v8660_v5, %s6396_s13 }
 0x505   :  { %v3829_v38 = vpop.f32.mrb[30].mxu0  ;;  %v5443_v35 = vpop.f32.mrb[26].mxu1 }
 0x506   :  { %v8684_v19 = vadd.f32 %v3936_v32, %v3829_v38  ;;  %v3831_v60 = vpop.f32.mrb[31].mxu0  ;;  %v3910_v43 = vpop.f32.mrb[27].mxu1  ;;  %v3959_v58 = vadd.f32 %v5443_v35, %v3944_v24  ;;  %v5038_v38 = vld [vmem:[%s8892_s5 + $0xb0] sm:$0xff] }
 0x507   :  { %v8686_v21 = vadd.f32 %v3940_v57, %v3831_v60  ;;  %v3956_v20 = vadd.f32 %v3944_v24, %v3910_v43  ;;  %v6043_v4 = vpack.c.bf16 %v5039_v23, %v5038_v38 }
 0x509   :  { %3978 = vrot.lane.b32.xlu1 %v3956_v20, %s6396_s13  ;;  %3980 = vrot.lane.b32.xlu0 %v8686_v21, %s6396_s13  ;;  %v5040_v20 = vld [vmem:[%s8892_s5 + $0xc0] sm:$0xff] }
 0x50d   :  { %3982 = vrot.lane.b32.xlu1 %v3959_v58, %s6396_s13  ;;  %v5041_v58 = vld [vmem:[%s8892_s5 + $0xc8] sm:$0xff] }
 0x50e   :  { %v6046_v41 = vpack.c.bf16 %v5041_v58, %v5040_v20 }
 0x542   :  { %v3975_v9 = vpop.permute.xlu1 %3974 }
 0x543   :  { %v4000_v26 = vmax.f32 %v8649_v55, %v3975_v9 }
 0x545   :  { %4019 = vrot.lane.b32.xlu1 %v4000_v26, %s6399_s19 }
 0x546   :  { %v3971_v14 = vpop.permute.xlu1 %3970 }
 0x547   :  { %v3998_v54 = vmax.f32 %v8656_v49, %v3971_v14  ;;  %v3973_v27 = vpop.permute.xlu0 %3972 }
 0x548   :  { %v3986_v32 = vsel %vm3984_vm8, %v3973_v27, %v3975_v9  ;;  %v6067_v9 = vpack.c.bf16 %v5056_v45, %v5055_v53 }
 0x549   :  { %v3999_v24 = vmax.f32 %v8647_v11, %v3986_v32  ;;  %4015 = vrot.lane.b32.xlu1 %v3998_v54, %s6399_s19 }
 0x54b   :  { %v3969_v47 = vpop.permute.xlu0 %3968  ;;  %4017 = vrot.lane.b32.xlu0 %v3999_v24, %s6399_s19 }
 0x54c   :  { %v3985_v51 = vsel %vm3984_vm8, %v3969_v47, %v3971_v14 }
 0x54d   :  { %v3997_v1 = vmax.f32 %v8642_v29, %v3985_v51  ;;  %v4393_v51 = vld [vmem:[%s8893_s7] sm:$0xff] }
 0x54f   :  { %4013 = vrot.lane.b32.xlu0 %v3997_v1, %s6399_s19  ;;  %v3977_v13 = vpop.permute.xlu0 %3976 }
 0x57b   :  { %v3979_v0 = vpop.permute.xlu1 %3978  ;;  %v3981_v6 = vpop.permute.xlu0 %3980 }
 0x57c   :  { %v3987_v57 = vsel %vm3984_vm8, %v3977_v13, %v3979_v0  ;;  %v4002_v46 = vmax.f32 %v8660_v5, %v3979_v0  ;;  %v5037_v5 = vld [vmem:[%s8892_s5 + $0xa8] sm:$0xff]  ;;  %v4395_v0 = vld [vmem:[%s8893_s7 + $0x10] sm:$0xff] }
 0x57d   :  { %v8757_v10 = vmax.f32 %v8654_v59, %v3987_v57  ;;  %v5036_v59 = vld [vmem:[%s8892_s5 + $0xa0] sm:$0xff]  ;;  %v4396_v57 = vld [vmem:[%s8893_s7 + $0x18] sm:$0xff] }
 0x57e   :  { %4023 = vrot.lane.b32.xlu1 %v4002_v46, %s6399_s19  ;;  %v6040_v39 = vpack.c.bf16 %v5037_v5, %v5036_v59  ;;  %v6073_v46 = vpack.c.bf16 %v4396_v57, %v4395_v0 }
 0x57f   :  { %4021 = vrot.lane.b32.xlu0 %v8757_v10, %s6399_s19  ;;  %v3983_v11 = vpop.permute.xlu1 %3982 }
 0x580   :  { %v3988_v55 = vsel %vm3984_vm8, %v3981_v6, %v3983_v11  ;;  %v4004_v22 = vmax.f32 %v8686_v21, %v3983_v11  ;;  %v4398_v6 = vld [vmem:[%s8893_s7 + $0x28] sm:$0xff] }
 0x581   :  { %v8763_v29 = vmax.f32 %v8684_v19, %v3988_v55  ;;  %v5048_v19 = vld [vmem:[%s8892_s5 + $0xf8] sm:$0xff]  ;;  %v4399_v55 = vld [vmem:[%s8893_s7 + $0x30] sm:$0x3] }
 0x582   :  { %4027 = vrot.lane.b32.xlu1 %v4004_v22, %s6399_s19  ;;  %v6055_v21 = vpack.c.bf16 %v5048_v19, %v5047_v61 }
 0x583   :  { %4025 = vrot.lane.b32.xlu0 %v8763_v29, %s6399_s19 }
 0x5b7   :  { %v4020_v28 = vpop.permute.xlu1 %4019 }
 0x5bb   :  { %v4016_v35 = vpop.permute.xlu1 %4015 }
 0x5bd   :  { %v4018_v49 = vpop.permute.xlu0 %4017 }
 0x5be   :  { %v4031_v7 = vsel %vm4029_vm9, %v4018_v49, %v4020_v28 }
 0x5bf   :  { %v4039_v8 = vmax.f32 %v3999_v24, %v4031_v7 }
 0x5c1   :  { %v4043_v36 = vmax.f32 %v4039_v8, 0.0  ;;  %v4014_v17 = vpop.permute.xlu0 %4013 }
 0x5c2   :  { %v4030_v60 = vsel %vm4029_vm9, %v4014_v17, %v4016_v35  ;;  %v5059_v17 = vld [vmem:[%s8895_s8] ss:$0 sm:$0xff] }
 0x5c3   :  { %v4038_v43 = vmax.f32 %v3997_v1, %v4030_v60  ;;  %5465 = vmatmul.mubr.msk.f32.vlgmr.msra.gmra.mrb[32].mxu0 %vm4067_vm10, %v4043_v36  ;;  %v4394_v1 = vld [vmem:[%s8893_s7 + $0x8] sm:$0xff] }
 0x5c4   :  { %6041 = vmatpush3.bf16.msra.mxu0 %v6040_v39  ;;  %5510 = vmatprep.mubr.msk.f32.mxu0 %vm6398_vm7, %v6391_v2  ;;  %v6070_v13 = vpack.c.bf16 %v4394_v1, %v4393_v51  ;;  %v5058_v39 = vld [vmem:[%s8894_s6] ss:$0 sm:$0xff] }
 0x5c5   :  { %v4042_v56 = vmax.f32 %v4038_v43, 0.0  ;;  %6042 = vmatprep.subr.bf16.mxu0 %v6397_v42 }
 0x5c7   :  { %5488 = vmatmul.mubr.msk.f32.vlgmr.msra.gmra.mrb[28].mxu1 %vm4067_vm10, %v4042_v56 }
 0x5c8   :  { %6044 = vmatpush3.bf16.msra.mxu0 %v6043_v4  ;;  %6056 = vmatpush3.bf16.msra.mxu1 %v6055_v21 }
 0x5c9   :  { %6045 = vmatprep.subr.bf16.mxu0 %v6397_v42  ;;  %6057 = vmatprep.subr.bf16.mxu1 %v6397_v42 }
 0x5ca   :  { %5533 = vmatprep.mubr.msk.f32.mxu1 %vm6398_vm7, %v6391_v2 }
 0x5cc   :  { %6047 = vmatpush3.bf16.msra.mxu0 %v6046_v41  ;;  %6059 = vmatpush3.bf16.msra.mxu1 %v6058_v34 }
 0x5cd   :  { %6048 = vmatprep.subr.bf16.mxu0 %v6397_v42  ;;  %6060 = vmatprep.subr.bf16.mxu1 %v6397_v42 }
 0x5d0   :  { %6050 = vmatpush3.bf16.msra.mxu0 %v6049_v30  ;;  %6062 = vmatpush3.bf16.msra.mxu1 %v6061_v31 }
 0x5d1   :  { %6051 = vmatprep.subr.bf16.mxu0 %v6397_v42  ;;  %6063 = vmatprep.subr.bf16.mxu1 %v6397_v42 }
 0x5d4   :  { %6053 = vmatpush3.bf16.msra.mxu0 %v6052_v63  ;;  %6065 = vmatpush3.bf16.msra.mxu1 %v6064_v50 }
 0x5d5   :  { %6066 = vmatprep.subr.bf16.mxu1 %v6397_v42  ;;  %6069 = vmatprep.subr.bf16.mxu0 %v6397_v42 }
 0x5d8   :  { %6068 = vmatpush3.bf16.msra.mxu1 %v6067_v9 }
 0x5f0   :  { %v4024_v12 = vpop.permute.xlu1 %4023 }
 0x5f1   :  { %v4022_v3 = vpop.permute.xlu0 %4021 }
 0x5f2   :  { %v4032_v26 = vsel %vm4029_vm9, %v4022_v3, %v4024_v12 }
 0x5f3   :  { %v4040_v33 = vmax.f32 %v8757_v10, %v4032_v26  ;;  %v4397_v10 = vld [vmem:[%s8893_s7 + $0x20] sm:$0xff] }
 0x5f4   :  { %v4028_v14 = vpop.permute.xlu1 %4027  ;;  %v6076_v11 = vpack.c.bf16 %v4398_v6, %v4397_v10 }
 0x5f5   :  { %v4044_v54 = vmax.f32 %v4040_v33, 0.0  ;;  %v4026_v27 = vpop.permute.xlu0 %4025 }
 0x5f6   :  { %v4033_v32 = vsel %vm4029_vm9, %v4026_v27, %v4028_v14 }
 0x5f7   :  { %v4041_v24 = vmax.f32 %v8763_v29, %v4033_v32  ;;  %5511 = vmatmul.mubr.msk.f32.vlgmr.msra.gmra.mrb[34].mxu0 %vm4067_vm10, %v4044_v54 }
 0x5f8   :  { %5550 = vmatprep.mubr.msk.f32.mxu0 %vm6398_vm7, %v6391_v2  ;;  %6071 = vmatpush3.bf16.msra.mxu0 %v6070_v13 }
 0x5f9   :  { %v4045_v47 = vmax.f32 %v4041_v24, 0.0  ;;  %6072 = vmatprep.subr.bf16.mxu0 %v6397_v42 }
 0x5fb   :  { %5534 = vmatmul.mubr.msk.f32.vlgmr.msra.gmra.mrb[30].mxu1 %vm4067_vm10, %v4045_v47 }
 0x5fc   :  { %6074 = vmatpush3.bf16.msra.mxu0 %v6073_v46 }
 0x5fd   :  { %6075 = vmatprep.subr.bf16.mxu0 %v6397_v42 }
 0x600   :  { %6077 = vmatpush3.bf16.msra.mxu0 %v6076_v11 }
 0x601   :  { %5548 = vmatprep.subr.mxu0 %v6391_v2 }
 0x604   :  { %5549 = vmatpush3.msk.msra.mxu0 %vm4411_vm11, %v4399_v55 }
 0x696   :  { %v4137_v22 = vpop.f32.mrb[32].mxu0 }
 0x697   :  { %v5466_v42 = vpop.f32.mrb[33].mxu0 }
 0x69a   :  { %v4210_v29 = vpop.f32.mrb[28].mxu1 }
 0x69b   :  { %v4211_v28 = vadd.f32 %v4210_v29, %v4137_v22  ;;  %v5489_v49 = vpop.f32.mrb[29].mxu1 }
 0x6ca   :  { %v4294_v59 = vpop.f32.mrb[34].mxu0 }
 0x6cb   :  { %v4298_v5 = vadd.f32 %v4294_v59, %v4211_v28  ;;  %v5512_v7 = vpop.f32.mrb[35].mxu0 }
 0x6ce   :  { %v4379_v8 = vpop.f32.mrb[30].mxu1 }
 0x6cf   :  { %v4383_v2 = vadd.f32 %v4379_v8, %v4298_v5  ;;  %v5535_v38 = vpop.f32.mrb[31].mxu1 }
 0x6d1   :  { %v4391_v35 = vadd.f32 %v5058_v39, %v4383_v2 }
 0x6d3   :  { %v4392_v36 = vmax.f32 %v4391_v35, 0.0 }
 0x6d5   :  { %5551 = vmatmul.mubr.msk.f32.vlgmr.msra.gmra.mrb[36].mxu0 %vm4407_vm12, %v4392_v36 }
 0x7a8   :  { %v4481_v23 = vpop.f32.mrb[36].mxu0 }
 0x7a9   :  { %v4482_v61 = vadd.f32 %v5059_v17, %v4481_v23  ;;  %v5552_v19 = vpop.f32.mrb[37].mxu0 }
 0x7ab   :  { %v4486_v60 = vsel %vm4485_vm13, %v4482_v61, -inf }
 0x7ac   :  { %4487 = vmax.xlane.f32.xlu0 %v4486_v60 }
 0x839   :  { %v4488_v43 = vpop.xlane.xlu0 %4487 }
 0x83a   :  { %v4489_v4 = vsub.f32 %v4482_v61, %v4488_v43 }
 0x83c   :  { %v4490_v21 = vmul.f32 1.442695, %v4489_v4 }
 0x83e   :  { %6387 = vpow2.f32 %v4490_v21 }
 0x848   :  { %v6388_v20 = vpop.eup %6387 }
 0x849   :  { %v4492_v56 = vsel %vm4485_vm13, %v6388_v20, 0.0 }
 0x84a   :  { %4493 = vadd.xlane.f32.xlu1 %v4492_v56 }
 0x8d7   :  { %v4494_v58 = vpop.xlane.xlu1 %4493 }
 0x8d8   :  { %6389 = vlog2.f32 %v4494_v58 }
 0x8e2   :  { %v6390_v48 = vpop.eup %6389 }
 0x8e3   :  { %v4496_v16 = vmul.f32 0.6931472, %v6390_v48 }
 0x8e5   :  { %v4497_v41 = vsub.f32 %v4489_v4, %v4496_v16 }
 0x8e7   :  { %4498 = vst.msk [vmem:[%s8896_s9] sm:$0xff] %vm4485_vm13, %v4497_v41 }

</bundles_post_ra>
